<compile_context>
chip_gen: v7x
topology: tpu7x:2x2x1
jax: 0.10.0
libtpu: 0.0.40
codegen_flags: <defaults>
</compile_context>

<pallas_src>
import functools

import jax
import jax.numpy as jnp
from jax.experimental import pallas as pl
from jax.experimental.pallas import tpu as pltpu


def _vmem_limit():
    # Generation-aware scoped-VMEM cap (v5e/v6e: 128 MiB phys, v7x: 64 MiB).
    try:
        return int(pltpu.get_tpu_info().vmem_capacity_bytes * 0.6)
    except Exception:
        return 48 * 1024 * 1024


def _pick_tile(n, target):
    """Largest tile <= target that divides n and is a multiple of 128 (or n)."""
    if n <= target:
        return n
    t = (target // 128) * 128
    while t >= 128:
        if n % t == 0:
            return t
        t -= 128
    return n


def _row_tile(n, target):
    """Like _pick_tile but prefer >=2 row tiles so megacore (v7x) can split."""
    t = _pick_tile(n, target)
    if n // t < 2:
        t2 = _pick_tile(n, max(128, t // 2))
        if n // t2 >= 2:
            t = t2
    return t


# ----------------------------------------------------------------------------
# Kernel 1: tiled projection matmul (bf16 MXU, single full-width f32 accum)
#   h = x @ W                      (N, H*C)   lane-dense, bf16
#   a = x @ [Wa_src | Wa_dst]      (N, 2*H)   per-node attention logits, f32
# Both come out of ONE dot per k-step; the split happens only at finalize.
# ----------------------------------------------------------------------------
def _matmul_ext_kernel(x_ref, w_ref, oh_ref, oa_ref, acc_ref, *, hc):
    k = pl.program_id(1)

    @pl.when(k == 0)
    def _():
        acc_ref[...] = jnp.zeros_like(acc_ref)

    acc_ref[...] += jnp.dot(x_ref[...], w_ref[...],
                            preferred_element_type=jnp.float32)

    @pl.when(k == pl.num_programs(1) - 1)
    def _():
        acc = acc_ref[...]
        oh_ref[...] = acc[:, :hc].astype(oh_ref.dtype)
        oa_ref[...] = acc[:, hc:].astype(oa_ref.dtype)


def matmul_ext(x, w_ext, *, hc):
    """x:(M,K), w_ext:(K, hc+2H) bf16.  Returns (h bf16 (M,hc), a f32 (M,2H))."""
    M, K = x.shape
    wout = w_ext.shape[1]
    na = wout - hc
    tm = _row_tile(M, 256)
    tk = _pick_tile(K, 512)
    assert M % tm == 0 and K % tk == 0

    x_b = x if x.dtype == jnp.bfloat16 else x.astype(jnp.bfloat16)

    return pl.pallas_call(
        functools.partial(_matmul_ext_kernel, hc=hc),
        out_shape=(jax.ShapeDtypeStruct((M, hc), jnp.bfloat16),
                   jax.ShapeDtypeStruct((M, na), jnp.float32)),
        grid_spec=pltpu.PrefetchScalarGridSpec(
            num_scalar_prefetch=0,
            grid=(M // tm, K // tk),
            in_specs=[pl.BlockSpec((tm, tk), lambda i, k: (i, k)),
                      pl.BlockSpec((tk, wout), lambda i, k: (k, 0))],
            out_specs=(pl.BlockSpec((tm, hc), lambda i, k: (i, 0)),
                       pl.BlockSpec((tm, na), lambda i, k: (i, 0))),
            scratch_shapes=[pltpu.VMEM((tm, wout), jnp.float32)]),
        compiler_params=pltpu.CompilerParams(
            dimension_semantics=("parallel", "arbitrary"),
            vmem_limit_bytes=_vmem_limit()),
    )(x_b, w_ext)


# ----------------------------------------------------------------------------
# Kernel 2: tiled GAT attention, heads inside, precomputed exact row max,
# plain (non-rescaling) accumulators, fused epilogue.
#   e[h,i,j] = leaky_relu(a_dst[i,h] + a_src[j,h])    for edge j -> i
#   attn     = softmax_j(e restricted to adj[i,j]=1)
#   out[i]   = concat_h sum_j attn[h,i,j] * h_feat[j, h*C:(h+1)*C]
#   epilogue "bn_relu":      relu(out * scale + shift)   -> bf16
#   epilogue "log_softmax":  log_softmax(out + shift)    -> f32
# ----------------------------------------------------------------------------
def _gat_attn_kernel(adj_ref, h_ref, asrc_ref, adst_ref, rmax_ref, scale_ref,
                     shift_ref, o_ref, l_sc, acc_sc, *, heads, out_ch,
                     epilogue, tc, resident_h):
    cj = pl.program_id(1)

    @pl.when(cj == 0)
    def _():
        l_sc[...] = jnp.zeros_like(l_sc)
        acc_sc[...] = jnp.zeros_like(acc_sc)

    # adj tile: int8 0/1, converted ONCE per grid step, reused by every head.
    # TODO(synk): on v5e a compare/select (or bit-packed adj) would avoid the
    # int8->f32 convert; kept as a multiply-mask for lowering robustness.
    adj_f = adj_ref[...].astype(jnp.float32)                     # (tr, tc)

    if resident_h:
        j0 = pl.multiple_of(cj * tc, tc)
        h_tile = h_ref[pl.ds(j0, tc), :]                         # (tc, hc) bf16
    else:
        h_tile = h_ref[...]

    acc_upd = []
    l_upd = []
    for hd in range(heads):                       # static unroll, heads small
        c0 = hd * out_ch
        a_dst = adst_ref[:, hd:hd + 1]                           # (tr, 1)
        a_src = asrc_ref[hd:hd + 1, :]                           # (1, tc)
        e = a_dst + a_src                                        # (tr, tc)
        e = jnp.where(e > 0, e, 0.2 * e)                         # LeakyReLU(0.2)
        # rmax is the EXACT per-row/per-head max of e over all columns
        # (rank-1 score + monotonic LeakyReLU), so exp(e - rmax) <= 1 and no
        # online rescaling is needed.  Masking after exp keeps the softmax
        # exact (masked terms are zeroed, valid terms share the same max).
        p = jnp.exp(e - rmax_ref[:, hd:hd + 1]) * adj_f          # (tr, tc)
        l_upd.append(jnp.sum(p, axis=-1, keepdims=True))
        acc_upd.append(jnp.dot(p.astype(h_tile.dtype),
                               h_tile[:, c0:c0 + out_ch],
                               preferred_element_type=jnp.float32))

    # One lane-dense read-modify-write per grid step (no per-head narrow RMW).
    l_sc[...] += jnp.concatenate(l_upd, axis=-1)
    acc_sc[...] += jnp.concatenate(acc_upd, axis=-1)

    @pl.when(cj == pl.num_programs(1) - 1)
    def _():
        # Self-loops guarantee l > 0; eps only guards invariant breaches.
        inv_l = pl.reciprocal(l_sc[...] + 1e-20, approx=True)    # (tr, heads)
        rows = inv_l.shape[0]
        inv_full = jnp.concatenate(
            [jnp.broadcast_to(inv_l[:, hd:hd + 1], (rows, out_ch))
             for hd in range(heads)], axis=-1)                   # (tr, hc)
        y = acc_sc[...] * inv_full * scale_ref[...] + shift_ref[...]
        if epilogue == "bn_relu":
            o_ref[...] = jnp.maximum(y, 0.0).astype(o_ref.dtype)
        else:  # "log_softmax" — full feature row is resident in this block
            m2 = jnp.max(y, axis=-1, keepdims=True)
            z = y - m2
            lse = jnp.log(jnp.sum(jnp.exp(z), axis=-1, keepdims=True))
            o_ref[...] = (z - lse).astype(o_ref.dtype)


def gat_attention(adj_i8, h_bf, a_src_hn, a_dst_nh, rmax_nh, scale, shift, *,
                  heads, out_ch, epilogue, out_dtype):
    N = adj_i8.shape[0]
    hc = heads * out_ch
    tr = _row_tile(N, 256)
    tc = _pick_tile(N, 512)          # fill the 256-deep MXU on v6e/v7x
    assert N % tr == 0 and N % tc == 0
    # Keep h fully VMEM-resident (DMA'd once) when it is small enough.
    resident_h = (N * hc * 2) <= 8 * 1024 * 1024

    kernel = functools.partial(_gat_attn_kernel, heads=heads, out_ch=out_ch,
                               epilogue=epilogue, tc=tc, resident_h=resident_h)
    if resident_h:
        h_spec = pl.BlockSpec((N, hc), lambda ri, cj: (0, 0))
    else:
        h_spec = pl.BlockSpec((tc, hc), lambda ri, cj: (cj, 0))

    return pl.pallas_call(
        kernel,
        out_shape=jax.ShapeDtypeStruct((N, hc), out_dtype),
        grid_spec=pltpu.PrefetchScalarGridSpec(
            num_scalar_prefetch=0,
            grid=(N // tr, N // tc),
            in_specs=[
                pl.BlockSpec((tr, tc), lambda ri, cj: (ri, cj)),       # adj i8
                h_spec,                                                # h bf16
                pl.BlockSpec((heads, tc), lambda ri, cj: (0, cj)),     # a_src (H,N)
                pl.BlockSpec((tr, heads), lambda ri, cj: (ri, 0)),     # a_dst (N,H)
                pl.BlockSpec((tr, heads), lambda ri, cj: (ri, 0)),     # row max (N,H)
                pl.BlockSpec((1, hc), lambda ri, cj: (0, 0)),          # scale
                pl.BlockSpec((1, hc), lambda ri, cj: (0, 0)),          # shift
            ],
            out_specs=pl.BlockSpec((tr, hc), lambda ri, cj: (ri, 0)),
            scratch_shapes=[pltpu.VMEM((tr, heads), jnp.float32),      # l
                            pltpu.VMEM((tr, hc), jnp.float32)]),       # acc
        compiler_params=pltpu.CompilerParams(
            dimension_semantics=("parallel", "arbitrary"),
            vmem_limit_bytes=_vmem_limit()),
    )(adj_i8, h_bf, a_src_hn, a_dst_nh, rmax_nh, scale, shift)


# ----------------------------------------------------------------------------
# GATConv layer (PyG semantics: concat=True, negative_slope=0.2, self-loops)
# with fused epilogue (bias+BN+ReLU or bias+bias_last+log_softmax).
# ----------------------------------------------------------------------------
def gat_conv(x, adj_i8, layer, *, epilogue):
    w_ext = layer["w_ext"]                       # (F_in, hc + 2H) bf16, prebuilt
    scale, shift = layer["scale"], layer["shift"]
    hc = scale.shape[1]
    na = w_ext.shape[1] - hc
    H = na // 2
    C = hc // H

    h_bf, a_pack = matmul_ext(x, w_ext, hc=hc)   # Pallas matmul
    a_src_nh = a_pack[:, :H]                     # (N, H) tiny
    a_dst_nh = a_pack[:, H:]                     # (N, H) tiny
    a_src_hn = a_src_nh.T                        # (H, N) tiny transpose

    # Exact per-row/per-head score max: rank-1 score + monotonic LeakyReLU.
    amax = jnp.max(a_src_nh, axis=0, keepdims=True)              # (1, H)
    rmax_nh = a_dst_nh + amax
    rmax_nh = jnp.where(rmax_nh > 0, rmax_nh, 0.2 * rmax_nh)     # LeakyReLU

    out_dtype = jnp.bfloat16 if epilogue == "bn_relu" else jnp.float32
    return gat_attention(adj_i8, h_bf, a_src_hn, a_dst_nh, rmax_nh, scale,
                         shift, heads=H, out_ch=C, epilogue=epilogue,
                         out_dtype=out_dtype)


# ----------------------------------------------------------------------------
# Parameter init (deterministic, synthetic) + per-layer preparation (hoisted)
# ----------------------------------------------------------------------------
def init_gat_params(key, in_ch, hid, out_ch, num_layers, heads):
    params = {"convs": [], "bns": []}

    def conv_init(k, f_in, f_out, h):
        k1, k2, k3 = jax.random.split(k, 3)
        scale = 1.0 / jnp.sqrt(jnp.float32(f_in))
        return {
            "W": jax.random.normal(k1, (f_in, h * f_out), jnp.float32) * scale,
            "att_src": jax.random.normal(k2, (h, f_out), jnp.float32) * 0.1,
            "att_dst": jax.random.normal(k3, (h, f_out), jnp.float32) * 0.1,
            "bias": jnp.zeros((h * f_out,), jnp.float32),
        }

    def bn_init(f):
        return {
            "gamma": jnp.ones((1, f), jnp.float32),
            "beta": jnp.zeros((1, f), jnp.float32),
            "mean": jnp.zeros((1, f), jnp.float32),
            "var": jnp.ones((1, f), jnp.float32),
        }

    keys = jax.random.split(key, num_layers)
    params["convs"].append(conv_init(keys[0], in_ch, hid, heads))
    params["bns"].append(bn_init(hid * heads))
    for li in range(num_layers - 2):
        params["convs"].append(conv_init(keys[1 + li], hid * heads, hid, heads))
        params["bns"].append(bn_init(hid * heads))
    params["convs"].append(conv_init(keys[-1], hid * heads, out_ch, 1))
    params["bias_last"] = jnp.zeros((1, out_ch), jnp.float32)   # ElementWiseLinear
    return params


def prepare_gat_params(params):
    """Hoist per-layer glue out of the forward: fold att_src/att_dst into the
    projection (w_ext), fold conv bias + BatchNorm(eval) into scale/shift,
    and pre-cast weights to bf16.  Runs once."""
    layers = []
    n_conv = len(params["convs"])
    for i, conv in enumerate(params["convs"]):
        W = conv["W"]
        H, C = conv["att_src"].shape
        hc = H * C
        f_in = W.shape[0]
        w_h = W.reshape(f_in, H, C)
        w_asrc = jnp.einsum("fhc,hc->fh", w_h, conv["att_src"])   # (F_in, H)
        w_adst = jnp.einsum("fhc,hc->fh", w_h, conv["att_dst"])   # (F_in, H)
        w_ext = jnp.concatenate([W, w_asrc, w_adst], axis=1)      # (F_in, hc+2H)
        if i < n_conv - 1:
            bn = params["bns"][i]
            inv_std = jax.lax.rsqrt(bn["var"] + 1e-5)
            scale = bn["gamma"] * inv_std
            shift = (conv["bias"][None, :] - bn["mean"]) * scale + bn["beta"]
        else:
            scale = jnp.ones((1, hc), jnp.float32)
            shift = conv["bias"][None, :] + params["bias_last"]
        layers.append({"w_ext": w_ext.astype(jnp.bfloat16),
                       "scale": scale, "shift": shift})
    return layers


# ----------------------------------------------------------------------------
# Full forward pass (inference mode)
# ----------------------------------------------------------------------------
@jax.jit
def gat_forward(layers, x, adj):
    # TODO(synk): F.dropout / input_drop / attn_drop are training-only; no-op.
    adj_i8 = (adj != 0).astype(jnp.int8)        # 0/1 mask; halve adj HBM stream
    n = len(layers)
    for i, layer in enumerate(layers):
        epilogue = "log_softmax" if i == n - 1 else "bn_relu"
        x = gat_conv(x, adj_i8, layer, epilogue=epilogue)
    return x


if __name__ == "__main__":
    N, in_ch, hid, out_ch = 256, 32, 16, 8
    num_layers, heads = 3, 2

    key = jax.random.PRNGKey(0)
    kx, ka, kp = jax.random.split(key, 3)

    x = jax.random.normal(kx, (N, in_ch), jnp.float32)

    # random sparse-ish adjacency (adj[i, j] = 1 <=> edge j -> i) + self-loops
    adj = (jax.random.uniform(ka, (N, N)) < 0.05).astype(jnp.float32)
    adj = jnp.maximum(adj, jnp.eye(N, dtype=jnp.float32))

    params = init_gat_params(kp, in_ch, hid, out_ch, num_layers, heads)
    layers = prepare_gat_params(params)

    out = gat_forward(layers, x, adj)
    out = jax.block_until_ready(out)

    assert out.shape == (N, out_ch)
    # rows of log-softmax should sum to 1 after exp
    assert bool(jnp.all(jnp.abs(jnp.sum(jnp.exp(out), axis=-1) - 1.0) < 1e-3))
    assert bool(jnp.all(jnp.isfinite(out)))
    print("KERNEL_OK")
</pallas_src>

<mosaic_0001>
module attributes {stable_mosaic.version = 11 : i64} {
  func.func @_matmul_ext_kernel(%arg0: i32, %arg1: i32, %arg2: memref<128x32xbf16, #tpu.memory_space<vmem>>, %arg3: memref<32x36xbf16, #tpu.memory_space<vmem>>, %arg4: memref<128x32xbf16, #tpu.memory_space<vmem>>, %arg5: memref<128x4xf32, #tpu.memory_space<vmem>>, %arg6: memref<128x36xf32, #tpu.memory_space<vmem>>) attributes {dimension_semantics = [#tpu.dimension_semantics<parallel>, #tpu.dimension_semantics<arbitrary>], iteration_bounds = array<i64: 2, 1>, scalar_prefetch = 0 : i64, scratch_operands = 1 : i64, tpu.core_type = #tpu.core_type<tc>, window_params = [{transform_indices = @transform_0, window_bounds = array<i64: 128, 32>}, {transform_indices = @transform_1, window_bounds = array<i64: 32, 36>}, {transform_indices = @transform_2, window_bounds = array<i64: 128, 32>}, {transform_indices = @transform_3, window_bounds = array<i64: 128, 4>}]} {
    %c0_i32 = arith.constant 0 : i32
    %0 = arith.cmpi eq, %arg1, %c0_i32 : i32
    %1 = arith.extui %0 : i1 to i32
    %c0_i32_0 = arith.constant 0 : i32
    %2 = arith.cmpi ne, %1, %c0_i32_0 : i32
    scf.if %2 {
      %cst_10 = arith.constant 0.000000e+00 : f32
      %12 = vector.broadcast %cst_10 : f32 to vector<128x36xf32>
      %c0_11 = arith.constant 0 : index
      %c0_12 = arith.constant 0 : index
      %13 = vector.load %arg6[%c0_11, %c0_12] : memref<128x36xf32, #tpu.memory_space<vmem>>, vector<128x36xf32>
      tpu.vector_store %arg6[%c0_11, %c0_12], %12 {strides = array<i32>} : memref<128x36xf32, #tpu.memory_space<vmem>>, vector<128x36xf32>,
    } else {
    }
    %c0 = arith.constant 0 : index
    %c0_1 = arith.constant 0 : index
    %3 = vector.load %arg6[%c0, %c0_1] : memref<128x36xf32, #tpu.memory_space<vmem>>, vector<128x36xf32>
    %c0_2 = arith.constant 0 : index
    %c0_3 = arith.constant 0 : index
    %4 = vector.load %arg2[%c0_2, %c0_3] : memref<128x32xbf16, #tpu.memory_space<vmem>>, vector<128x32xbf16>
    %c0_4 = arith.constant 0 : index
    %c0_5 = arith.constant 0 : index
    %5 = vector.load %arg3[%c0_4, %c0_5] : memref<32x36xbf16, #tpu.memory_space<vmem>>, vector<32x36xbf16>
    %cst = arith.constant dense<0.000000e+00> : vector<128x36xf32>
    %6 = tpu.matmul %4, %5, %cst {dimension_numbers = #tpu.dot_dimension_numbers<[1], [0], [0], [1], [0, 0, 1, 1], [], []>} : vector<128x32xbf16>, vector<32x36xbf16>, vector<128x36xf32> -> vector<128x36xf32>
    %7 = arith.addf %3, %6 : vector<128x36xf32>
    %c0_6 = arith.constant 0 : index
    %c0_7 = arith.constant 0 : index
    %8 = vector.load %arg6[%c0_6, %c0_7] : memref<128x36xf32, #tpu.memory_space<vmem>>, vector<128x36xf32>
    tpu.vector_store %arg6[%c0_6, %c0_7], %7 {strides = array<i32>} : memref<128x36xf32, #tpu.memory_space<vmem>>, vector<128x36xf32>,
    %c0_i32_8 = arith.constant 0 : i32
    %9 = arith.cmpi eq, %arg1, %c0_i32_8 : i32
    %10 = arith.extui %9 : i1 to i32
    %c0_i32_9 = arith.constant 0 : i32
    %11 = arith.cmpi ne, %10, %c0_i32_9 : i32
    scf.if %11 {
      %c0_10 = arith.constant 0 : index
      %c0_11 = arith.constant 0 : index
      %12 = vector.load %arg6[%c0_10, %c0_11] : memref<128x36xf32, #tpu.memory_space<vmem>>, vector<128x36xf32>
      %13 = vector.extract_strided_slice %12 {offsets = [0, 0], sizes = [128, 32], strides = [1, 1]} : vector<128x36xf32> to vector<128x32xf32>
      %14 = arith.truncf %13 : vector<128x32xf32> to vector<128x32xbf16>
      %c0_12 = arith.constant 0 : index
      %c0_13 = arith.constant 0 : index
      %15 = vector.load %arg4[%c0_12, %c0_13] : memref<128x32xbf16, #tpu.memory_space<vmem>>, vector<128x32xbf16>
      tpu.vector_store %arg4[%c0_12, %c0_13], %14 {strides = array<i32>} : memref<128x32xbf16, #tpu.memory_space<vmem>>, vector<128x32xbf16>,
      %16 = vector.extract_strided_slice %12 {offsets = [0, 32], sizes = [128, 4], strides = [1, 1]} : vector<128x36xf32> to vector<128x4xf32>
      %c0_14 = arith.constant 0 : index
      %c0_15 = arith.constant 0 : index
      %17 = vector.load %arg5[%c0_14, %c0_15] : memref<128x4xf32, #tpu.memory_space<vmem>>, vector<128x4xf32>
      tpu.vector_store %arg5[%c0_14, %c0_15], %16 {strides = array<i32>} : memref<128x4xf32, #tpu.memory_space<vmem>>, vector<128x4xf32>,
    } else {
    }
    return
  }
  func.func @transform_0(%arg0: i32, %arg1: i32) -> (i32, i32) {
    %c0_i32 = arith.constant 0 : i32
    return %arg0, %arg1 : i32, i32
  }
  func.func @transform_1(%arg0: i32, %arg1: i32) -> (i32, i32) {
    %c0_i32 = arith.constant 0 : i32
    %c0_i32_0 = arith.constant 0 : i32
    return %arg1, %c0_i32 : i32, i32
  }
  func.func @transform_2(%arg0: i32, %arg1: i32) -> (i32, i32) {
    %c0_i32 = arith.constant 0 : i32
    %c0_i32_0 = arith.constant 0 : i32
    return %arg0, %c0_i32 : i32, i32
  }
  func.func @transform_3(%arg0: i32, %arg1: i32) -> (i32, i32) {
    %c0_i32 = arith.constant 0 : i32
    %c0_i32_0 = arith.constant 0 : i32
    return %arg0, %c0_i32 : i32, i32
  }
}

module attributes {stable_mosaic.version = 11 : i64} {
  func.func @_matmul_ext_kernel(%arg0: i32, %arg1: i32, %arg2: memref<128x32xbf16, #tpu.memory_space<vmem>>, %arg3: memref<32x10xbf16, #tpu.memory_space<vmem>>, %arg4: memref<128x8xbf16, #tpu.memory_space<vmem>>, %arg5: memref<128x2xf32, #tpu.memory_space<vmem>>, %arg6: memref<128x10xf32, #tpu.memory_space<vmem>>) attributes {dimension_semantics = [#tpu.dimension_semantics<parallel>, #tpu.dimension_semantics<arbitrary>], iteration_bounds = array<i64: 2, 1>, scalar_prefetch = 0 : i64, scratch_operands = 1 : i64, tpu.core_type = #tpu.core_type<tc>, window_params = [{transform_indices = @transform_0, window_bounds = array<i64: 128, 32>}, {transform_indices = @transform_1, window_bounds = array<i64: 32, 10>}, {transform_indices = @transform_2, window_bounds = array<i64: 128, 8>}, {transform_indices = @transform_3, window_bounds = array<i64: 128, 2>}]} {
    %c0_i32 = arith.constant 0 : i32
    %0 = arith.cmpi eq, %arg1, %c0_i32 : i32
    %1 = arith.extui %0 : i1 to i32
    %c0_i32_0 = arith.constant 0 : i32
    %2 = arith.cmpi ne, %1, %c0_i32_0 : i32
    scf.if %2 {
      %cst_10 = arith.constant 0.000000e+00 : f32
      %12 = vector.broadcast %cst_10 : f32 to vector<128x10xf32>
      %c0_11 = arith.constant 0 : index
      %c0_12 = arith.constant 0 : index
      %13 = vector.load %arg6[%c0_11, %c0_12] : memref<128x10xf32, #tpu.memory_space<vmem>>, vector<128x10xf32>
      tpu.vector_store %arg6[%c0_11, %c0_12], %12 {strides = array<i32>} : memref<128x10xf32, #tpu.memory_space<vmem>>, vector<128x10xf32>,
    } else {
    }
    %c0 = arith.constant 0 : index
    %c0_1 = arith.constant 0 : index
    %3 = vector.load %arg6[%c0, %c0_1] : memref<128x10xf32, #tpu.memory_space<vmem>>, vector<128x10xf32>
    %c0_2 = arith.constant 0 : index
    %c0_3 = arith.constant 0 : index
    %4 = vector.load %arg2[%c0_2, %c0_3] : memref<128x32xbf16, #tpu.memory_space<vmem>>, vector<128x32xbf16>
    %c0_4 = arith.constant 0 : index
    %c0_5 = arith.constant 0 : index
    %5 = vector.load %arg3[%c0_4, %c0_5] : memref<32x10xbf16, #tpu.memory_space<vmem>>, vector<32x10xbf16>
    %cst = arith.constant dense<0.000000e+00> : vector<128x10xf32>
    %6 = tpu.matmul %4, %5, %cst {dimension_numbers = #tpu.dot_dimension_numbers<[1], [0], [0], [1], [0, 0, 1, 1], [], []>} : vector<128x32xbf16>, vector<32x10xbf16>, vector<128x10xf32> -> vector<128x10xf32>
    %7 = arith.addf %3, %6 : vector<128x10xf32>
    %c0_6 = arith.constant 0 : index
    %c0_7 = arith.constant 0 : index
    %8 = vector.load %arg6[%c0_6, %c0_7] : memref<128x10xf32, #tpu.memory_space<vmem>>, vector<128x10xf32>
    tpu.vector_store %arg6[%c0_6, %c0_7], %7 {strides = array<i32>} : memref<128x10xf32, #tpu.memory_space<vmem>>, vector<128x10xf32>,
    %c0_i32_8 = arith.constant 0 : i32
    %9 = arith.cmpi eq, %arg1, %c0_i32_8 : i32
    %10 = arith.extui %9 : i1 to i32
    %c0_i32_9 = arith.constant 0 : i32
    %11 = arith.cmpi ne, %10, %c0_i32_9 : i32
    scf.if %11 {
      %c0_10 = arith.constant 0 : index
      %c0_11 = arith.constant 0 : index
      %12 = vector.load %arg6[%c0_10, %c0_11] : memref<128x10xf32, #tpu.memory_space<vmem>>, vector<128x10xf32>
      %13 = vector.extract_strided_slice %12 {offsets = [0, 0], sizes = [128, 8], strides = [1, 1]} : vector<128x10xf32> to vector<128x8xf32>
      %14 = arith.truncf %13 : vector<128x8xf32> to vector<128x8xbf16>
      %c0_12 = arith.constant 0 : index
      %c0_13 = arith.constant 0 : index
      %15 = vector.load %arg4[%c0_12, %c0_13] : memref<128x8xbf16, #tpu.memory_space<vmem>>, vector<128x8xbf16>
      tpu.vector_store %arg4[%c0_12, %c0_13], %14 {strides = array<i32>} : memref<128x8xbf16, #tpu.memory_space<vmem>>, vector<128x8xbf16>,
      %16 = vector.extract_strided_slice %12 {offsets = [0, 8], sizes = [128, 2], strides = [1, 1]} : vector<128x10xf32> to vector<128x2xf32>
      %c0_14 = arith.constant 0 : index
      %c0_15 = arith.constant 0 : index
      %17 = vector.load %arg5[%c0_14, %c0_15] : memref<128x2xf32, #tpu.memory_space<vmem>>, vector<128x2xf32>
      tpu.vector_store %arg5[%c0_14, %c0_15], %16 {strides = array<i32>} : memref<128x2xf32, #tpu.memory_space<vmem>>, vector<128x2xf32>,
    } else {
    }
    return
  }
  func.func @transform_0(%arg0: i32, %arg1: i32) -> (i32, i32) {
    %c0_i32 = arith.constant 0 : i32
    return %arg0, %arg1 : i32, i32
  }
  func.func @transform_1(%arg0: i32, %arg1: i32) -> (i32, i32) {
    %c0_i32 = arith.constant 0 : i32
    %c0_i32_0 = arith.constant 0 : i32
    return %arg1, %c0_i32 : i32, i32
  }
  func.func @transform_2(%arg0: i32, %arg1: i32) -> (i32, i32) {
    %c0_i32 = arith.constant 0 : i32
    %c0_i32_0 = arith.constant 0 : i32
    return %arg0, %c0_i32 : i32, i32
  }
  func.func @transform_3(%arg0: i32, %arg1: i32) -> (i32, i32) {
    %c0_i32 = arith.constant 0 : i32
    %c0_i32_0 = arith.constant 0 : i32
    return %arg0, %c0_i32 : i32, i32
  }
}

module attributes {stable_mosaic.version = 11 : i64} {
  func.func @_gat_attn_kernel(%arg0: i32, %arg1: i32, %arg2: memref<128x256xi8, #tpu.memory_space<vmem>>, %arg3: memref<256x32xbf16, #tpu.memory_space<vmem>>, %arg4: memref<2x256xf32, #tpu.memory_space<vmem>>, %arg5: memref<128x2xf32, #tpu.memory_space<vmem>>, %arg6: memref<128x2xf32, #tpu.memory_space<vmem>>, %arg7: memref<1x32xf32, #tpu.memory_space<vmem>>, %arg8: memref<1x32xf32, #tpu.memory_space<vmem>>, %arg9: memref<128x32xbf16, #tpu.memory_space<vmem>>, %arg10: memref<128x2xf32, #tpu.memory_space<vmem>>, %arg11: memref<128x32xf32, #tpu.memory_space<vmem>>) attributes {dimension_semantics = [#tpu.dimension_semantics<parallel>, #tpu.dimension_semantics<arbitrary>], iteration_bounds = array<i64: 2, 1>, scalar_prefetch = 0 : i64, scratch_operands = 2 : i64, tpu.core_type = #tpu.core_type<tc>, window_params = [{transform_indices = @transform_0, window_bounds = array<i64: 128, 256>}, {pipeline_mode = #tpu.pipeline_mode<synchronous>, transform_indices = @transform_1, window_bounds = array<i64: 256, 32>}, {transform_indices = @transform_2, window_bounds = array<i64: 2, 256>}, {transform_indices = @transform_3, window_bounds = array<i64: 128, 2>}, {transform_indices = @transform_4, window_bounds = array<i64: 128, 2>}, {pipeline_mode = #tpu.pipeline_mode<synchronous>, transform_indices = @transform_5, window_bounds = array<i64: 1, 32>}, {pipeline_mode = #tpu.pipeline_mode<synchronous>, transform_indices = @transform_6, window_bounds = array<i64: 1, 32>}, {transform_indices = @transform_7, window_bounds = array<i64: 128, 32>}]} {
    %c0_i32 = arith.constant 0 : i32
    %0 = arith.cmpi eq, %arg1, %c0_i32 : i32
    %1 = arith.extui %0 : i1 to i32
    %c0_i32_0 = arith.constant 0 : i32
    %2 = arith.cmpi ne, %1, %c0_i32_0 : i32
    scf.if %2 {
      %cst_31 = arith.constant 0.000000e+00 : f32
      %60 = vector.broadcast %cst_31 : f32 to vector<128x2xf32>
      %c0_32 = arith.constant 0 : index
      %c0_33 = arith.constant 0 : index
      %61 = vector.load %arg10[%c0_32, %c0_33] : memref<128x2xf32, #tpu.memory_space<vmem>>, vector<128x2xf32>
      tpu.vector_store %arg10[%c0_32, %c0_33], %60 {strides = array<i32>} : memref<128x2xf32, #tpu.memory_space<vmem>>, vector<128x2xf32>,
      %cst_34 = arith.constant 0.000000e+00 : f32
      %62 = vector.broadcast %cst_34 : f32 to vector<128x32xf32>
      %c0_35 = arith.constant 0 : index
      %c0_36 = arith.constant 0 : index
      %63 = vector.load %arg11[%c0_35, %c0_36] : memref<128x32xf32, #tpu.memory_space<vmem>>, vector<128x32xf32>
      tpu.vector_store %arg11[%c0_35, %c0_36], %62 {strides = array<i32>} : memref<128x32xf32, #tpu.memory_space<vmem>>, vector<128x32xf32>,
    } else {
    }
    %c0 = arith.constant 0 : index
    %c0_1 = arith.constant 0 : index
    %3 = vector.load %arg2[%c0, %c0_1] : memref<128x256xi8, #tpu.memory_space<vmem>>, vector<128x256xi8>
    %4 = arith.sitofp %3 : vector<128x256xi8> to vector<128x256xf32>
    %c256_i32 = arith.constant 256 : i32
    %5 = arith.muli %arg1, %c256_i32 : i32
    %6 = tpu.assume_multiple %5, 256 : i32
    %7 = arith.index_cast %6 : i32 to index
    %c0_2 = arith.constant 0 : index
    %8 = vector.load %arg3[%7, %c0_2] : memref<256x32xbf16, #tpu.memory_space<vmem>>, vector<256x32xbf16>
    %c0_3 = arith.constant 0 : index
    %c0_4 = arith.constant 0 : index
    %9 = vector.load %arg5[%c0_3, %c0_4] : memref<128x2xf32, #tpu.memory_space<vmem>>, vector<128x1xf32>
    %c0_5 = arith.constant 0 : index
    %c0_6 = arith.constant 0 : index
    %10 = vector.load %arg4[%c0_5, %c0_6] : memref<2x256xf32, #tpu.memory_space<vmem>>, vector<1x256xf32>
    %11 = vector.broadcast %9 : vector<128x1xf32> to vector<128x256xf32>
    %12 = vector.broadcast %10 : vector<1x256xf32> to vector<128x256xf32>
    %13 = arith.addf %11, %12 : vector<128x256xf32>
    %cst = arith.constant 0.000000e+00 : f32
    %14 = vector.broadcast %cst : f32 to vector<128x256xf32>
    %15 = arith.cmpf ogt, %13, %14 : vector<128x256xf32>
    %cst_7 = arith.constant 2.000000e-01 : f32
    %16 = vector.broadcast %cst_7 : f32 to vector<128x256xf32>
    %17 = arith.mulf %16, %13 : vector<128x256xf32>
    %18 = arith.select %15, %13, %17 : vector<128x256xi1>, vector<128x256xf32>
    %c0_8 = arith.constant 0 : index
    %c0_9 = arith.constant 0 : index
    %19 = vector.load %arg6[%c0_8, %c0_9] : memref<128x2xf32, #tpu.memory_space<vmem>>, vector<128x1xf32>
    %20 = vector.broadcast %19 : vector<128x1xf32> to vector<128x256xf32>
    %21 = arith.subf %18, %20 : vector<128x256xf32>
    %22 = math.exp %21 : vector<128x256xf32>
    %23 = arith.mulf %22, %4 : vector<128x256xf32>
    %cst_10 = arith.constant dense<0.000000e+00> : vector<128xf32>
    %24 = vector.multi_reduction <add>, %23, %cst_10 [1] : vector<128x256xf32> to vector<128xf32>
    %25 = vector.shape_cast %24 : vector<128xf32> to vector<128x1xf32>
    %26 = arith.truncf %23 : vector<128x256xf32> to vector<128x256xbf16>
    %27 = vector.extract_strided_slice %8 {offsets = [0, 0], sizes = [256, 16], strides = [1, 1]} : vector<256x32xbf16> to vector<256x16xbf16>
    %cst_11 = arith.constant dense<0.000000e+00> : vector<128x16xf32>
    %28 = tpu.matmul %26, %27, %cst_11 {dimension_numbers = #tpu.dot_dimension_numbers<[1], [0], [0], [1], [0, 0, 1, 1], [], []>} : vector<128x256xbf16>, vector<256x16xbf16>, vector<128x16xf32> -> vector<128x16xf32>
    %c0_12 = arith.constant 0 : index
    %c1 = arith.constant 1 : index
    %29 = vector.load %arg5[%c0_12, %c1] : memref<128x2xf32, #tpu.memory_space<vmem>>, vector<128x1xf32>
    %c1_13 = arith.constant 1 : index
    %c0_14 = arith.constant 0 : index
    %30 = vector.load %arg4[%c1_13, %c0_14] : memref<2x256xf32, #tpu.memory_space<vmem>>, vector<1x256xf32>
    %31 = vector.broadcast %29 : vector<128x1xf32> to vector<128x256xf32>
    %32 = vector.broadcast %30 : vector<1x256xf32> to vector<128x256xf32>
    %33 = arith.addf %31, %32 : vector<128x256xf32>
    %cst_15 = arith.constant 0.000000e+00 : f32
    %34 = vector.broadcast %cst_15 : f32 to vector<128x256xf32>
    %35 = arith.cmpf ogt, %33, %34 : vector<128x256xf32>
    %cst_16 = arith.constant 2.000000e-01 : f32
    %36 = vector.broadcast %cst_16 : f32 to vector<128x256xf32>
    %37 = arith.mulf %36, %33 : vector<128x256xf32>
    %38 = arith.select %35, %33, %37 : vector<128x256xi1>, vector<128x256xf32>
    %c0_17 = arith.constant 0 : index
    %c1_18 = arith.constant 1 : index
    %39 = vector.load %arg6[%c0_17, %c1_18] : memref<128x2xf32, #tpu.memory_space<vmem>>, vector<128x1xf32>
    %40 = vector.broadcast %39 : vector<128x1xf32> to vector<128x256xf32>
    %41 = arith.subf %38, %40 : vector<128x256xf32>
    %42 = math.exp %41 : vector<128x256xf32>
    %43 = arith.mulf %42, %4 : vector<128x256xf32>
    %cst_19 = arith.constant dense<0.000000e+00> : vector<128xf32>
    %44 = vector.multi_reduction <add>, %43, %cst_19 [1] : vector<128x256xf32> to vector<128xf32>
    %45 = vector.shape_cast %44 : vector<128xf32> to vector<128x1xf32>
    %46 = arith.truncf %43 : vector<128x256xf32> to vector<128x256xbf16>
    %47 = vector.extract_strided_slice %8 {offsets = [0, 16], sizes = [256, 16], strides = [1, 1]} : vector<256x32xbf16> to vector<256x16xbf16>
    %cst_20 = arith.constant dense<0.000000e+00> : vector<128x16xf32>
    %48 = tpu.matmul %46, %47, %cst_20 {dimension_numbers = #tpu.dot_dimension_numbers<[1], [0], [0], [1], [0, 0, 1, 1], [], []>} : vector<128x256xbf16>, vector<256x16xbf16>, vector<128x16xf32> -> vector<128x16xf32>
    %c0_21 = arith.constant 0 : index
    %c0_22 = arith.constant 0 : index
    %49 = vector.load %arg10[%c0_21, %c0_22] : memref<128x2xf32, #tpu.memory_space<vmem>>, vector<128x2xf32>
    %50 = tpu.concatenate %25, %45 in 1 : vector<128x1xf32>, vector<128x1xf32> -> vector<128x2xf32>
    %51 = arith.addf %49, %50 : vector<128x2xf32>
    %c0_23 = arith.constant 0 : index
    %c0_24 = arith.constant 0 : index
    %52 = vector.load %arg10[%c0_23, %c0_24] : memref<128x2xf32, #tpu.memory_space<vmem>>, vector<128x2xf32>
    tpu.vector_store %arg10[%c0_23, %c0_24], %51 {strides = array<i32>} : memref<128x2xf32, #tpu.memory_space<vmem>>, vector<128x2xf32>,
    %c0_25 = arith.constant 0 : index
    %c0_26 = arith.constant 0 : index
    %53 = vector.load %arg11[%c0_25, %c0_26] : memref<128x32xf32, #tpu.memory_space<vmem>>, vector<128x32xf32>
    %54 = tpu.concatenate %28, %48 in 1 : vector<128x16xf32>, vector<128x16xf32> -> vector<128x32xf32>
    %55 = arith.addf %53, %54 : vector<128x32xf32>
    %c0_27 = arith.constant 0 : index
    %c0_28 = arith.constant 0 : index
    %56 = vector.load %arg11[%c0_27, %c0_28] : memref<128x32xf32, #tpu.memory_space<vmem>>, vector<128x32xf32>
    tpu.vector_store %arg11[%c0_27, %c0_28], %55 {strides = array<i32>} : memref<128x32xf32, #tpu.memory_space<vmem>>, vector<128x32xf32>,
    %c0_i32_29 = arith.constant 0 : i32
    %57 = arith.cmpi eq, %arg1, %c0_i32_29 : i32
    %58 = arith.extui %57 : i1 to i32
    %c0_i32_30 = arith.constant 0 : i32
    %59 = arith.cmpi ne, %58, %c0_i32_30 : i32
    scf.if %59 {
      %c0_31 = arith.constant 0 : index
      %c0_32 = arith.constant 0 : index
      %60 = vector.load %arg10[%c0_31, %c0_32] : memref<128x2xf32, #tpu.memory_space<vmem>>, vector<128x2xf32>
      %cst_33 = arith.constant 9.99999968E-21 : f32
      %61 = vector.broadcast %cst_33 : f32 to vector<128x2xf32>
      %62 = arith.addf %60, %61 : vector<128x2xf32>
      %63 = tpu.reciprocal %62 {approx = true} : vector<128x2xf32> -> vector<128x2xf32>
      %64 = vector.extract_strided_slice %63 {offsets = [0, 0], sizes = [128, 1], strides = [1, 1]} : vector<128x2xf32> to vector<128x1xf32>
      %65 = vector.shape_cast %64 : vector<128x1xf32> to vector<128x1xf32>
      %66 = vector.broadcast %65 : vector<128x1xf32> to vector<128x16xf32>
      %67 = vector.extract_strided_slice %63 {offsets = [0, 1], sizes = [128, 1], strides = [1, 1]} : vector<128x2xf32> to vector<128x1xf32>
      %68 = vector.shape_cast %67 : vector<128x1xf32> to vector<128x1xf32>
      %69 = vector.broadcast %68 : vector<128x1xf32> to vector<128x16xf32>
      %70 = tpu.concatenate %66, %69 in 1 : vector<128x16xf32>, vector<128x16xf32> -> vector<128x32xf32>
      %c0_34 = arith.constant 0 : index
      %c0_35 = arith.constant 0 : index
      %71 = vector.load %arg11[%c0_34, %c0_35] : memref<128x32xf32, #tpu.memory_space<vmem>>, vector<128x32xf32>
      %72 = arith.mulf %71, %70 : vector<128x32xf32>
      %c0_36 = arith.constant 0 : index
      %c0_37 = arith.constant 0 : index
      %73 = vector.load %arg7[%c0_36, %c0_37] : memref<1x32xf32, #tpu.memory_space<vmem>>, vector<1x32xf32>
      %74 = vector.broadcast %73 : vector<1x32xf32> to vector<128x32xf32>
      %75 = arith.mulf %72, %74 : vector<128x32xf32>
      %c0_38 = arith.constant 0 : index
      %c0_39 = arith.constant 0 : index
      %76 = vector.load %arg8[%c0_38, %c0_39] : memref<1x32xf32, #tpu.memory_space<vmem>>, vector<1x32xf32>
      %77 = vector.broadcast %76 : vector<1x32xf32> to vector<128x32xf32>
      %78 = arith.addf %75, %77 : vector<128x32xf32>
      %cst_40 = arith.constant 0.000000e+00 : f32
      %79 = vector.broadcast %cst_40 : f32 to vector<128x32xf32>
      %80 = arith.maximumf %78, %79 : vector<128x32xf32>
      %81 = arith.truncf %80 : vector<128x32xf32> to vector<128x32xbf16>
      %c0_41 = arith.constant 0 : index
      %c0_42 = arith.constant 0 : index
      %82 = vector.load %arg9[%c0_41, %c0_42] : memref<128x32xbf16, #tpu.memory_space<vmem>>, vector<128x32xbf16>
      tpu.vector_store %arg9[%c0_41, %c0_42], %81 {strides = array<i32>} : memref<128x32xbf16, #tpu.memory_space<vmem>>, vector<128x32xbf16>,
    } else {
    }
    return
  }
  func.func @transform_0(%arg0: i32, %arg1: i32) -> (i32, i32) {
    %c0_i32 = arith.constant 0 : i32
    return %arg0, %arg1 : i32, i32
  }
  func.func @transform_1(%arg0: i32, %arg1: i32) -> (i32, i32) {
    %c0_i32 = arith.constant 0 : i32
    %c0_i32_0 = arith.constant 0 : i32
    %c0_i32_1 = arith.constant 0 : i32
    return %c0_i32, %c0_i32_0 : i32, i32
  }
  func.func @transform_2(%arg0: i32, %arg1: i32) -> (i32, i32) {
    %c0_i32 = arith.constant 0 : i32
    %c0_i32_0 = arith.constant 0 : i32
    return %c0_i32, %arg1 : i32, i32
  }
  func.func @transform_3(%arg0: i32, %arg1: i32) -> (i32, i32) {
    %c0_i32 = arith.constant 0 : i32
    %c0_i32_0 = arith.constant 0 : i32
    return %arg0, %c0_i32 : i32, i32
  }
  func.func @transform_4(%arg0: i32, %arg1: i32) -> (i32, i32) {
    %c0_i32 = arith.constant 0 : i32
    %c0_i32_0 = arith.constant 0 : i32
    return %arg0, %c0_i32 : i32, i32
  }
  func.func @transform_5(%arg0: i32, %arg1: i32) -> (i32, i32) {
    %c0_i32 = arith.constant 0 : i32
    %c0_i32_0 = arith.constant 0 : i32
    %c0_i32_1 = arith.constant 0 : i32
    return %c0_i32, %c0_i32_0 : i32, i32
  }
  func.func @transform_6(%arg0: i32, %arg1: i32) -> (i32, i32) {
    %c0_i32 = arith.constant 0 : i32
    %c0_i32_0 = arith.constant 0 : i32
    %c0_i32_1 = arith.constant 0 : i32
    return %c0_i32, %c0_i32_0 : i32, i32
  }
  func.func @transform_7(%arg0: i32, %arg1: i32) -> (i32, i32) {
    %c0_i32 = arith.constant 0 : i32
    %c0_i32_0 = arith.constant 0 : i32
    return %arg0, %c0_i32 : i32, i32
  }
}

module attributes {stable_mosaic.version = 11 : i64} {
  func.func @_gat_attn_kernel(%arg0: i32, %arg1: i32, %arg2: memref<128x256xi8, #tpu.memory_space<vmem>>, %arg3: memref<256x8xbf16, #tpu.memory_space<vmem>>, %arg4: memref<1x256xf32, #tpu.memory_space<vmem>>, %arg5: memref<128x1xf32, #tpu.memory_space<vmem>>, %arg6: memref<128x1xf32, #tpu.memory_space<vmem>>, %arg7: memref<1x8xf32, #tpu.memory_space<vmem>>, %arg8: memref<1x8xf32, #tpu.memory_space<vmem>>, %arg9: memref<128x8xf32, #tpu.memory_space<vmem>>, %arg10: memref<128x1xf32, #tpu.memory_space<vmem>>, %arg11: memref<128x8xf32, #tpu.memory_space<vmem>>) attributes {dimension_semantics = [#tpu.dimension_semantics<parallel>, #tpu.dimension_semantics<arbitrary>], iteration_bounds = array<i64: 2, 1>, scalar_prefetch = 0 : i64, scratch_operands = 2 : i64, tpu.core_type = #tpu.core_type<tc>, window_params = [{transform_indices = @transform_0, window_bounds = array<i64: 128, 256>}, {pipeline_mode = #tpu.pipeline_mode<synchronous>, transform_indices = @transform_1, window_bounds = array<i64: 256, 8>}, {transform_indices = @transform_2, window_bounds = array<i64: 1, 256>}, {transform_indices = @transform_3, window_bounds = array<i64: 128, 1>}, {transform_indices = @transform_4, window_bounds = array<i64: 128, 1>}, {pipeline_mode = #tpu.pipeline_mode<synchronous>, transform_indices = @transform_5, window_bounds = array<i64: 1, 8>}, {pipeline_mode = #tpu.pipeline_mode<synchronous>, transform_indices = @transform_6, window_bounds = array<i64: 1, 8>}, {transform_indices = @transform_7, window_bounds = array<i64: 128, 8>}]} {
    %c0_i32 = arith.constant 0 : i32
    %0 = arith.cmpi eq, %arg1, %c0_i32 : i32
    %1 = arith.extui %0 : i1 to i32
    %c0_i32_0 = arith.constant 0 : i32
    %2 = arith.cmpi ne, %1, %c0_i32_0 : i32
    scf.if %2 {
      %cst_22 = arith.constant 0.000000e+00 : f32
      %37 = vector.broadcast %cst_22 : f32 to vector<128x1xf32>
      %c0_23 = arith.constant 0 : index
      %c0_24 = arith.constant 0 : index
      %38 = vector.load %arg10[%c0_23, %c0_24] : memref<128x1xf32, #tpu.memory_space<vmem>>, vector<128x1xf32>
      tpu.vector_store %arg10[%c0_23, %c0_24], %37 {strides = array<i32>} : memref<128x1xf32, #tpu.memory_space<vmem>>, vector<128x1xf32>,
      %cst_25 = arith.constant 0.000000e+00 : f32
      %39 = vector.broadcast %cst_25 : f32 to vector<128x8xf32>
      %c0_26 = arith.constant 0 : index
      %c0_27 = arith.constant 0 : index
      %40 = vector.load %arg11[%c0_26, %c0_27] : memref<128x8xf32, #tpu.memory_space<vmem>>, vector<128x8xf32>
      tpu.vector_store %arg11[%c0_26, %c0_27], %39 {strides = array<i32>} : memref<128x8xf32, #tpu.memory_space<vmem>>, vector<128x8xf32>,
    } else {
    }
    %c0 = arith.constant 0 : index
    %c0_1 = arith.constant 0 : index
    %3 = vector.load %arg2[%c0, %c0_1] : memref<128x256xi8, #tpu.memory_space<vmem>>, vector<128x256xi8>
    %4 = arith.sitofp %3 : vector<128x256xi8> to vector<128x256xf32>
    %c256_i32 = arith.constant 256 : i32
    %5 = arith.muli %arg1, %c256_i32 : i32
    %6 = tpu.assume_multiple %5, 256 : i32
    %7 = arith.index_cast %6 : i32 to index
    %c0_2 = arith.constant 0 : index
    %8 = vector.load %arg3[%7, %c0_2] : memref<256x8xbf16, #tpu.memory_space<vmem>>, vector<256x8xbf16>
    %c0_3 = arith.constant 0 : index
    %c0_4 = arith.constant 0 : index
    %9 = vector.load %arg5[%c0_3, %c0_4] : memref<128x1xf32, #tpu.memory_space<vmem>>, vector<128x1xf32>
    %c0_5 = arith.constant 0 : index
    %c0_6 = arith.constant 0 : index
    %10 = vector.load %arg4[%c0_5, %c0_6] : memref<1x256xf32, #tpu.memory_space<vmem>>, vector<1x256xf32>
    %11 = vector.broadcast %9 : vector<128x1xf32> to vector<128x256xf32>
    %12 = vector.broadcast %10 : vector<1x256xf32> to vector<128x256xf32>
    %13 = arith.addf %11, %12 : vector<128x256xf32>
    %cst = arith.constant 0.000000e+00 : f32
    %14 = vector.broadcast %cst : f32 to vector<128x256xf32>
    %15 = arith.cmpf ogt, %13, %14 : vector<128x256xf32>
    %cst_7 = arith.constant 2.000000e-01 : f32
    %16 = vector.broadcast %cst_7 : f32 to vector<128x256xf32>
    %17 = arith.mulf %16, %13 : vector<128x256xf32>
    %18 = arith.select %15, %13, %17 : vector<128x256xi1>, vector<128x256xf32>
    %c0_8 = arith.constant 0 : index
    %c0_9 = arith.constant 0 : index
    %19 = vector.load %arg6[%c0_8, %c0_9] : memref<128x1xf32, #tpu.memory_space<vmem>>, vector<128x1xf32>
    %20 = vector.broadcast %19 : vector<128x1xf32> to vector<128x256xf32>
    %21 = arith.subf %18, %20 : vector<128x256xf32>
    %22 = math.exp %21 : vector<128x256xf32>
    %23 = arith.mulf %22, %4 : vector<128x256xf32>
    %cst_10 = arith.constant dense<0.000000e+00> : vector<128xf32>
    %24 = vector.multi_reduction <add>, %23, %cst_10 [1] : vector<128x256xf32> to vector<128xf32>
    %25 = vector.shape_cast %24 : vector<128xf32> to vector<128x1xf32>
    %26 = arith.truncf %23 : vector<128x256xf32> to vector<128x256xbf16>
    %cst_11 = arith.constant dense<0.000000e+00> : vector<128x8xf32>
    %27 = tpu.matmul %26, %8, %cst_11 {dimension_numbers = #tpu.dot_dimension_numbers<[1], [0], [0], [1], [0, 0, 1, 1], [], []>} : vector<128x256xbf16>, vector<256x8xbf16>, vector<128x8xf32> -> vector<128x8xf32>
    %c0_12 = arith.constant 0 : index
    %c0_13 = arith.constant 0 : index
    %28 = vector.load %arg10[%c0_12, %c0_13] : memref<128x1xf32, #tpu.memory_space<vmem>>, vector<128x1xf32>
    %29 = arith.addf %28, %25 : vector<128x1xf32>
    %c0_14 = arith.constant 0 : index
    %c0_15 = arith.constant 0 : index
    %30 = vector.load %arg10[%c0_14, %c0_15] : memref<128x1xf32, #tpu.memory_space<vmem>>, vector<128x1xf32>
    tpu.vector_store %arg10[%c0_14, %c0_15], %29 {strides = array<i32>} : memref<128x1xf32, #tpu.memory_space<vmem>>, vector<128x1xf32>,
    %c0_16 = arith.constant 0 : index
    %c0_17 = arith.constant 0 : index
    %31 = vector.load %arg11[%c0_16, %c0_17] : memref<128x8xf32, #tpu.memory_space<vmem>>, vector<128x8xf32>
    %32 = arith.addf %31, %27 : vector<128x8xf32>
    %c0_18 = arith.constant 0 : index
    %c0_19 = arith.constant 0 : index
    %33 = vector.load %arg11[%c0_18, %c0_19] : memref<128x8xf32, #tpu.memory_space<vmem>>, vector<128x8xf32>
    tpu.vector_store %arg11[%c0_18, %c0_19], %32 {strides = array<i32>} : memref<128x8xf32, #tpu.memory_space<vmem>>, vector<128x8xf32>,
    %c0_i32_20 = arith.constant 0 : i32
    %34 = arith.cmpi eq, %arg1, %c0_i32_20 : i32
    %35 = arith.extui %34 : i1 to i32
    %c0_i32_21 = arith.constant 0 : i32
    %36 = arith.cmpi ne, %35, %c0_i32_21 : i32
    scf.if %36 {
      %c0_22 = arith.constant 0 : index
      %c0_23 = arith.constant 0 : index
      %37 = vector.load %arg10[%c0_22, %c0_23] : memref<128x1xf32, #tpu.memory_space<vmem>>, vector<128x1xf32>
      %cst_24 = arith.constant 9.99999968E-21 : f32
      %38 = vector.broadcast %cst_24 : f32 to vector<128x1xf32>
      %39 = arith.addf %37, %38 : vector<128x1xf32>
      %40 = tpu.reciprocal %39 {approx = true} : vector<128x1xf32> -> vector<128x1xf32>
      %41 = vector.shape_cast %40 : vector<128x1xf32> to vector<128x1xf32>
      %42 = vector.broadcast %41 : vector<128x1xf32> to vector<128x8xf32>
      %c0_25 = arith.constant 0 : index
      %c0_26 = arith.constant 0 : index
      %43 = vector.load %arg11[%c0_25, %c0_26] : memref<128x8xf32, #tpu.memory_space<vmem>>, vector<128x8xf32>
      %44 = arith.mulf %43, %42 : vector<128x8xf32>
      %c0_27 = arith.constant 0 : index
      %c0_28 = arith.constant 0 : index
      %45 = vector.load %arg7[%c0_27, %c0_28] : memref<1x8xf32, #tpu.memory_space<vmem>>, vector<1x8xf32>
      %46 = vector.broadcast %45 : vector<1x8xf32> to vector<128x8xf32>
      %47 = arith.mulf %44, %46 : vector<128x8xf32>
      %c0_29 = arith.constant 0 : index
      %c0_30 = arith.constant 0 : index
      %48 = vector.load %arg8[%c0_29, %c0_30] : memref<1x8xf32, #tpu.memory_space<vmem>>, vector<1x8xf32>
      %49 = vector.broadcast %48 : vector<1x8xf32> to vector<128x8xf32>
      %50 = arith.addf %47, %49 : vector<128x8xf32>
      %cst_31 = arith.constant dense<0xFF800000> : vector<128xf32>
      %51 = vector.multi_reduction <maximumf>, %50, %cst_31 [1] : vector<128x8xf32> to vector<128xf32>
      %52 = vector.shape_cast %51 : vector<128xf32> to vector<128x1xf32>
      %53 = vector.broadcast %52 : vector<128x1xf32> to vector<128x8xf32>
      %54 = arith.subf %50, %53 : vector<128x8xf32>
      %55 = math.exp %54 : vector<128x8xf32>
      %cst_32 = arith.constant dense<0.000000e+00> : vector<128xf32>
      %56 = vector.multi_reduction <add>, %55, %cst_32 [1] : vector<128x8xf32> to vector<128xf32>
      %57 = vector.shape_cast %56 : vector<128xf32> to vector<128x1xf32>
      %58 = math.log %57 : vector<128x1xf32>
      %59 = vector.broadcast %58 : vector<128x1xf32> to vector<128x8xf32>
      %60 = arith.subf %54, %59 : vector<128x8xf32>
      %c0_33 = arith.constant 0 : index
      %c0_34 = arith.constant 0 : index
      %61 = vector.load %arg9[%c0_33, %c0_34] : memref<128x8xf32, #tpu.memory_space<vmem>>, vector<128x8xf32>
      tpu.vector_store %arg9[%c0_33, %c0_34], %60 {strides = array<i32>} : memref<128x8xf32, #tpu.memory_space<vmem>>, vector<128x8xf32>,
    } else {
    }
    return
  }
  func.func @transform_0(%arg0: i32, %arg1: i32) -> (i32, i32) {
    %c0_i32 = arith.constant 0 : i32
    return %arg0, %arg1 : i32, i32
  }
  func.func @transform_1(%arg0: i32, %arg1: i32) -> (i32, i32) {
    %c0_i32 = arith.constant 0 : i32
    %c0_i32_0 = arith.constant 0 : i32
    %c0_i32_1 = arith.constant 0 : i32
    return %c0_i32, %c0_i32_0 : i32, i32
  }
  func.func @transform_2(%arg0: i32, %arg1: i32) -> (i32, i32) {
    %c0_i32 = arith.constant 0 : i32
    %c0_i32_0 = arith.constant 0 : i32
    return %c0_i32, %arg1 : i32, i32
  }
  func.func @transform_3(%arg0: i32, %arg1: i32) -> (i32, i32) {
    %c0_i32 = arith.constant 0 : i32
    %c0_i32_0 = arith.constant 0 : i32
    return %arg0, %c0_i32 : i32, i32
  }
  func.func @transform_4(%arg0: i32, %arg1: i32) -> (i32, i32) {
    %c0_i32 = arith.constant 0 : i32
    %c0_i32_0 = arith.constant 0 : i32
    return %arg0, %c0_i32 : i32, i32
  }
  func.func @transform_5(%arg0: i32, %arg1: i32) -> (i32, i32) {
    %c0_i32 = arith.constant 0 : i32
    %c0_i32_0 = arith.constant 0 : i32
    %c0_i32_1 = arith.constant 0 : i32
    return %c0_i32, %c0_i32_0 : i32, i32
  }
  func.func @transform_6(%arg0: i32, %arg1: i32) -> (i32, i32) {
    %c0_i32 = arith.constant 0 : i32
    %c0_i32_0 = arith.constant 0 : i32
    %c0_i32_1 = arith.constant 0 : i32
    return %c0_i32, %c0_i32_0 : i32, i32
  }
  func.func @transform_7(%arg0: i32, %arg1: i32) -> (i32, i32) {
    %c0_i32 = arith.constant 0 : i32
    %c0_i32_0 = arith.constant 0 : i32
    return %arg0, %c0_i32 : i32, i32
  }
}

</mosaic_0001>

<bundles_post_ra>
// kernel: gat_forward.6
= control target key start
LH: loop header
LB: loop body
LE: loop exit
PB: predicated region body
PF: predicated region fallthrough
CT: control target
= control target key end

     0   :  { %s976_s12 = smov 0   ;;  %s978_s13 = smov 0   ;;  %s1150_s0 = inlined_call_operand.vmem [shape: bf16[256,32], index: 0, kind: input, shape index: {}]   ;;  %s1151_s1 = inlined_call_operand.vmem [shape: bf16[32,36], index: 1, kind: input, shape index: {}]   ;;  %s1152_s2 = inlined_call_operand.vmem [shape: bf16[256,32], index: 2, kind: output, shape index: {0}]   ;;  %s1153_s3 = inlined_call_operand.vmem [shape: f32[256,4], index: 3, kind: output, shape index: {1}]  }
   0x1   :  { %s980_s14 = smov 0  }
   0x2 LB: > { %s26_s15 = sadd.s32 1, %s948_s13  ;;  %p801_p0 = scmp.ge.s32.totalorder %s952_s14, 1  ;;  %s952_s14 = sphi %s980_s14, %s14_s14   ;;  %s948_s13 = sphi %s978_s13, %s1155_s13   ;;  %s944_s12 = sphi %s976_s12, %s1154_s12  }
   0x3   : > { %p28_p1 = scmp.ge.s32.totalorder %s26_s15, 2  ;;  %p169_p2 = scmp.lt.s32.totalorder %s952_s14, 3 }
   0x5   : > { %s1157_s15 = smov (%p28_p1, %s26_s15), 0  ;;  %p170_p3 = pnand %p801_p0, %p169_p2 }
   0x6   : > { %v920_v0 = vld [vmem:[%s1151_s1] sm:$0xff] (!%p170_p3)   ;;  %s802_s18 = sshll.u32 (!%p170_p3), %s944_s12, 4  ;;  %v921_v1 = vld [vmem:[%s1151_s1 + $0x8] sm:$0xff] (!%p170_p3)   ;;  %vm238_vm0 = vcmask (!%p170_p3), 293888   ;;  %v954_v2 = vmov (!%p170_p3), 0.0   ;;  %vm343_vm1 = vcmask (!%p170_p3), 261120  }
   0x7   : > { %173 = sbr.rel (%p170_p3) target bundleno = 386 (0x182), region = 28  ;;  %p207_p4 = scmp.lt.s32.totalorder (!%p170_p3), %s802_s18, 31  ;;  %870 = vmatprep.subr.bf16.mxu0 (!%p170_p3), %v920_v0  ;;  %890 = vmatprep.subr.bf16.mxu1 (!%p170_p3), %v920_v0  ;;  %241 = vst.msk [vmem:[#allocation2 + $0x10] sm:$0xff] (!%p170_p3), %vm238_vm0, %v954_v2  ;;  %239 = vst.msk [vmem:[#allocation2] sm:$0xff] (!%p170_p3), %vm238_vm0, %v954_v2  ;;  %vm581_vm2 = vcmask (!%p170_p3), 257024   ;;  %vm662_vm3 = vcmask (!%p170_p3), 31744  }
   0x8   : > { %871 = vmatpush3.bf16.msra.mxu0 (!%p170_p3), %v920_v0  ;;  %892 = vmatpush3.bf16.msra.mxu1 (!%p170_p3), %v920_v0  ;;  %240 = vst.msk [vmem:[#allocation2 + $0x8] sm:$0xff] (!%p170_p3), %vm238_vm0, %v954_v2  ;;  %242 = vst.msk [vmem:[#allocation2 + $0x18] sm:$0xff] (!%p170_p3), %vm238_vm0, %v954_v2  ;;  %s955_s28 = smov (!%p170_p3), 96  }
   0x9   : > { %243 = vst.msk [vmem:[#allocation2 + $0x20] sm:$0xff] (!%p170_p3), %vm238_vm0, %v954_v2  ;;  %244 = vst.msk [vmem:[#allocation2 + $0x28] sm:$0xff] (!%p170_p3), %vm238_vm0, %v954_v2  ;;  %872 = vmatprep.subr.bf16.mxu0 (!%p170_p3), %v921_v1  ;;  %891 = vmatprep.subr.bf16.mxu1 (!%p170_p3), %v921_v1 }
   0xa   : > { %245 = vst.msk [vmem:[#allocation2 + $0x30] sm:$0xff] (!%p170_p3), %vm238_vm0, %v954_v2  ;;  %246 = vst.msk [vmem:[#allocation2 + $0x38] sm:$0xff] (!%p170_p3), %vm238_vm0, %v954_v2 }
   0xb   : > { %247 = vst.msk [vmem:[#allocation2 + $0x40] sm:$0xff] (!%p170_p3), %vm238_vm0, %v954_v2  ;;  %248 = vst.msk [vmem:[#allocation2 + $0x48] sm:$0xff] (!%p170_p3), %vm238_vm0, %v954_v2 }
   0xc   : > { %249 = vst.msk [vmem:[#allocation2 + $0x50] sm:$0xff] (!%p170_p3), %vm238_vm0, %v954_v2  ;;  %250 = vst.msk [vmem:[#allocation2 + $0x58] sm:$0xff] (!%p170_p3), %vm238_vm0, %v954_v2  ;;  %873 = vmatpush3.bf16.msra.mxu0 (!%p170_p3), %v921_v1  ;;  %893 = vmatpush3.bf16.msra.mxu1 (!%p170_p3), %v921_v1 }
   0xd   : > { %251 = vst.msk [vmem:[#allocation2 + $0x60] sm:$0xff] (!%p170_p3), %vm238_vm0, %v954_v2  ;;  %252 = vst.msk [vmem:[#allocation2 + $0x68] sm:$0xff] (!%p170_p3), %vm238_vm0, %v954_v2 }
   0xe   : > { %s1159_s18 = smov (!%p207_p4, %s802_s18), 31  ;;  %253 = vst.msk [vmem:[#allocation2 + $0x70] sm:$0xff] %vm238_vm0, %v954_v2  ;;  %254 = vst.msk [vmem:[#allocation2 + $0x78] sm:$0xff] %vm238_vm0, %v954_v2  ;;  %v257_v11 = vld [vmem:[#allocation2 + $0x10] sm:$0xff]  ;;  %v255_v13 = vld [vmem:[#allocation2] sm:$0xff] }
   0xf   : > { %s803_s21 = sshll.u32 %s1159_s18, 2  ;;  %v258_v16 = vld [vmem:[#allocation2 + $0x18] sm:$0xff]  ;;  %v256_v21 = vld [vmem:[#allocation2 + $0x8] sm:$0xff]  ;;  %s807_s29 = sshll.u32 %s1159_s18, 3 }
  0x10   : > { %s213_s24 = scalar_lea.vmem %s1150_s0, %s803_s21  ;;  %v259_v36 = vld [vmem:[#allocation2 + $0x20] sm:$0xff]  ;;  %v260_v43 = vld [vmem:[#allocation2 + $0x28] sm:$0xff]  ;;  %s1045_s27 = scalar_lea.vmem %s1152_s2, %s803_s21 }
  0x11   : > { %v922_v3 = vld [vmem:[%s213_s24] sm:$0xff]   ;;  %v924_v5 = vld [vmem:[%s213_s24 + $0x8] sm:$0xff]   ;;  %v926_v7 = vld [vmem:[%s213_s24 + $0x10] sm:$0xff]   ;;  %s1107_s5 = scalar_lea.vmem %s1153_s3, %s807_s29 }
  0x12   : > { %v923_v4 = vld [vmem:[%s213_s24 + $0x20] sm:$0xff]   ;;  %874 = vmatprep.mubr.msk.bf16.mxu0 %vm343_vm1, %v922_v3  ;;  %v925_v6 = vld [vmem:[%s213_s24 + $0x28] sm:$0xff]   ;;  %v928_v8 = vld [vmem:[%s213_s24 + $0x30] sm:$0xff]  }
  0x13   : > { %882 = vmatprep.mubr.msk.bf16.mxu1 %vm343_vm1, %v923_v4  ;;  %875 = vmatmul.mubr.msk.bf16.vlgmr.msra.gmra.mrb[0].mxu0 %vm343_vm1, %v924_v5  ;;  %v927_v9 = vld [vmem:[%s213_s24 + $0x18] sm:$0xff]   ;;  %v265_v12 = vld [vmem:[#allocation2 + $0x50] sm:$0xff]  ;;  %v263_v15 = vld [vmem:[#allocation2 + $0x40] sm:$0xff] }
  0x14   : > { %883 = vmatmul.mubr.msk.bf16.vlgmr.msra.gmra.mrb[0].mxu1 %vm343_vm1, %v925_v6  ;;  %878 = vmatprep.mubr.msk.bf16.mxu0 %vm343_vm1, %v926_v7  ;;  %v929_v10 = vld [vmem:[%s213_s24 + $0x38] sm:$0xff]   ;;  %v264_v26 = vld [vmem:[#allocation2 + $0x48] sm:$0xff]  ;;  %v261_v35 = vld [vmem:[#allocation2 + $0x30] sm:$0xff] }
  0x15   : > { %886 = vmatprep.mubr.msk.bf16.mxu1 %vm343_vm1, %v928_v8  ;;  %v266_v20 = vld [vmem:[#allocation2 + $0x58] sm:$0xff]  ;;  %v269_v37 = vld [vmem:[#allocation2 + $0x70] sm:$0xff]  ;;  %v267_v40 = vld [vmem:[#allocation2 + $0x60] sm:$0xff] }
  0x16   : > { %v262_v39 = vld [vmem:[#allocation2 + $0x38] sm:$0xff]  ;;  %v268_v51 = vld [vmem:[#allocation2 + $0x68] sm:$0xff] }
  0x17   : > { %v270_v45 = vld [vmem:[#allocation2 + $0x78] sm:$0xff] }
  0x1b   : > { %879 = vmatmul.mubr.msk.bf16.gmra.mrb[4].mxu0 %vm343_vm1, %v927_v9 }
  0x1c   : > { %887 = vmatmul.mubr.msk.bf16.gmra.mrb[4].mxu1 %vm343_vm1, %v929_v10 }
  0xe6   : > { %v876_v14 = vpop.f32.mrb[0].mxu0 }
  0xe7   : > { %v467_v17 = vadd.f32 %v876_v14, %v257_v11  ;;  %v884_v18 = vpop.f32.mrb[0].mxu1  ;;  %v402_v19 = vpop.f32.mrb[1].mxu0 }
  0xe8   : > { %v475_v22 = vadd.f32 %v884_v18, %v265_v12  ;;  %v465_v23 = vadd.f32 %v402_v19, %v255_v13  ;;  %v434_v24 = vpop.f32.mrb[1].mxu1  ;;  %v877_v25 = vpop.f32.mrb[2].mxu0 }
  0xe9   : > { %484 = vst.msk [vmem:[#allocation2 + $0x10] sm:$0xff] %vm238_vm0, %v467_v17  ;;  %v473_v27 = vadd.f32 %v434_v24, %v263_v15  ;;  %v468_v28 = vadd.f32 %v877_v25, %v258_v16  ;;  %v885_v29 = vpop.f32.mrb[2].mxu1  ;;  %v405_v30 = vpop.f32.mrb[3].mxu0 }
  0xea   : > { %492 = vst.msk [vmem:[#allocation2 + $0x50] sm:$0xff] %vm238_vm0, %v475_v22  ;;  %482 = vst.msk [vmem:[#allocation2] sm:$0xff] %vm238_vm0, %v465_v23  ;;  %v476_v31 = vadd.f32 %v885_v29, %v266_v20  ;;  %v466_v32 = vadd.f32 %v405_v30, %v256_v21  ;;  %v437_v33 = vpop.f32.mrb[3].mxu1 }
  0xeb   : > { %490 = vst.msk [vmem:[#allocation2 + $0x40] sm:$0xff] %vm238_vm0, %v473_v27  ;;  %485 = vst.msk [vmem:[#allocation2 + $0x18] sm:$0xff] %vm238_vm0, %v468_v28  ;;  %v474_v34 = vadd.f32 %v437_v33, %v264_v26 }
  0xec   : > { %493 = vst.msk [vmem:[#allocation2 + $0x58] sm:$0xff] %vm238_vm0, %v476_v31  ;;  %483 = vst.msk [vmem:[#allocation2 + $0x8] sm:$0xff] %vm238_vm0, %v466_v32 }
  0xed   : > { %491 = vst.msk [vmem:[#allocation2 + $0x48] sm:$0xff] %vm238_vm0, %v474_v34 }
  0xee   : > { %v880_v38 = vpop.f32.mrb[4].mxu0 }
  0xef   : > { %v471_v41 = vadd.f32 %v880_v38, %v261_v35  ;;  %v418_v42 = vpop.f32.mrb[5].mxu0  ;;  %v888_v44 = vpop.f32.mrb[4].mxu1 }
  0xf0   : > { %v503_v46 = vld [vmem:[#allocation2 + $0x10] sm:$0xff]  ;;  %v469_v47 = vadd.f32 %v418_v42, %v259_v36  ;;  %v881_v48 = vpop.f32.mrb[6].mxu0  ;;  %v479_v49 = vadd.f32 %v888_v44, %v269_v37  ;;  %v450_v50 = vpop.f32.mrb[5].mxu1 }
  0xf1   : > { %v511_v52 = vld [vmem:[#allocation2 + $0x50] sm:$0xff]  ;;  %618 = vrot.lane.b32.xlu1 %v503_v46, %s955_s28  ;;  %v846_v53 = vpack.c.bf16 %v503_v46, %v503_v46  ;;  %488 = vst.msk [vmem:[#allocation2 + $0x30] sm:$0xff] %vm238_vm0, %v471_v41  ;;  %v472_v54 = vadd.f32 %v881_v48, %v262_v39  ;;  %v421_v55 = vpop.f32.mrb[7].mxu0  ;;  %v501_v56 = vld [vmem:[#allocation2] sm:$0xff]  ;;  %v477_v57 = vadd.f32 %v450_v50, %v267_v40  ;;  %v889_v58 = vpop.f32.mrb[6].mxu1 }
  0xf2   : > { %634 = vrot.lane.b32.xlu0 %v511_v52, %s955_s28  ;;  %v854_v59 = vpack.c.bf16 %v511_v52, %v511_v52  ;;  %486 = vst.msk [vmem:[#allocation2 + $0x20] sm:$0xff] %vm238_vm0, %v469_v47  ;;  %v470_v60 = vadd.f32 %v421_v55, %v260_v43  ;;  %v844_v61 = vpack.c.bf16 %v501_v56, %v501_v56  ;;  %v504_v62 = vld [vmem:[#allocation2 + $0x18] sm:$0xff]  ;;  %496 = vst.msk [vmem:[#allocation2 + $0x70] sm:$0xff] %vm238_vm0, %v479_v49  ;;  %v509_v63 = vld [vmem:[#allocation2 + $0x40] sm:$0xff]  ;;  %v453_v1 = vpop.f32.mrb[7].mxu1 }
  0xf3   : > { %v480_v0 = vadd.f32 %v889_v58, %v270_v45  ;;  %584 = vst.msk [vmem:[%s1045_s27 + $0x8] sm:$0xf] %vm581_vm2, %v846_v53  ;;  %v847_v2 = vpack.c.bf16 %v504_v62, %v504_v62  ;;  %v852_v3 = vpack.c.bf16 %v509_v63, %v509_v63  ;;  %v512_v4 = vld [vmem:[#allocation2 + $0x58] sm:$0xff]  ;;  %v478_v5 = vadd.f32 %v453_v1, %v268_v51  ;;  %v502_v6 = vld [vmem:[#allocation2 + $0x8] sm:$0xff] }
  0xf4   : > { %489 = vst.msk [vmem:[#allocation2 + $0x38] sm:$0xff] %vm238_vm0, %v472_v54  ;;  %494 = vst.msk [vmem:[#allocation2 + $0x60] sm:$0xff] %vm238_vm0, %v477_v57  ;;  %v855_v7 = vpack.c.bf16 %v512_v4, %v512_v4  ;;  %v510_v8 = vld [vmem:[#allocation2 + $0x48] sm:$0xff]  ;;  %v845_v9 = vpack.c.bf16 %v502_v6, %v502_v6 }
  0xf5   : > { %592 = vst.msk [vmem:[%s1045_s27 + $0x28] sm:$0xf] %vm581_vm2, %v854_v59  ;;  %582 = vst.msk [vmem:[%s1045_s27] sm:$0xf] %vm581_vm2, %v844_v61  ;;  %620 = vrot.lane.b32.xlu1 %v504_v62, %s955_s28  ;;  %v853_v10 = vpack.c.bf16 %v510_v8, %v510_v8 }
  0xf6   : > { %487 = vst.msk [vmem:[#allocation2 + $0x28] sm:$0xff] %vm238_vm0, %v470_v60  ;;  %497 = vst.msk [vmem:[#allocation2 + $0x78] sm:$0xff] %vm238_vm0, %v480_v0  ;;  %614 = vrot.lane.b32.xlu0 %v501_v56, %s955_s28 }
  0xf7   : > { %585 = vst.msk [vmem:[%s1045_s27 + $0xc] sm:$0xf] %vm581_vm2, %v847_v2  ;;  %590 = vst.msk [vmem:[%s1045_s27 + $0x20] sm:$0xf] %vm581_vm2, %v852_v3 }
  0xf8   : > { %495 = vst.msk [vmem:[#allocation2 + $0x68] sm:$0xff] %vm238_vm0, %v478_v5  ;;  %v507_v11 = vld [vmem:[#allocation2 + $0x30] sm:$0xff] }
  0xf9   : > { %593 = vst.msk [vmem:[%s1045_s27 + $0x2c] sm:$0xf] %vm581_vm2, %v855_v7  ;;  %583 = vst.msk [vmem:[%s1045_s27 + $0x4] sm:$0xf] %vm581_vm2, %v845_v9  ;;  %636 = vrot.lane.b32.xlu1 %v512_v4, %s955_s28  ;;  %v850_v12 = vpack.c.bf16 %v507_v11, %v507_v11  ;;  %v505_v13 = vld [vmem:[#allocation2 + $0x20] sm:$0xff]  ;;  %v515_v14 = vld [vmem:[#allocation2 + $0x70] sm:$0xff] }
  0xfa   : > { %591 = vst.msk [vmem:[%s1045_s27 + $0x24] sm:$0xf] %vm581_vm2, %v853_v10  ;;  %630 = vrot.lane.b32.xlu0 %v509_v63, %s955_s28  ;;  %v848_v16 = vpack.c.bf16 %v505_v13, %v505_v13  ;;  %v858_v18 = vpack.c.bf16 %v515_v14, %v515_v14 }
  0xfb   : > { %v508_v15 = vld [vmem:[#allocation2 + $0x38] sm:$0xff]  ;;  %v513_v17 = vld [vmem:[#allocation2 + $0x60] sm:$0xff]  ;;  %588 = vst.msk [vmem:[%s1045_s27 + $0x18] sm:$0xf] %vm581_vm2, %v850_v12 }
  0xfc   : > { %v851_v19 = vpack.c.bf16 %v508_v15, %v508_v15  ;;  %v856_v21 = vpack.c.bf16 %v513_v17, %v513_v17  ;;  %586 = vst.msk [vmem:[%s1045_s27 + $0x10] sm:$0xf] %vm581_vm2, %v848_v16  ;;  %596 = vst.msk [vmem:[%s1045_s27 + $0x38] sm:$0xf] %vm581_vm2, %v858_v18 }
  0xfd   : > { %v506_v20 = vld [vmem:[#allocation2 + $0x28] sm:$0xff]  ;;  %v516_v22 = vld [vmem:[#allocation2 + $0x78] sm:$0xff]  ;;  %632 = vrot.lane.b32.xlu1 %v510_v8, %s955_s28 }
  0xfe   : > { %v849_v23 = vpack.c.bf16 %v506_v20, %v506_v20  ;;  %v859_v25 = vpack.c.bf16 %v516_v22, %v516_v22  ;;  %589 = vst.msk [vmem:[%s1045_s27 + $0x1c] sm:$0xf] %vm581_vm2, %v851_v19  ;;  %594 = vst.msk [vmem:[%s1045_s27 + $0x30] sm:$0xf] %vm581_vm2, %v856_v21  ;;  %616 = vrot.lane.b32.xlu0 %v502_v6, %s955_s28 }
  0xff   : > { %v514_v24 = vld [vmem:[#allocation2 + $0x68] sm:$0xff] }
 0x100   : > { %v857_v26 = vpack.c.bf16 %v514_v24, %v514_v24  ;;  %587 = vst.msk [vmem:[%s1045_s27 + $0x14] sm:$0xf] %vm581_vm2, %v849_v23  ;;  %597 = vst.msk [vmem:[%s1045_s27 + $0x3c] sm:$0xf] %vm581_vm2, %v859_v25 }
 0x101   : > { %628 = vrot.lane.b32.xlu1 %v508_v15, %s955_s28 }
 0x102   : > { %595 = vst.msk [vmem:[%s1045_s27 + $0x34] sm:$0xf] %vm581_vm2, %v857_v26  ;;  %626 = vrot.lane.b32.xlu0 %v507_v11, %s955_s28 }
 0x105   : > { %624 = vrot.lane.b32.xlu1 %v506_v20, %s955_s28 }
 0x106   : > { %622 = vrot.lane.b32.xlu0 %v505_v13, %s955_s28 }
 0x109   : > { %640 = vrot.lane.b32.xlu1 %v514_v24, %s955_s28 }
 0x10a   : > { %638 = vrot.lane.b32.xlu0 %v513_v17, %s955_s28 }
 0x10d   : > { %644 = vrot.lane.b32.xlu1 %v516_v22, %s955_s28 }
 0x10e   : > { %642 = vrot.lane.b32.xlu0 %v515_v14, %s955_s28 }
 0x163   : > { %v619_v27 = vpop.permute.xlu1 %618 }
 0x164   : > { %v635_v28 = vpop.permute.xlu0 %634  ;;  %665 = vst.msk [vmem:[%s1107_s5 + $0x10] sm:$0xff] %vm662_vm3, %v619_v27 }
 0x165   : > { %673 = vst.msk [vmem:[%s1107_s5 + $0x50] sm:$0xff] %vm662_vm3, %v635_v28 }
 0x167   : > { %v621_v29 = vpop.permute.xlu1 %620 }
 0x168   : > { %v615_v30 = vpop.permute.xlu0 %614  ;;  %666 = vst.msk [vmem:[%s1107_s5 + $0x18] sm:$0xff] %vm662_vm3, %v621_v29 }
 0x169   : > { %663 = vst.msk [vmem:[%s1107_s5] sm:$0xff] %vm662_vm3, %v615_v30 }
 0x16b   : > { %v637_v31 = vpop.permute.xlu1 %636 }
 0x16c   : > { %v631_v32 = vpop.permute.xlu0 %630  ;;  %674 = vst.msk [vmem:[%s1107_s5 + $0x58] sm:$0xff] %vm662_vm3, %v637_v31 }
 0x16d   : > { %671 = vst.msk [vmem:[%s1107_s5 + $0x40] sm:$0xff] %vm662_vm3, %v631_v32 }
 0x16f   : > { %v633_v33 = vpop.permute.xlu1 %632 }
 0x170   : > { %672 = vst.msk [vmem:[%s1107_s5 + $0x48] sm:$0xff] %vm662_vm3, %v633_v33  ;;  %v617_v34 = vpop.permute.xlu0 %616 }
 0x171   : > { %664 = vst.msk [vmem:[%s1107_s5 + $0x8] sm:$0xff] %vm662_vm3, %v617_v34 }
 0x173   : > { %v629_v35 = vpop.permute.xlu1 %628 }
 0x174   : > { %v627_v36 = vpop.permute.xlu0 %626  ;;  %670 = vst.msk [vmem:[%s1107_s5 + $0x38] sm:$0xff] %vm662_vm3, %v629_v35 }
 0x175   : > { %669 = vst.msk [vmem:[%s1107_s5 + $0x30] sm:$0xff] %vm662_vm3, %v627_v36 }
 0x177   : > { %v625_v37 = vpop.permute.xlu1 %624 }
 0x178   : > { %v623_v38 = vpop.permute.xlu0 %622  ;;  %668 = vst.msk [vmem:[%s1107_s5 + $0x28] sm:$0xff] %vm662_vm3, %v625_v37 }
 0x179   : > { %667 = vst.msk [vmem:[%s1107_s5 + $0x20] sm:$0xff] %vm662_vm3, %v623_v38 }
 0x17b   : > { %v641_v39 = vpop.permute.xlu1 %640 }
 0x17c   : > { %v639_v40 = vpop.permute.xlu0 %638  ;;  %676 = vst.msk [vmem:[%s1107_s5 + $0x68] sm:$0xff] %vm662_vm3, %v641_v39 }
 0x17d   : > { %675 = vst.msk [vmem:[%s1107_s5 + $0x60] sm:$0xff] %vm662_vm3, %v639_v40 }
 0x17f   : > { %v645_v41 = vpop.permute.xlu1 %644 }
 0x180   : > { %v643_v42 = vpop.permute.xlu0 %642  ;;  %678 = vst.msk [vmem:[%s1107_s5 + $0x78] sm:$0xff] %vm662_vm3, %v645_v41 }
 0x181   : > { %677 = vst.msk [vmem:[%s1107_s5 + $0x70] sm:$0xff] %vm662_vm3, %v643_v42 }
 0x182 PF: > { %s14_s14 = sadd.s32 1, %s952_s14   ;;  %s1154_s12 = smov %s948_s13 }
 0x183   : > { %p11_p5 = scmp.ge.s32.totalorder %s14_s14, 4   ;;  %s1155_s13 = smov %s1157_s15 }
 0x185   :  { %13 = sbr.rel (!%p11_p5) target bundleno = 2 (0x2), region = 81 }

// kernel: gat_forward.10
= control target key start
LH: loop header
LB: loop body
LE: loop exit
PB: predicated region body
PF: predicated region fallthrough
CT: control target
= control target key end

     0   :  { %s976_s12 = smov 0   ;;  %s978_s13 = smov 0   ;;  %s1150_s0 = inlined_call_operand.vmem [shape: bf16[256,32], index: 0, kind: input, shape index: {}]   ;;  %s1151_s1 = inlined_call_operand.vmem [shape: bf16[32,10], index: 1, kind: input, shape index: {}]   ;;  %s1152_s2 = inlined_call_operand.vmem [shape: bf16[256,8], index: 2, kind: output, shape index: {0}]   ;;  %s1153_s3 = inlined_call_operand.vmem [shape: f32[256,2], index: 3, kind: output, shape index: {1}]  }
   0x1   :  { %s980_s14 = smov 0  }
   0x2 LB: > { %s26_s15 = sadd.s32 1, %s948_s13  ;;  %p801_p0 = scmp.ge.s32.totalorder %s952_s14, 1  ;;  %s952_s14 = sphi %s980_s14, %s14_s14   ;;  %s948_s13 = sphi %s978_s13, %s1155_s13   ;;  %s944_s12 = sphi %s976_s12, %s1154_s12  }
   0x3   : > { %p28_p1 = scmp.ge.s32.totalorder %s26_s15, 2  ;;  %p169_p2 = scmp.lt.s32.totalorder %s952_s14, 3 }
   0x5   : > { %s1157_s15 = smov (%p28_p1, %s26_s15), 0  ;;  %p170_p3 = pnand %p801_p0, %p169_p2 }
   0x6   : > { %v920_v0 = vld [vmem:[%s1151_s1] sm:$0xff] (!%p170_p3)   ;;  %s802_s18 = sshll.u32 (!%p170_p3), %s944_s12, 4  ;;  %v921_v1 = vld [vmem:[%s1151_s1 + $0x8] sm:$0xff] (!%p170_p3)   ;;  %vm238_vm0 = vcmask (!%p170_p3), 80896   ;;  %v954_v2 = vmov (!%p170_p3), 0.0   ;;  %vm343_vm1 = vcmask (!%p170_p3), 261120  }
   0x7   : > { %173 = sbr.rel (%p170_p3) target bundleno = 386 (0x182), region = 28  ;;  %p207_p4 = scmp.lt.s32.totalorder (!%p170_p3), %s802_s18, 31  ;;  %870 = vmatprep.subr.bf16.mxu0 (!%p170_p3), %v920_v0  ;;  %890 = vmatprep.subr.bf16.mxu1 (!%p170_p3), %v920_v0  ;;  %241 = vst.msk [vmem:[#allocation2 + $0x10] sm:$0xff] (!%p170_p3), %vm238_vm0, %v954_v2  ;;  %239 = vst.msk [vmem:[#allocation2] sm:$0xff] (!%p170_p3), %vm238_vm0, %v954_v2  ;;  %vm581_vm2 = vcmask (!%p170_p3), 60416   ;;  %vm662_vm3 = vcmask (!%p170_p3), 15360  }
   0x8   : > { %871 = vmatpush3.bf16.msra.mxu0 (!%p170_p3), %v920_v0  ;;  %892 = vmatpush3.bf16.msra.mxu1 (!%p170_p3), %v920_v0  ;;  %240 = vst.msk [vmem:[#allocation2 + $0x8] sm:$0xff] (!%p170_p3), %vm238_vm0, %v954_v2  ;;  %242 = vst.msk [vmem:[#allocation2 + $0x18] sm:$0xff] (!%p170_p3), %vm238_vm0, %v954_v2  ;;  %s955_s28 = smov (!%p170_p3), 120  }
   0x9   : > { %243 = vst.msk [vmem:[#allocation2 + $0x20] sm:$0xff] (!%p170_p3), %vm238_vm0, %v954_v2  ;;  %244 = vst.msk [vmem:[#allocation2 + $0x28] sm:$0xff] (!%p170_p3), %vm238_vm0, %v954_v2  ;;  %872 = vmatprep.subr.bf16.mxu0 (!%p170_p3), %v921_v1  ;;  %891 = vmatprep.subr.bf16.mxu1 (!%p170_p3), %v921_v1 }
   0xa   : > { %245 = vst.msk [vmem:[#allocation2 + $0x30] sm:$0xff] (!%p170_p3), %vm238_vm0, %v954_v2  ;;  %246 = vst.msk [vmem:[#allocation2 + $0x38] sm:$0xff] (!%p170_p3), %vm238_vm0, %v954_v2 }
   0xb   : > { %247 = vst.msk [vmem:[#allocation2 + $0x40] sm:$0xff] (!%p170_p3), %vm238_vm0, %v954_v2  ;;  %248 = vst.msk [vmem:[#allocation2 + $0x48] sm:$0xff] (!%p170_p3), %vm238_vm0, %v954_v2 }
   0xc   : > { %249 = vst.msk [vmem:[#allocation2 + $0x50] sm:$0xff] (!%p170_p3), %vm238_vm0, %v954_v2  ;;  %250 = vst.msk [vmem:[#allocation2 + $0x58] sm:$0xff] (!%p170_p3), %vm238_vm0, %v954_v2  ;;  %873 = vmatpush3.bf16.msra.mxu0 (!%p170_p3), %v921_v1  ;;  %893 = vmatpush3.bf16.msra.mxu1 (!%p170_p3), %v921_v1 }
   0xd   : > { %251 = vst.msk [vmem:[#allocation2 + $0x60] sm:$0xff] (!%p170_p3), %vm238_vm0, %v954_v2  ;;  %252 = vst.msk [vmem:[#allocation2 + $0x68] sm:$0xff] (!%p170_p3), %vm238_vm0, %v954_v2 }
   0xe   : > { %s1159_s18 = smov (!%p207_p4, %s802_s18), 31  ;;  %253 = vst.msk [vmem:[#allocation2 + $0x70] sm:$0xff] %vm238_vm0, %v954_v2  ;;  %254 = vst.msk [vmem:[#allocation2 + $0x78] sm:$0xff] %vm238_vm0, %v954_v2  ;;  %v257_v11 = vld [vmem:[#allocation2 + $0x10] sm:$0xff]  ;;  %v255_v13 = vld [vmem:[#allocation2] sm:$0xff] }
   0xf   : > { %s803_s21 = sshll.u32 %s1159_s18, 2  ;;  %v258_v16 = vld [vmem:[#allocation2 + $0x18] sm:$0xff]  ;;  %v256_v21 = vld [vmem:[#allocation2 + $0x8] sm:$0xff]  ;;  %s807_s29 = sshll.u32 %s1159_s18, 3 }
  0x10   : > { %s213_s24 = scalar_lea.vmem %s1150_s0, %s803_s21  ;;  %v259_v36 = vld [vmem:[#allocation2 + $0x20] sm:$0xff]  ;;  %v260_v43 = vld [vmem:[#allocation2 + $0x28] sm:$0xff]  ;;  %s1045_s27 = scalar_lea.vmem %s1152_s2, %s803_s21 }
  0x11   : > { %v922_v3 = vld [vmem:[%s213_s24] sm:$0xff]   ;;  %v924_v5 = vld [vmem:[%s213_s24 + $0x8] sm:$0xff]   ;;  %v926_v7 = vld [vmem:[%s213_s24 + $0x10] sm:$0xff]   ;;  %s1107_s5 = scalar_lea.vmem %s1153_s3, %s807_s29 }
  0x12   : > { %v923_v4 = vld [vmem:[%s213_s24 + $0x20] sm:$0xff]   ;;  %874 = vmatprep.mubr.msk.bf16.mxu0 %vm343_vm1, %v922_v3  ;;  %v925_v6 = vld [vmem:[%s213_s24 + $0x28] sm:$0xff]   ;;  %v928_v8 = vld [vmem:[%s213_s24 + $0x30] sm:$0xff]  }
  0x13   : > { %882 = vmatprep.mubr.msk.bf16.mxu1 %vm343_vm1, %v923_v4  ;;  %875 = vmatmul.mubr.msk.bf16.vlgmr.msra.gmra.mrb[0].mxu0 %vm343_vm1, %v924_v5  ;;  %v927_v9 = vld [vmem:[%s213_s24 + $0x18] sm:$0xff]   ;;  %v265_v12 = vld [vmem:[#allocation2 + $0x50] sm:$0xff]  ;;  %v263_v15 = vld [vmem:[#allocation2 + $0x40] sm:$0xff] }
  0x14   : > { %883 = vmatmul.mubr.msk.bf16.vlgmr.msra.gmra.mrb[0].mxu1 %vm343_vm1, %v925_v6  ;;  %878 = vmatprep.mubr.msk.bf16.mxu0 %vm343_vm1, %v926_v7  ;;  %v929_v10 = vld [vmem:[%s213_s24 + $0x38] sm:$0xff]   ;;  %v264_v26 = vld [vmem:[#allocation2 + $0x48] sm:$0xff]  ;;  %v261_v35 = vld [vmem:[#allocation2 + $0x30] sm:$0xff] }
  0x15   : > { %886 = vmatprep.mubr.msk.bf16.mxu1 %vm343_vm1, %v928_v8  ;;  %v266_v20 = vld [vmem:[#allocation2 + $0x58] sm:$0xff]  ;;  %v269_v37 = vld [vmem:[#allocation2 + $0x70] sm:$0xff]  ;;  %v267_v40 = vld [vmem:[#allocation2 + $0x60] sm:$0xff] }
  0x16   : > { %v262_v39 = vld [vmem:[#allocation2 + $0x38] sm:$0xff]  ;;  %v268_v51 = vld [vmem:[#allocation2 + $0x68] sm:$0xff] }
  0x17   : > { %v270_v45 = vld [vmem:[#allocation2 + $0x78] sm:$0xff] }
  0x1b   : > { %879 = vmatmul.mubr.msk.bf16.gmra.mrb[4].mxu0 %vm343_vm1, %v927_v9 }
  0x1c   : > { %887 = vmatmul.mubr.msk.bf16.gmra.mrb[4].mxu1 %vm343_vm1, %v929_v10 }
  0xe6   : > { %v876_v14 = vpop.f32.mrb[0].mxu0 }
  0xe7   : > { %v467_v17 = vadd.f32 %v876_v14, %v257_v11  ;;  %v884_v18 = vpop.f32.mrb[0].mxu1  ;;  %v402_v19 = vpop.f32.mrb[1].mxu0 }
  0xe8   : > { %v475_v22 = vadd.f32 %v884_v18, %v265_v12  ;;  %v465_v23 = vadd.f32 %v402_v19, %v255_v13  ;;  %v434_v24 = vpop.f32.mrb[1].mxu1  ;;  %v877_v25 = vpop.f32.mrb[2].mxu0 }
  0xe9   : > { %484 = vst.msk [vmem:[#allocation2 + $0x10] sm:$0xff] %vm238_vm0, %v467_v17  ;;  %v473_v27 = vadd.f32 %v434_v24, %v263_v15  ;;  %v468_v28 = vadd.f32 %v877_v25, %v258_v16  ;;  %v885_v29 = vpop.f32.mrb[2].mxu1  ;;  %v405_v30 = vpop.f32.mrb[3].mxu0 }
  0xea   : > { %492 = vst.msk [vmem:[#allocation2 + $0x50] sm:$0xff] %vm238_vm0, %v475_v22  ;;  %482 = vst.msk [vmem:[#allocation2] sm:$0xff] %vm238_vm0, %v465_v23  ;;  %v476_v31 = vadd.f32 %v885_v29, %v266_v20  ;;  %v466_v32 = vadd.f32 %v405_v30, %v256_v21  ;;  %v437_v33 = vpop.f32.mrb[3].mxu1 }
  0xeb   : > { %490 = vst.msk [vmem:[#allocation2 + $0x40] sm:$0xff] %vm238_vm0, %v473_v27  ;;  %485 = vst.msk [vmem:[#allocation2 + $0x18] sm:$0xff] %vm238_vm0, %v468_v28  ;;  %v474_v34 = vadd.f32 %v437_v33, %v264_v26 }
  0xec   : > { %493 = vst.msk [vmem:[#allocation2 + $0x58] sm:$0xff] %vm238_vm0, %v476_v31  ;;  %483 = vst.msk [vmem:[#allocation2 + $0x8] sm:$0xff] %vm238_vm0, %v466_v32 }
  0xed   : > { %491 = vst.msk [vmem:[#allocation2 + $0x48] sm:$0xff] %vm238_vm0, %v474_v34 }
  0xee   : > { %v880_v38 = vpop.f32.mrb[4].mxu0 }
  0xef   : > { %v471_v41 = vadd.f32 %v880_v38, %v261_v35  ;;  %v418_v42 = vpop.f32.mrb[5].mxu0  ;;  %v888_v44 = vpop.f32.mrb[4].mxu1 }
  0xf0   : > { %v503_v46 = vld [vmem:[#allocation2 + $0x10] sm:$0xff]  ;;  %v469_v47 = vadd.f32 %v418_v42, %v259_v36  ;;  %v881_v48 = vpop.f32.mrb[6].mxu0  ;;  %v479_v49 = vadd.f32 %v888_v44, %v269_v37  ;;  %v450_v50 = vpop.f32.mrb[5].mxu1 }
  0xf1   : > { %v511_v52 = vld [vmem:[#allocation2 + $0x50] sm:$0xff]  ;;  %618 = vrot.lane.b32.xlu1 %v503_v46, %s955_s28  ;;  %v846_v53 = vpack.c.bf16 %v503_v46, %v503_v46  ;;  %488 = vst.msk [vmem:[#allocation2 + $0x30] sm:$0xff] %vm238_vm0, %v471_v41  ;;  %v472_v54 = vadd.f32 %v881_v48, %v262_v39  ;;  %v421_v55 = vpop.f32.mrb[7].mxu0  ;;  %v501_v56 = vld [vmem:[#allocation2] sm:$0xff]  ;;  %v477_v57 = vadd.f32 %v450_v50, %v267_v40  ;;  %v889_v58 = vpop.f32.mrb[6].mxu1 }
  0xf2   : > { %634 = vrot.lane.b32.xlu0 %v511_v52, %s955_s28  ;;  %v854_v59 = vpack.c.bf16 %v511_v52, %v511_v52  ;;  %486 = vst.msk [vmem:[#allocation2 + $0x20] sm:$0xff] %vm238_vm0, %v469_v47  ;;  %v470_v60 = vadd.f32 %v421_v55, %v260_v43  ;;  %v844_v61 = vpack.c.bf16 %v501_v56, %v501_v56  ;;  %v504_v62 = vld [vmem:[#allocation2 + $0x18] sm:$0xff]  ;;  %496 = vst.msk [vmem:[#allocation2 + $0x70] sm:$0xff] %vm238_vm0, %v479_v49  ;;  %v509_v63 = vld [vmem:[#allocation2 + $0x40] sm:$0xff]  ;;  %v453_v1 = vpop.f32.mrb[7].mxu1 }
  0xf3   : > { %v480_v0 = vadd.f32 %v889_v58, %v270_v45  ;;  %584 = vst.msk [vmem:[%s1045_s27 + $0x8] sm:$0xf] %vm581_vm2, %v846_v53  ;;  %v847_v2 = vpack.c.bf16 %v504_v62, %v504_v62  ;;  %v852_v3 = vpack.c.bf16 %v509_v63, %v509_v63  ;;  %v512_v4 = vld [vmem:[#allocation2 + $0x58] sm:$0xff]  ;;  %v478_v5 = vadd.f32 %v453_v1, %v268_v51  ;;  %v502_v6 = vld [vmem:[#allocation2 + $0x8] sm:$0xff] }
  0xf4   : > { %489 = vst.msk [vmem:[#allocation2 + $0x38] sm:$0xff] %vm238_vm0, %v472_v54  ;;  %494 = vst.msk [vmem:[#allocation2 + $0x60] sm:$0xff] %vm238_vm0, %v477_v57  ;;  %v855_v7 = vpack.c.bf16 %v512_v4, %v512_v4  ;;  %v510_v8 = vld [vmem:[#allocation2 + $0x48] sm:$0xff]  ;;  %v845_v9 = vpack.c.bf16 %v502_v6, %v502_v6 }
  0xf5   : > { %592 = vst.msk [vmem:[%s1045_s27 + $0x28] sm:$0xf] %vm581_vm2, %v854_v59  ;;  %582 = vst.msk [vmem:[%s1045_s27] sm:$0xf] %vm581_vm2, %v844_v61  ;;  %620 = vrot.lane.b32.xlu1 %v504_v62, %s955_s28  ;;  %v853_v10 = vpack.c.bf16 %v510_v8, %v510_v8 }
  0xf6   : > { %487 = vst.msk [vmem:[#allocation2 + $0x28] sm:$0xff] %vm238_vm0, %v470_v60  ;;  %497 = vst.msk [vmem:[#allocation2 + $0x78] sm:$0xff] %vm238_vm0, %v480_v0  ;;  %614 = vrot.lane.b32.xlu0 %v501_v56, %s955_s28 }
  0xf7   : > { %585 = vst.msk [vmem:[%s1045_s27 + $0xc] sm:$0xf] %vm581_vm2, %v847_v2  ;;  %590 = vst.msk [vmem:[%s1045_s27 + $0x20] sm:$0xf] %vm581_vm2, %v852_v3 }
  0xf8   : > { %495 = vst.msk [vmem:[#allocation2 + $0x68] sm:$0xff] %vm238_vm0, %v478_v5  ;;  %v507_v11 = vld [vmem:[#allocation2 + $0x30] sm:$0xff] }
  0xf9   : > { %593 = vst.msk [vmem:[%s1045_s27 + $0x2c] sm:$0xf] %vm581_vm2, %v855_v7  ;;  %583 = vst.msk [vmem:[%s1045_s27 + $0x4] sm:$0xf] %vm581_vm2, %v845_v9  ;;  %636 = vrot.lane.b32.xlu1 %v512_v4, %s955_s28  ;;  %v850_v12 = vpack.c.bf16 %v507_v11, %v507_v11  ;;  %v505_v13 = vld [vmem:[#allocation2 + $0x20] sm:$0xff]  ;;  %v515_v14 = vld [vmem:[#allocation2 + $0x70] sm:$0xff] }
  0xfa   : > { %591 = vst.msk [vmem:[%s1045_s27 + $0x24] sm:$0xf] %vm581_vm2, %v853_v10  ;;  %630 = vrot.lane.b32.xlu0 %v509_v63, %s955_s28  ;;  %v848_v16 = vpack.c.bf16 %v505_v13, %v505_v13  ;;  %v858_v18 = vpack.c.bf16 %v515_v14, %v515_v14 }
  0xfb   : > { %v508_v15 = vld [vmem:[#allocation2 + $0x38] sm:$0xff]  ;;  %v513_v17 = vld [vmem:[#allocation2 + $0x60] sm:$0xff]  ;;  %588 = vst.msk [vmem:[%s1045_s27 + $0x18] sm:$0xf] %vm581_vm2, %v850_v12 }
  0xfc   : > { %v851_v19 = vpack.c.bf16 %v508_v15, %v508_v15  ;;  %v856_v21 = vpack.c.bf16 %v513_v17, %v513_v17  ;;  %586 = vst.msk [vmem:[%s1045_s27 + $0x10] sm:$0xf] %vm581_vm2, %v848_v16  ;;  %596 = vst.msk [vmem:[%s1045_s27 + $0x38] sm:$0xf] %vm581_vm2, %v858_v18 }
  0xfd   : > { %v506_v20 = vld [vmem:[#allocation2 + $0x28] sm:$0xff]  ;;  %v516_v22 = vld [vmem:[#allocation2 + $0x78] sm:$0xff]  ;;  %632 = vrot.lane.b32.xlu1 %v510_v8, %s955_s28 }
  0xfe   : > { %v849_v23 = vpack.c.bf16 %v506_v20, %v506_v20  ;;  %v859_v25 = vpack.c.bf16 %v516_v22, %v516_v22  ;;  %589 = vst.msk [vmem:[%s1045_s27 + $0x1c] sm:$0xf] %vm581_vm2, %v851_v19  ;;  %594 = vst.msk [vmem:[%s1045_s27 + $0x30] sm:$0xf] %vm581_vm2, %v856_v21  ;;  %616 = vrot.lane.b32.xlu0 %v502_v6, %s955_s28 }
  0xff   : > { %v514_v24 = vld [vmem:[#allocation2 + $0x68] sm:$0xff] }
 0x100   : > { %v857_v26 = vpack.c.bf16 %v514_v24, %v514_v24  ;;  %587 = vst.msk [vmem:[%s1045_s27 + $0x14] sm:$0xf] %vm581_vm2, %v849_v23  ;;  %597 = vst.msk [vmem:[%s1045_s27 + $0x3c] sm:$0xf] %vm581_vm2, %v859_v25 }
 0x101   : > { %628 = vrot.lane.b32.xlu1 %v508_v15, %s955_s28 }
 0x102   : > { %595 = vst.msk [vmem:[%s1045_s27 + $0x34] sm:$0xf] %vm581_vm2, %v857_v26  ;;  %626 = vrot.lane.b32.xlu0 %v507_v11, %s955_s28 }
 0x105   : > { %624 = vrot.lane.b32.xlu1 %v506_v20, %s955_s28 }
 0x106   : > { %622 = vrot.lane.b32.xlu0 %v505_v13, %s955_s28 }
 0x109   : > { %640 = vrot.lane.b32.xlu1 %v514_v24, %s955_s28 }
 0x10a   : > { %638 = vrot.lane.b32.xlu0 %v513_v17, %s955_s28 }
 0x10d   : > { %644 = vrot.lane.b32.xlu1 %v516_v22, %s955_s28 }
 0x10e   : > { %642 = vrot.lane.b32.xlu0 %v515_v14, %s955_s28 }
 0x163   : > { %v619_v27 = vpop.permute.xlu1 %618 }
 0x164   : > { %v635_v28 = vpop.permute.xlu0 %634  ;;  %665 = vst.msk [vmem:[%s1107_s5 + $0x10] sm:$0xff] %vm662_vm3, %v619_v27 }
 0x165   : > { %673 = vst.msk [vmem:[%s1107_s5 + $0x50] sm:$0xff] %vm662_vm3, %v635_v28 }
 0x167   : > { %v621_v29 = vpop.permute.xlu1 %620 }
 0x168   : > { %v615_v30 = vpop.permute.xlu0 %614  ;;  %666 = vst.msk [vmem:[%s1107_s5 + $0x18] sm:$0xff] %vm662_vm3, %v621_v29 }
 0x169   : > { %663 = vst.msk [vmem:[%s1107_s5] sm:$0xff] %vm662_vm3, %v615_v30 }
 0x16b   : > { %v637_v31 = vpop.permute.xlu1 %636 }
 0x16c   : > { %v631_v32 = vpop.permute.xlu0 %630  ;;  %674 = vst.msk [vmem:[%s1107_s5 + $0x58] sm:$0xff] %vm662_vm3, %v637_v31 }
 0x16d   : > { %671 = vst.msk [vmem:[%s1107_s5 + $0x40] sm:$0xff] %vm662_vm3, %v631_v32 }
 0x16f   : > { %v633_v33 = vpop.permute.xlu1 %632 }
 0x170   : > { %672 = vst.msk [vmem:[%s1107_s5 + $0x48] sm:$0xff] %vm662_vm3, %v633_v33  ;;  %v617_v34 = vpop.permute.xlu0 %616 }
 0x171   : > { %664 = vst.msk [vmem:[%s1107_s5 + $0x8] sm:$0xff] %vm662_vm3, %v617_v34 }
 0x173   : > { %v629_v35 = vpop.permute.xlu1 %628 }
 0x174   : > { %v627_v36 = vpop.permute.xlu0 %626  ;;  %670 = vst.msk [vmem:[%s1107_s5 + $0x38] sm:$0xff] %vm662_vm3, %v629_v35 }
 0x175   : > { %669 = vst.msk [vmem:[%s1107_s5 + $0x30] sm:$0xff] %vm662_vm3, %v627_v36 }
 0x177   : > { %v625_v37 = vpop.permute.xlu1 %624 }
 0x178   : > { %v623_v38 = vpop.permute.xlu0 %622  ;;  %668 = vst.msk [vmem:[%s1107_s5 + $0x28] sm:$0xff] %vm662_vm3, %v625_v37 }
 0x179   : > { %667 = vst.msk [vmem:[%s1107_s5 + $0x20] sm:$0xff] %vm662_vm3, %v623_v38 }
 0x17b   : > { %v641_v39 = vpop.permute.xlu1 %640 }
 0x17c   : > { %v639_v40 = vpop.permute.xlu0 %638  ;;  %676 = vst.msk [vmem:[%s1107_s5 + $0x68] sm:$0xff] %vm662_vm3, %v641_v39 }
 0x17d   : > { %675 = vst.msk [vmem:[%s1107_s5 + $0x60] sm:$0xff] %vm662_vm3, %v639_v40 }
 0x17f   : > { %v645_v41 = vpop.permute.xlu1 %644 }
 0x180   : > { %v643_v42 = vpop.permute.xlu0 %642  ;;  %678 = vst.msk [vmem:[%s1107_s5 + $0x78] sm:$0xff] %vm662_vm3, %v645_v41 }
 0x181   : > { %677 = vst.msk [vmem:[%s1107_s5 + $0x70] sm:$0xff] %vm662_vm3, %v643_v42 }
 0x182 PF: > { %s14_s14 = sadd.s32 1, %s952_s14   ;;  %s1154_s12 = smov %s948_s13 }
 0x183   : > { %p11_p5 = scmp.ge.s32.totalorder %s14_s14, 4   ;;  %s1155_s13 = smov %s1157_s15 }
 0x185   :  { %13 = sbr.rel (!%p11_p5) target bundleno = 2 (0x2), region = 81 }

// kernel: gat_forward.7
= control target key start
LH: loop header
LB: loop body
LE: loop exit
PB: predicated region body
PF: predicated region fallthrough
CT: control target
= control target key end

     0   :  { %s3023_s24 = smov 0   ;;  %s3025_s25 = smov 0   ;;  %s4309_s0 = inlined_call_operand.vmem [shape: s8[256,256], index: 0, kind: input, shape index: {}]   ;;  %s4310_s1 = inlined_call_operand.vmem [shape: bf16[256,32], index: 1, kind: input, shape index: {}]   ;;  %s4311_s2 = inlined_call_operand.vmem [shape: f32[2,256], index: 2, kind: input, shape index: {}]   ;;  %s4312_s3 = inlined_call_operand.vmem [shape: f32[256,2], index: 3, kind: input, shape index: {}]   ;;  %s4313_s4 = inlined_call_operand.vmem [shape: f32[256,2], index: 4, kind: input, shape index: {}]   ;;  %s4314_s5 = inlined_call_operand.vmem [shape: f32[1,32], index: 5, kind: input, shape index: {}]   ;;  %s4315_s6 = inlined_call_operand.vmem [shape: f32[1,32], index: 6, kind: input, shape index: {}]   ;;  %s4316_s7 = inlined_call_operand.vmem [shape: bf16[256,32], index: 7, kind: output, shape index: {}]  }
   0x1   :  { %s3027_s26 = smov 0  }
   0x2 LB: > { %s29_s27 = sadd.s32 1, %s2972_s25  ;;  %p2549_p0 = scmp.ge.s32.totalorder %s2976_s26, 1  ;;  %s2976_s26 = sphi %s3027_s26, %s17_s26   ;;  %s2972_s25 = sphi %s3025_s25, %s4387_s25   ;;  %s2968_s24 = sphi %s3023_s24, %s4386_s24  }
   0x3   : > { %p31_p1 = scmp.ge.s32.totalorder %s29_s27, 2  ;;  %p291_p2 = scmp.lt.s32.totalorder %s2976_s26, 3 }
   0x5   : > { %s4389_s27 = smov (%p31_p1, %s29_s27), 0  ;;  %p292_p3 = pnand %p2549_p0, %p291_p2 }
   0x7   : > { %295 = sbr.rel (%p292_p3) target bundleno = 708 (0x2c4), region = 48 }
   0xe   : > { %s2553_s28 = sshll.u32 %s2968_s24, 4  ;;  %v3047_v0 = vld [vmem:[%s4310_s1 + $0x40] sm:$0xff]   ;;  %v4319_v1 = vmov 0   ;;  %v3062_v3 = vld [vmem:[%s4310_s1 + $0x48] sm:$0xff]   ;;  %v3090_v7 = vld [vmem:[%s4310_s1 + $0x50] sm:$0xff]   ;;  %v4317_v49 = vmov 1   ;;  %v625_v50 = vlaneseq }
   0xf   : > { %2771 = vset.pattern.permute.xlu1 %v4319_v1  ;;  %2770 = vset.pattern.permute.xlu0 %v4319_v1  ;;  %p362_p4 = scmp.lt.s32.totalorder %s2553_s28, 31  ;;  %v3054_v2 = vld [vmem:[%s4310_s1] sm:$0xff]   ;;  %v3083_v6 = vld [vmem:[%s4310_s1 + $0x8] sm:$0xff]   ;;  %v3103_v10 = vld [vmem:[%s4310_s1 + $0x10] sm:$0xff]   ;;  %s2550_s10 = sshll.u32 %s2968_s24, 2 }
  0x10   : > { %2613 = vmatprep.subr.bf16.mxu0 %v3047_v0  ;;  %v3131_v17 = vld [vmem:[%s4310_s1 + $0x58] sm:$0xff]   ;;  %v3143_v19 = vld [vmem:[%s4310_s1 + $0x60] sm:$0xff]   ;;  %v3164_v23 = vld [vmem:[%s4310_s1 + $0x68] sm:$0xff]   ;;  %p345_p5 = scmp.lt.s32.totalorder %s2550_s10, 7  ;;  %v626_v51 = vshrl.u32 %v625_v50, 7  ;;  %s2982_s20 = smov 16  }
  0x11   : > { %s4391_s28 = smov (!%p362_p4, %s2553_s28), 31  ;;  %2614 = vmatpush3.bf16.msra.mxu0 %v3054_v2  ;;  %v3138_v18 = vld [vmem:[%s4310_s1 + $0x18] sm:$0xff]   ;;  %v3159_v22 = vld [vmem:[%s4310_s1 + $0x20] sm:$0xff]   ;;  %v3173_v24 = vld [vmem:[%s4310_s1 + $0x28] sm:$0xff]  }
  0x12   : > { %s2554_s12 = sshll.u32 %s4391_s28, 3  ;;  %2615 = vmatprep.subr.bf16.mxu0 %v3062_v3  ;;  %v3184_v27 = vld [vmem:[%s4310_s1 + $0x70] sm:$0xff]   ;;  %v3204_v31 = vld [vmem:[%s4310_s1 + $0x78] sm:$0xff]   ;;  %s4393_s10 = smov (!%p345_p5, %s2550_s10), 7  ;;  %v627_v54 = vsub.s32 0, %v626_v51  ;;  %v631_v56 = vsub.s32 1, %v626_v51 }
  0x13   : > { %s3072_s15 = scalar_lea.vmem %s4312_s3, %s2554_s12  ;;  %v3193_v28 = vld [vmem:[%s4310_s1 + $0x30] sm:$0xff]   ;;  %s3211_s8 = scalar_lea.vmem %s4313_s4, %s2554_s12  ;;  %v3220_v32 = vld [vmem:[%s4310_s1 + $0x38] sm:$0xff]   ;;  %v543_v55 = vld [vmem:[%s4311_s2] ss:$2 sm:$0x3] }
  0x14   : > { %v3075_v4 = vld [vmem:[%s3072_s15 + $0x10] sm:$0xff]  ;;  %v3078_v5 = vld [vmem:[%s3072_s15] sm:$0xff]  ;;  %v3093_v8 = vld [vmem:[%s3072_s15 + $0x18] sm:$0xff]  ;;  %s2980_s12 = smov 112   ;;  %s2596_s11 = sshll.u32 %s4393_s10, 4 }
  0x15   : > { %556 = vperm.xlu1 %2771, %v3075_v4   ;;  %546 = vperm.xlu0 %2770, %v3078_v5   ;;  %v3096_v9 = vld [vmem:[%s3072_s15 + $0x8] sm:$0xff]  ;;  %v3111_v12 = vld [vmem:[%s3072_s15 + $0x20] sm:$0xff]  ;;  %v3117_v13 = vld [vmem:[%s3072_s15 + $0x38] sm:$0xff]  ;;  %s3305_s14 = scalar_lea.vmem %s4309_s0, %s2596_s11  ;;  %s2558_s30 = sshll.u32 %s4391_s28, 2 }
  0x16   : > { %2616 = vmatpush3.bf16.msra.mxu0 %v3083_v6  ;;  %v3108_v11 = vld [vmem:[%s3072_s15 + $0x28] sm:$0xff]  ;;  %v3120_v14 = vld [vmem:[%s3072_s15 + $0x30] sm:$0xff]  ;;  %v3126_v16 = vld [vmem:[%s3072_s15 + $0x40] sm:$0xff] }
  0x17   : > { %2617 = vmatprep.subr.bf16.mxu0 %v3090_v7  ;;  %v3123_v15 = vld [vmem:[%s3072_s15 + $0x48] sm:$0xff]  ;;  %v3148_v20 = vld [vmem:[%s3072_s15 + $0x58] sm:$0xff]  ;;  %v3151_v21 = vld [vmem:[%s3072_s15 + $0x50] sm:$0xff] }
  0x18   : > { %v3176_v25 = vld [vmem:[%s3072_s15 + $0x68] sm:$0xff]  ;;  %v3179_v26 = vld [vmem:[%s3072_s15 + $0x60] sm:$0xff]  ;;  %v3196_v29 = vld [vmem:[%s3072_s15 + $0x78] sm:$0xff] }
  0x19   : > { %561 = vperm.xlu1 %2771, %v3093_v8   ;;  %551 = vperm.xlu0 %2770, %v3096_v9   ;;  %v3199_v30 = vld [vmem:[%s3072_s15 + $0x70] sm:$0xff]  ;;  %v764_v33 = vld [vmem:[%s3211_s8 + $0x8] sm:$0xff]  ;;  %v763_v34 = vld [vmem:[%s3211_s8] sm:$0xff]  ;;  %s4183_s15 = scalar_lea.vmem %s4316_s7, %s2558_s30 }
  0x1a   : > { %2618 = vmatpush3.bf16.msra.mxu0 %v3103_v10  ;;  %v766_v35 = vld [vmem:[%s3211_s8 + $0x18] sm:$0xff]  ;;  %v765_v36 = vld [vmem:[%s3211_s8 + $0x10] sm:$0xff]  ;;  %v768_v37 = vld [vmem:[%s3211_s8 + $0x28] sm:$0xff] }
  0x1b   : > { %2619 = vmatprep.subr.bf16.mxu0 %v3131_v17  ;;  %v767_v38 = vld [vmem:[%s3211_s8 + $0x20] sm:$0xff]  ;;  %v3230_v39 = vld [vmem:[%s3211_s8 + $0x38] sm:$0xff]  ;;  %v3233_v40 = vld [vmem:[%s3211_s8 + $0x30] sm:$0xff] }
  0x1c   : > { %v3238_v41 = vld [vmem:[%s3211_s8 + $0x48] sm:$0xff]  ;;  %v3241_v42 = vld [vmem:[%s3211_s8 + $0x40] sm:$0xff]  ;;  %v3246_v43 = vld [vmem:[%s3211_s8 + $0x58] sm:$0xff] }
  0x1d   : > { %571 = vperm.xlu1 %2771, %v3108_v11   ;;  %566 = vperm.xlu0 %2770, %v3111_v12   ;;  %v3249_v44 = vld [vmem:[%s3211_s8 + $0x50] sm:$0xff]  ;;  %v3254_v45 = vld [vmem:[%s3211_s8 + $0x68] sm:$0xff]  ;;  %v3257_v46 = vld [vmem:[%s3211_s8 + $0x60] sm:$0xff] }
  0x1e   : > { %2620 = vmatpush3.bf16.msra.mxu0 %v3138_v18  ;;  %v3262_v47 = vld [vmem:[%s3211_s8 + $0x78] sm:$0xff]  ;;  %v3265_v48 = vld [vmem:[%s3211_s8 + $0x70] sm:$0xff]  ;;  %v419_v52 = vld [vmem:[%s3305_s14 + $0x8] sm:$0xff] }
  0x1f   : > { %2621 = vmatprep.subr.bf16.mxu0 %v3143_v19  ;;  %v418_v53 = vld [vmem:[%s3305_s14] sm:$0xff]  ;;  %v427_v57 = vunpack.c.0.s8 %v419_v52  ;;  %v429_v58 = vunpack.c.1.s8 %v419_v52  ;;  %v421_v59 = vld [vmem:[%s3305_s14 + $0x18] sm:$0xff]  ;;  %v431_v62 = vunpack.c.2.s8 %v419_v52  ;;  %v433_v63 = vunpack.c.3.s8 %v419_v52 }
  0x20   : > { %v426_v60 = vunpack.c.0.s8 %v418_v53  ;;  %v428_v61 = vunpack.c.1.s8 %v418_v53 }
  0x21   : > { %581 = vperm.xlu1 %2771, %v3117_v13   ;;  %576 = vperm.xlu0 %2770, %v3120_v14  }
  0x22   : > { %2622 = vmatpush3.bf16.msra.mxu0 %v3159_v22 }
  0x23   : > { %2623 = vmatprep.subr.bf16.mxu0 %v3164_v23 }
  0x25   : > { %591 = vperm.xlu1 %2771, %v3123_v15   ;;  %586 = vperm.xlu0 %2770, %v3126_v16  }
  0x26   : > { %2624 = vmatpush3.bf16.msra.mxu0 %v3173_v24 }
  0x27   : > { %2625 = vmatprep.subr.bf16.mxu0 %v3184_v27 }
  0x29   : > { %601 = vperm.xlu1 %2771, %v3148_v20   ;;  %596 = vperm.xlu0 %2770, %v3151_v21  }
  0x2a   : > { %2626 = vmatpush3.bf16.msra.mxu0 %v3193_v28 }
  0x2b   : > { %2627 = vmatprep.subr.bf16.mxu0 %v3204_v31 }
  0x2d   : > { %611 = vperm.xlu1 %2771, %v3176_v25   ;;  %606 = vperm.xlu0 %2770, %v3179_v26  }
  0x2e   : > { %2628 = vmatpush3.bf16.msra.mxu0 %v3220_v32 }
  0x31   : > { %621 = vperm.xlu1 %2771, %v3196_v29   ;;  %616 = vperm.xlu0 %2770, %v3199_v30  }
  0x35   : > { %786 = vperm.xlu1 %2771, %v764_v33   ;;  %781 = vperm.xlu0 %2770, %v763_v34  }
  0x39   : > { %796 = vperm.xlu1 %2771, %v766_v35   ;;  %791 = vperm.xlu0 %2770, %v765_v36  }
  0x3d   : > { %806 = vperm.xlu1 %2771, %v768_v37   ;;  %801 = vperm.xlu0 %2770, %v767_v38  }
  0x41   : > { %816 = vperm.xlu1 %2771, %v3230_v39   ;;  %811 = vperm.xlu0 %2770, %v3233_v40  }
  0x45   : > { %826 = vperm.xlu1 %2771, %v3238_v41   ;;  %821 = vperm.xlu0 %2770, %v3241_v42  }
  0x49   : > { %836 = vperm.xlu1 %2771, %v3246_v43   ;;  %831 = vperm.xlu0 %2770, %v3249_v44  }
  0x4d   : > { %846 = vperm.xlu1 %2771, %v3254_v45   ;;  %841 = vperm.xlu0 %2770, %v3257_v46  }
  0x51   : > { %856 = vperm.xlu1 %2771, %v3262_v47   ;;  %851 = vperm.xlu0 %2770, %v3265_v48  }
  0x55   : > { %2773 = vset.pattern.permute.xlu1 %v4317_v49  ;;  %2772 = vset.pattern.permute.xlu0 %v4317_v49 }
  0x56   : > { %1251 = vperm.xlu1 %2773, %v3096_v9   ;;  %1247 = vperm.xlu0 %2772, %v3078_v5   ;;  %v435_v5 = vunpack.c.0.s8 %v421_v59  ;;  %v3329_v9 = vcvt.s32.f32 %v429_v58 }
  0x5a   : > { %1721 = vrot.lane.b32.xlu1 %v3047_v0, %s2980_s12  ;;  %1705 = vrot.lane.b32.xlu0 %v3054_v2, %s2980_s12  ;;  %v420_v0 = vld [vmem:[%s3305_s14 + $0x10] sm:$0xff]  ;;  %v430_v2 = vunpack.c.2.s8 %v418_v53 }
  0x5e   : > { %1723 = vrot.lane.b32.xlu1 %v3062_v3, %s2980_s12  ;;  %1450 = vperm.xlu0 %2772, %v763_v34   ;;  %v432_v3 = vunpack.c.3.s8 %v418_v53  ;;  %v438_v34 = vunpack.c.2.s8 %v420_v0 }
  0x62   : > { %1454 = vperm.xlu1 %2773, %v764_v33   ;;  %1707 = vrot.lane.b32.xlu0 %v3083_v6, %s2980_s12  ;;  %v437_v6 = vunpack.c.1.s8 %v421_v59  ;;  %v441_v33 = vunpack.c.3.s8 %v421_v59 }
  0x64   : > { %v3365_v58 = vcvt.s32.f32 %v441_v33 }
  0x66   : > { %1255 = vperm.xlu1 %2773, %v3075_v4   ;;  %1259 = vperm.xlu0 %2772, %v3093_v8   ;;  %v3320_v4 = vrot.slane %v543_v55, %v627_v54  ;;  %v3327_v8 = vcvt.s32.f32 %v427_v57  ;;  %4344 = vst [vmem:[#allocation7_spill] sm:$0xff] %v3365_v58 }
  0x6a   : > { %1725 = vrot.lane.b32.xlu1 %v3090_v7, %s2980_s12  ;;  %1709 = vrot.lane.b32.xlu0 %v3103_v10, %s2980_s12  ;;  %v3325_v7 = vrot.slane %v543_v55, %v631_v56  ;;  %v434_v10 = vunpack.c.0.s8 %v420_v0 }
  0x6e   : > { %1727 = vrot.lane.b32.xlu1 %v3131_v17, %s2980_s12  ;;  %1458 = vperm.xlu0 %2772, %v765_v36   ;;  %v2575_v17 = vld [vmem:[%s4311_s2 + $0x1] ss:$2 sm:$0x3] }
  0x6f   : > { %v3357_v36 = vrot.slane %v2575_v17, %v631_v56  ;;  %v3367_v56 = vcvt.s32.f32 %v438_v34 }
  0x71   : > { %4341 = vst [vmem:[#allocation4_spill] sm:$0xff] %v3357_v36  ;;  %4345 = vst [vmem:[#allocation8_spill] sm:$0xff] %v3367_v56 }
  0x72   : > { %1462 = vperm.xlu1 %2773, %v766_v35   ;;  %1711 = vrot.lane.b32.xlu0 %v3138_v18, %s2980_s12  ;;  %v3342_v18 = vcvt.s32.f32 %v430_v2  ;;  %v3355_v35 = vrot.slane %v2575_v17, %v627_v54 }
  0x76   : > { %1263 = vperm.xlu1 %2773, %v3111_v12   ;;  %1267 = vperm.xlu0 %2772, %v3108_v11   ;;  %v3331_v11 = vcvt.s32.f32 %v426_v60  ;;  %v3333_v12 = vcvt.s32.f32 %v428_v61  ;;  %v3373_v60 = vld [vmem:[%s3305_s14 + $0x38] sm:$0xff] }
  0x7a   : > { %1729 = vrot.lane.b32.xlu1 %v3143_v19, %s2980_s12  ;;  %1713 = vrot.lane.b32.xlu0 %v3159_v22, %s2980_s12  ;;  %v3344_v19 = vcvt.s32.f32 %v432_v3  ;;  %v436_v22 = vunpack.c.1.s8 %v420_v0 }
  0x7c   : > { %v3361_v57 = vcvt.s32.f32 %v436_v22 }
  0x7e   : > { %1731 = vrot.lane.b32.xlu1 %v3164_v23, %s2980_s12  ;;  %1466 = vperm.xlu0 %2772, %v767_v38   ;;  %v439_v23 = vunpack.c.2.s8 %v421_v59  ;;  %v440_v38 = vunpack.c.3.s8 %v420_v0  ;;  %4342 = vst [vmem:[#allocation5_spill] sm:$0xff] %v3361_v57  ;;  %v3370_v59 = vld [vmem:[%s3305_s14 + $0x30] sm:$0xff] }
  0x80   : > { %v3380_v3 = vcvt.s32.f32 %v440_v38  ;;  %v452_v38 = vunpack.c.1.s8 %v3370_v59 }
  0x82   : > { %1470 = vperm.xlu1 %2773, %v768_v37   ;;  %1715 = vrot.lane.b32.xlu0 %v3173_v24, %s2980_s12  ;;  %v422_v24 = vld [vmem:[%s3305_s14 + $0x20] sm:$0xff]  ;;  %v3359_v37 = vcvt.s32.f32 %v434_v10  ;;  %4346 = vst [vmem:[#allocation9_spill] sm:$0xff] %v3380_v3 }
  0x83   : > { %v444_v52 = vunpack.c.1.s8 %v422_v24 }
  0x85   : > { %v3388_v17 = vcvt.s32.f32 %v444_v52 }
  0x86   : > { %1271 = vperm.xlu1 %2773, %v3120_v14   ;;  %1275 = vperm.xlu0 %2772, %v3117_v13   ;;  %v3335_v13 = vcvt.s32.f32 %v431_v62  ;;  %v3337_v14 = vcvt.s32.f32 %v433_v63  ;;  %v448_v62 = vunpack.c.3.s8 %v422_v24 }
  0x87   : > { %4350 = vst [vmem:[#allocation13_spill] sm:$0xff] %v3388_v17 }
  0x88   : > { %v3398_v34 = vcvt.s32.f32 %v448_v62 }
  0x8a   : > { %1733 = vrot.lane.b32.xlu1 %v3184_v27, %s2980_s12  ;;  %1717 = vrot.lane.b32.xlu0 %v3193_v28, %s2980_s12  ;;  %v423_v27 = vld [vmem:[%s3305_s14 + $0x28] sm:$0xff]  ;;  %v3348_v28 = vcvt.s32.f32 %v435_v5  ;;  %4354 = vst [vmem:[#allocation17_spill] sm:$0xff] %v3398_v34 }
  0x8b   : > { %v443_v50 = vunpack.c.0.s8 %v423_v27  ;;  %v445_v51 = vunpack.c.1.s8 %v423_v27  ;;  %v447_v54 = vunpack.c.2.s8 %v423_v27  ;;  %v449_v61 = vunpack.c.3.s8 %v423_v27 }
  0x8d   : > { %v3386_v10 = vcvt.s32.f32 %v445_v51  ;;  %v3392_v27 = vcvt.s32.f32 %v447_v54  ;;  %v3396_v33 = vcvt.s32.f32 %v449_v61 }
  0x8e   : > { %1735 = vrot.lane.b32.xlu1 %v3204_v31, %s2980_s12  ;;  %1474 = vperm.xlu0 %2772, %v3233_v40   ;;  %v3350_v31 = vcvt.s32.f32 %v437_v6  ;;  %v442_v40 = vunpack.c.0.s8 %v422_v24  ;;  %v3384_v6 = vcvt.s32.f32 %v443_v50 }
  0x8f   : > { %4349 = vst [vmem:[#allocation12_spill] sm:$0xff] %v3386_v10  ;;  %4352 = vst [vmem:[#allocation15_spill] sm:$0xff] %v3392_v27 }
  0x90   : > { %v3382_v5 = vcvt.s32.f32 %v442_v40  ;;  %4348 = vst [vmem:[#allocation11_spill] sm:$0xff] %v3384_v6  ;;  %4353 = vst [vmem:[#allocation16_spill] sm:$0xff] %v3396_v33  ;;  %v453_v40 = vunpack.c.1.s8 %v3373_v60 }
  0x92   : > { %1478 = vperm.xlu1 %2773, %v3230_v39   ;;  %1719 = vrot.lane.b32.xlu0 %v3220_v32, %s2980_s12  ;;  %v3363_v39 = vcvt.s32.f32 %v439_v23  ;;  %v446_v32 = vunpack.c.2.s8 %v422_v24  ;;  %4347 = vst [vmem:[#allocation10_spill] sm:$0xff] %v3382_v5  ;;  %v3416_v33 = vcvt.s32.f32 %v453_v40 }
  0x94   : > { %v557_v53 = vpop.permute.xlu1 %556  ;;  %v547_v55 = vpop.permute.xlu0 %546  ;;  %4343 = vst [vmem:[#allocation6_spill] sm:$0xff] %v3363_v39  ;;  %v3390_v24 = vcvt.s32.f32 %v446_v32  ;;  %4358 = vst [vmem:[#allocation21_spill] sm:$0xff] %v3416_v33 }
  0x95   : > { %v639_v63 = vadd.f32 %v3320_v4, %v557_v53  ;;  %v635_v0 = vadd.f32 %v3320_v4, %v547_v55  ;;  %v636_v2 = vadd.f32 %v3325_v7, %v547_v55  ;;  %v640_v50 = vadd.f32 %v3325_v7, %v557_v53 }
  0x96   : > { %1279 = vperm.xlu1 %2773, %v3126_v16   ;;  %1283 = vperm.xlu0 %2772, %v3123_v15   ;;  %4351 = vst [vmem:[#allocation14_spill] sm:$0xff] %v3390_v24  ;;  %v450_v16 = vunpack.c.0.s8 %v3370_v59  ;;  %v451_v15 = vunpack.c.0.s8 %v3373_v60 }
  0x97   : > { %v703_v51 = vmul.f32 0.2, %v639_v63  ;;  %v699_v52 = vmul.f32 0.2, %v635_v0  ;;  %v700_v55 = vmul.f32 0.2, %v636_v2 }
  0x98   : > { %v562_v22 = vpop.permute.xlu1 %561  ;;  %v552_v23 = vpop.permute.xlu0 %551  ;;  %vm667_vm0 = vcmp.gt.f32.partialorder %v635_v0, 0.0  ;;  %vm668_vm1 = vcmp.gt.f32.partialorder %v636_v2, 0.0  ;;  %vm671_vm2 = vcmp.gt.f32.partialorder %v639_v63, 0.0  ;;  %v3408_v1 = vcvt.s32.f32 %v450_v16 }
  0x99   : > { %v641_v32 = vadd.f32 %v3320_v4, %v562_v22  ;;  %v637_v54 = vadd.f32 %v3320_v4, %v552_v23  ;;  %v638_v61 = vadd.f32 %v3325_v7, %v552_v23  ;;  %v3410_v53 = vcvt.s32.f32 %v451_v15 }
  0x9a   : > { %1482 = vperm.xlu1 %2773, %v3241_v42   ;;  %1486 = vperm.xlu0 %2772, %v3238_v41   ;;  %4355 = vst [vmem:[#allocation18_spill] sm:$0xff] %v3408_v1  ;;  %v642_v34 = vadd.f32 %v3325_v7, %v562_v22  ;;  %v3414_v41 = vcvt.s32.f32 %v452_v38  ;;  %v704_v17 = vmul.f32 0.2, %v640_v50  ;;  %v3422_v23 = vsel %vm667_vm0, %v635_v0, %v699_v52 }
  0x9b   : > { %4356 = vst [vmem:[#allocation19_spill] sm:$0xff] %v3410_v53  ;;  %v3425_v16 = vsel %vm668_vm1, %v636_v2, %v700_v55  ;;  %v705_v22 = vmul.f32 0.2, %v641_v32  ;;  %v701_v15 = vmul.f32 0.2, %v637_v54  ;;  %vm672_vm3 = vcmp.gt.f32.partialorder %v640_v50, 0.0 }
  0x9c   : > { %v572_v62 = vpop.permute.xlu1 %571  ;;  %v567_v49 = vpop.permute.xlu0 %566  ;;  %4357 = vst [vmem:[#allocation20_spill] sm:$0xff] %v3414_v41  ;;  %v3428_v38 = vsel %vm671_vm2, %v639_v63, %v703_v51  ;;  %v702_v40 = vmul.f32 0.2, %v638_v61  ;;  %vm669_vm4 = vcmp.gt.f32.partialorder %v637_v54, 0.0  ;;  %vm670_vm5 = vcmp.gt.f32.partialorder %v638_v61, 0.0 }
  0x9d   : > { %v645_v27 = vadd.f32 %v3320_v4, %v572_v62  ;;  %v646_v42 = vadd.f32 %v3325_v7, %v572_v62  ;;  %v643_v33 = vadd.f32 %v3320_v4, %v567_v49  ;;  %v644_v0 = vadd.f32 %v3325_v7, %v567_v49 }
  0x9e   : > { %1287 = vperm.xlu1 %2773, %v3151_v21   ;;  %1291 = vperm.xlu0 %2772, %v3148_v20   ;;  %v706_v20 = vmul.f32 0.2, %v642_v34  ;;  %vm673_vm6 = vcmp.gt.f32.partialorder %v641_v32, 0.0  ;;  %vm674_vm7 = vcmp.gt.f32.partialorder %v642_v34, 0.0  ;;  %v3437_v63 = vsel %vm672_vm3, %v640_v50, %v704_v17 }
  0x9f   : > { %v709_v2 = vmul.f32 0.2, %v645_v27  ;;  %v3441_v62 = vsel %vm669_vm4, %v637_v54, %v701_v15  ;;  %vm677_vm8 = vcmp.gt.f32.partialorder %v645_v27, 0.0  ;;  %v710_v49 = vmul.f32 0.2, %v646_v42 }
  0xa0   : > { %v582_v21 = vpop.permute.xlu1 %581  ;;  %v577_v41 = vpop.permute.xlu0 %576  ;;  %v707_v53 = vmul.f32 0.2, %v643_v33  ;;  %v3444_v10 = vsel %vm670_vm5, %v638_v61, %v702_v40  ;;  %v3450_v50 = vsel %vm674_vm7, %v642_v34, %v706_v20  ;;  %vm678_vm9 = vcmp.gt.f32.partialorder %v646_v42, 0.0 }
  0xa1   : > { %v649_v52 = vadd.f32 %v3320_v4, %v582_v21  ;;  %v650_v51 = vadd.f32 %v3325_v7, %v582_v21  ;;  %v647_v55 = vadd.f32 %v3320_v4, %v577_v41  ;;  %v648_v17 = vadd.f32 %v3325_v7, %v577_v41 }
  0xa2   : > { %1490 = vperm.xlu1 %2773, %v3249_v44   ;;  %1494 = vperm.xlu0 %2772, %v3246_v43   ;;  %v3447_v43 = vsel %vm673_vm6, %v641_v32, %v705_v22  ;;  %v708_v44 = vmul.f32 0.2, %v644_v0  ;;  %v3454_v54 = vsel %vm677_vm8, %v645_v27, %v709_v2  ;;  %vm675_vm10 = vcmp.gt.f32.partialorder %v643_v33, 0.0 }
  0xa3   : > { %v713_v21 = vmul.f32 0.2, %v649_v52  ;;  %vm676_vm11 = vcmp.gt.f32.partialorder %v644_v0, 0.0  ;;  %v714_v61 = vmul.f32 0.2, %v650_v51  ;;  %vm681_vm12 = vcmp.gt.f32.partialorder %v649_v52, 0.0 }
  0xa4   : > { %v592_v1 = vpop.permute.xlu1 %591  ;;  %v587_v24 = vpop.permute.xlu0 %586  ;;  %v711_v15 = vmul.f32 0.2, %v647_v55  ;;  %vm682_vm13 = vcmp.gt.f32.partialorder %v650_v51, 0.0  ;;  %vm679_vm14 = vcmp.gt.f32.partialorder %v647_v55, 0.0  ;;  %v3461_v27 = vsel %vm678_vm9, %v646_v42, %v710_v49 }
  0xa5   : > { %v653_v32 = vadd.f32 %v3320_v4, %v592_v1  ;;  %v654_v41 = vadd.f32 %v3325_v7, %v592_v1  ;;  %v651_v34 = vadd.f32 %v3320_v4, %v587_v24  ;;  %v3463_v20 = vsel %vm675_vm10, %v643_v33, %v707_v53 }
  0xa6   : > { %1295 = vperm.xlu1 %2773, %v3179_v26   ;;  %1299 = vperm.xlu0 %2772, %v3176_v25   ;;  %v712_v26 = vmul.f32 0.2, %v648_v17  ;;  %v652_v25 = vadd.f32 %v3325_v7, %v587_v24  ;;  %v3470_v1 = vsel %vm676_vm11, %v644_v0, %v708_v44  ;;  %vm680_vm15 = vcmp.gt.f32.partialorder %v648_v17, 0.0 }
  0xa7   : > { %v3474_v24 = vsel %vm681_vm12, %v649_v52, %v713_v21  ;;  %v3477_v33 = vsel %vm682_vm13, %v650_v51, %v714_v61  ;;  %v3479_v53 = vsel %vm679_vm14, %v647_v55, %v711_v15  ;;  %v717_v42 = vmul.f32 0.2, %v653_v32 }
  0xa8   : > { %v602_v22 = vpop.permute.xlu1 %601  ;;  %v597_v40 = vpop.permute.xlu0 %596  ;;  %v718_v49 = vmul.f32 0.2, %v654_v41  ;;  %v716_v0 = vmul.f32 0.2, %v652_v25  ;;  %v3482_v44 = vsel %vm680_vm15, %v648_v17, %v712_v26  ;;  %vm685_vm0 = vcmp.gt.f32.partialorder %v653_v32, 0.0 }
  0xa9   : > { %v657_v2 = vadd.f32 %v3320_v4, %v602_v22  ;;  %v658_v3 = vadd.f32 %v3325_v7, %v602_v22  ;;  %v655_v6 = vadd.f32 %v3320_v4, %v597_v40  ;;  %v715_v22 = vmul.f32 0.2, %v651_v34 }
  0xaa   : > { %1498 = vperm.xlu1 %2773, %v3257_v46   ;;  %1502 = vperm.xlu0 %2772, %v3254_v45   ;;  %v656_v46 = vadd.f32 %v3325_v7, %v597_v40  ;;  %vm686_vm1 = vcmp.gt.f32.partialorder %v654_v41, 0.0  ;;  %vm683_vm2 = vcmp.gt.f32.partialorder %v651_v34, 0.0  ;;  %vm684_vm3 = vcmp.gt.f32.partialorder %v652_v25, 0.0 }
  0xab   : > { %v721_v56 = vmul.f32 0.2, %v657_v2  ;;  %v722_v52 = vmul.f32 0.2, %v658_v3  ;;  %v719_v51 = vmul.f32 0.2, %v655_v6  ;;  %v3490_v26 = vsel %vm685_vm0, %v653_v32, %v717_v42 }
  0xac   : > { %v612_v45 = vpop.permute.xlu1 %611  ;;  %v607_v5 = vpop.permute.xlu0 %606  ;;  %vm689_vm4 = vcmp.gt.f32.partialorder %v657_v2, 0.0  ;;  %v720_v61 = vmul.f32 0.2, %v656_v46  ;;  %vm690_vm5 = vcmp.gt.f32.partialorder %v658_v3, 0.0  ;;  %vm687_vm6 = vcmp.gt.f32.partialorder %v655_v6, 0.0 }
  0xad   : > { %v661_v55 = vadd.f32 %v3320_v4, %v612_v45  ;;  %v662_v21 = vadd.f32 %v3325_v7, %v612_v45  ;;  %v659_v17 = vadd.f32 %v3320_v4, %v607_v5  ;;  %vm688_vm7 = vcmp.gt.f32.partialorder %v656_v46, 0.0 }
  0xae   : > { %1303 = vperm.xlu1 %2773, %v3199_v30   ;;  %1307 = vperm.xlu0 %2772, %v3196_v29   ;;  %v3493_v29 = vsel %vm686_vm1, %v654_v41, %v718_v49  ;;  %v3495_v30 = vsel %vm683_vm2, %v651_v34, %v715_v22  ;;  %v660_v58 = vadd.f32 %v3325_v7, %v607_v5  ;;  %v455_v32 = vunpack.c.2.s8 %v3373_v60 }
  0xaf   : > { %v3501_v45 = vsel %vm684_vm3, %v652_v25, %v716_v0  ;;  %v3503_v39 = vsel %vm689_vm4, %v657_v2, %v721_v56  ;;  %v725_v42 = vmul.f32 0.2, %v661_v55  ;;  %v726_v57 = vmul.f32 0.2, %v662_v21 }
  0xb0   : > { %v622_v15 = vpop.permute.xlu1 %621  ;;  %v617_v40 = vpop.permute.xlu0 %616  ;;  %v3506_v41 = vsel %vm690_vm5, %v658_v3, %v722_v52  ;;  %v3508_v34 = vsel %vm687_vm6, %v655_v6, %v719_v51  ;;  %v723_v49 = vmul.f32 0.2, %v659_v17  ;;  %v3510_v36 = vsel %vm688_vm7, %v656_v46, %v720_v61 }
  0xb1   : > { %vm693_vm8 = vcmp.gt.f32.partialorder %v661_v55, 0.0  ;;  %vm694_vm9 = vcmp.gt.f32.partialorder %v662_v21, 0.0  ;;  %v724_v2 = vmul.f32 0.2, %v660_v58  ;;  %v3517_v3 = vadd.f32 %v3320_v4, %v622_v15 }
  0xb2   : > { %1506 = vperm.xlu1 %2773, %v3265_v48   ;;  %1510 = vperm.xlu0 %2772, %v3262_v47   ;;  %v3520_v6 = vadd.f32 %v3325_v7, %v622_v15  ;;  %vm691_vm10 = vcmp.gt.f32.partialorder %v659_v17, 0.0  ;;  %v4359_v46 = vmov 0   ;;  %v3531_v15 = vsel %vm693_vm8, %v661_v55, %v725_v42 }
  0xb3   : > { %vm692_vm11 = vcmp.gt.f32.partialorder %v660_v58, 0.0  ;;  %vm697_vm12 = vcmp.gt.f32.partialorder %v3517_v3, 0.0 }
  0xb4   : > { %v787_v22 = vpop.permute.xlu1 %786  ;;  %v782_v5 = vpop.permute.xlu0 %781  ;;  %vm698_vm13 = vcmp.gt.f32.partialorder %v3520_v6, 0.0 }
  0xb5   : > { %v861_v47 = vsub.f32 %v3441_v62, %v787_v22  ;;  %v862_v48 = vsub.f32 %v3444_v10, %v787_v22  ;;  %v859_v56 = vsub.f32 %v3422_v23, %v782_v5  ;;  %v860_v25 = vsub.f32 %v3425_v16, %v782_v5 }
  0xb6   : > { %2774 = vset.pattern.permute.xlu1 %v4359_v46  ;;  %2775 = vset.pattern.permute.xlu0 %v4359_v46  ;;  %v3525_v62 = vadd.f32 %v3320_v4, %v617_v40  ;;  %v3528_v16 = vadd.f32 %v3325_v7, %v617_v40  ;;  %v3534_v22 = vsel %vm694_vm9, %v662_v21, %v726_v57  ;;  %v729_v57 = vmul.f32 0.2, %v3517_v3 }
  0xb7   : > { %v895_v10 = vmul.f32 1.442695, %v861_v47  ;;  %v897_v0 = vmul.f32 1.442695, %v862_v48  ;;  %v891_v23 = vmul.f32 1.442695, %v859_v56  ;;  %v3541_v40 = vsel %vm691_vm10, %v659_v17, %v723_v49 }
  0xb8   : > { %v893_v52 = vmul.f32 1.442695, %v860_v25  ;;  %v797_v51 = vpop.permute.xlu1 %796  ;;  %v792_v61 = vpop.permute.xlu0 %791  ;;  %v3545_v21 = vmul.f32 0.2, %v3520_v6  ;;  %v3551_v49 = vmul.f32 0.2, %v3525_v62  ;;  %v3555_v46 = vsel %vm692_vm11, %v660_v58, %v724_v2 }
  0xb9   : > { %2794 = vpow2.f32 %v895_v10  ;;  %v865_v5 = vsub.f32 %v3447_v43, %v797_v51  ;;  %v866_v4 = vsub.f32 %v3450_v50, %v797_v51  ;;  %v863_v47 = vsub.f32 %v3428_v38, %v792_v61 }
  0xba   : > { %2796 = vpow2.f32 %v897_v0  ;;  %v864_v7 = vsub.f32 %v3437_v63, %v792_v61  ;;  %vm695_vm14 = vcmp.gt.f32.partialorder %v3525_v62, 0.0  ;;  %vm696_vm15 = vcmp.gt.f32.partialorder %v3528_v16, 0.0 }
  0xbb   : > { %2798 = vpow2.f32 %v891_v23  ;;  %v903_v55 = vmul.f32 1.442695, %v865_v5  ;;  %v905_v42 = vmul.f32 1.442695, %v866_v4  ;;  %v899_v48 = vmul.f32 1.442695, %v863_v47 }
  0xbc   : > { %2800 = vpow2.f32 %v893_v52  ;;  %v901_v43 = vmul.f32 1.442695, %v864_v7  ;;  %v807_v50 = vpop.permute.xlu1 %806  ;;  %v802_v38 = vpop.permute.xlu0 %801  ;;  %v3558_v52 = vmul.f32 0.2, %v3528_v16  ;;  %vm384_vm10 = vcmask 15360  }
  0xbd   : > { %2802 = vpow2.f32 %v903_v55  ;;  %v869_v63 = vsub.f32 %v3454_v54, %v807_v50  ;;  %v870_v56 = vsub.f32 %v3461_v27, %v807_v50  ;;  %v867_v17 = vsub.f32 %v3463_v20, %v802_v38 }
  0xbe   : > { %2804 = vpow2.f32 %v905_v42  ;;  %v868_v25 = vsub.f32 %v3470_v1, %v802_v38 }
  0xbf   : > { %2806 = vpow2.f32 %v899_v48  ;;  %v911_v10 = vmul.f32 1.442695, %v869_v63  ;;  %v913_v0 = vmul.f32 1.442695, %v870_v56  ;;  %v907_v23 = vmul.f32 1.442695, %v867_v17 }
  0xc0   : > { %2808 = vpow2.f32 %v901_v43  ;;  %v909_v54 = vmul.f32 1.442695, %v868_v25  ;;  %v817_v27 = vpop.permute.xlu1 %816  ;;  %v812_v20 = vpop.permute.xlu0 %811 }
  0xc1   : > { %2810 = vpow2.f32 %v911_v10  ;;  %v873_v51 = vsub.f32 %v3474_v24, %v817_v27  ;;  %v874_v1 = vsub.f32 %v3477_v33, %v817_v27  ;;  %v871_v58 = vsub.f32 %v3479_v53, %v812_v20 }
  0xc2   : > { %2812 = vpow2.f32 %v913_v0  ;;  %v872_v2 = vsub.f32 %v3482_v44, %v812_v20  ;;  %v3571_v53 = vsel %vm697_vm12, %v3517_v3, %v729_v57 }
  0xc3   : > { %v2795_v61 = vpop.eup %2794  ;;  %2814 = vpow2.f32 %v907_v23  ;;  %v919_v5 = vmul.f32 1.442695, %v873_v51  ;;  %v921_v4 = vmul.f32 1.442695, %v874_v1  ;;  %v915_v47 = vmul.f32 1.442695, %v871_v58 }
  0xc4   : > { %v2797_v7 = vpop.eup %2796  ;;  %2816 = vpow2.f32 %v909_v54  ;;  %v917_v55 = vmul.f32 1.442695, %v872_v2  ;;  %v827_v24 = vpop.permute.xlu1 %826  ;;  %v957_v33 = vmul.f32 %v2795_v61, %v3333_v12 }
  0xc5   : > { %v822_v42 = vpop.permute.xlu0 %821  ;;  %v2799_v44 = vpop.eup %2798  ;;  %2818 = vpow2.f32 %v919_v5  ;;  %v877_v48 = vsub.f32 %v3490_v26, %v827_v24  ;;  %v878_v43 = vsub.f32 %v3493_v29, %v827_v24  ;;  %v958_v56 = vmul.f32 %v2797_v7, %v3329_v9 }
  0xc6   : > { %v875_v50 = vsub.f32 %v3495_v30, %v822_v42  ;;  %v2801_v38 = vpop.eup %2800  ;;  %2820 = vpow2.f32 %v921_v4  ;;  %v876_v63 = vsub.f32 %v3501_v45, %v822_v42  ;;  %v3579_v17 = vmul.f32 %v2799_v44, %v3331_v11 }
  0xc7   : > { %v2803_v25 = vpop.eup %2802  ;;  %2822 = vpow2.f32 %v915_v47  ;;  %v927_v3 = vmul.f32 1.442695, %v877_v48  ;;  %v929_v57 = vmul.f32 1.442695, %v878_v43  ;;  %v3583_v23 = vmul.f32 %v2801_v38, %v3327_v8 }
  0xc8   : > { %v2805_v26 = vpop.eup %2804  ;;  %2824 = vpow2.f32 %v917_v55  ;;  %v923_v29 = vmul.f32 1.442695, %v875_v50  ;;  %v925_v10 = vmul.f32 1.442695, %v876_v63  ;;  %v837_v30 = vpop.permute.xlu1 %836  ;;  %v1035_v51 = vpack.c.bf16 %v957_v33, %v3579_v17 }
  0xc9   : > { %v832_v0 = vpop.permute.xlu0 %831  ;;  %v2807_v45 = vpop.eup %2806  ;;  %v881_v54 = vsub.f32 %v3503_v39, %v837_v30  ;;  %v882_v27 = vsub.f32 %v3506_v41, %v837_v30  ;;  %2826 = vpow2.f32 %v927_v3  ;;  %v1036_v2 = vpack.c.bf16 %v958_v56, %v3583_v23 }
  0xca   : > { %v879_v20 = vsub.f32 %v3508_v34, %v832_v0  ;;  %v2809_v1 = vpop.eup %2808  ;;  %v880_v58 = vsub.f32 %v3510_v36, %v832_v0  ;;  %v3592_v61 = vmul.f32 %v2805_v26, %v3337_v14  ;;  %2828 = vpow2.f32 %v929_v57 }
  0xcb   : > { %v3594_v5 = vpop.eup %2810  ;;  %v935_v4 = vmul.f32 1.442695, %v881_v54  ;;  %v3600_v39 = vsel %vm698_vm13, %v3520_v6, %v3545_v21  ;;  %v759_v36 = vsel %vm695_vm14, %v3525_v62, %v3551_v49  ;;  %2830 = vpow2.f32 %v923_v29  ;;  %1179 = vmatprep.mubr.bf16.mxu0 %v1036_v2 }
  0xcc   : > { %v2813_v41 = vpop.eup %2812  ;;  %v937_v34 = vmul.f32 1.442695, %v882_v27  ;;  %v847_v47 = vpop.permute.xlu1 %846  ;;  %v960_v55 = vmul.f32 %v2809_v1, %v3335_v13  ;;  %v760_v24 = vsel %vm696_vm15, %v3528_v16, %v3558_v52  ;;  %v931_v21 = vmul.f32 1.442695, %v879_v20  ;;  %1180 = vmatmul.mubr.bf16.vlgmr.msra.gmra.mrb[0].mxu0 %v1035_v51 }
  0xcd   : > { %v842_v7 = vpop.permute.xlu0 %841  ;;  %v2815_v6 = vpop.eup %2814  ;;  %v885_v42 = vsub.f32 %v3531_v15, %v847_v47  ;;  %v886_v62 = vsub.f32 %v3534_v22, %v847_v47  ;;  %2832 = vpow2.f32 %v925_v10  ;;  %v933_v48 = vmul.f32 1.442695, %v880_v58 }
  0xce   : > { %v883_v49 = vsub.f32 %v3541_v40, %v842_v7  ;;  %v2817_v44 = vpop.eup %2816  ;;  %v884_v43 = vsub.f32 %v3555_v46, %v842_v7  ;;  %v1038_v50 = vpack.c.bf16 %v3592_v61, %v960_v55  ;;  %2834 = vpow2.f32 %v935_v4 }
  0xcf   : > { %v3616_v38 = vpop.eup %2818  ;;  %v943_v16 = vmul.f32 1.442695, %v885_v42  ;;  %v990_v52 = vadd.f32 %v958_v56, %v957_v33  ;;  %v959_v63 = vmul.f32 %v2807_v45, %v3342_v18  ;;  %2836 = vpow2.f32 %v937_v34  ;;  %v4362_v42 = vld [vmem:[#allocation4_spill] sm:$0xff] }
  0xd0   : > { %v2821_v3 = vpop.eup %2820  ;;  %v939_v15 = vmul.f32 1.442695, %v883_v49  ;;  %1187 = vmatprep.mubr.bf16.mxu0 %v1038_v50  ;;  %v857_v22 = vpop.permute.xlu1 %856  ;;  %v961_v57 = vmul.f32 %v2803_v25, %v3344_v19  ;;  %v964_v26 = vmul.f32 %v2817_v44, %v3348_v28  ;;  %2838 = vpow2.f32 %v931_v21 }
  0xd1   : > { %v852_v40 = vpop.permute.xlu0 %851  ;;  %v2823_v46 = vpop.eup %2822  ;;  %v945_v29 = vmul.f32 1.442695, %v886_v62  ;;  %v941_v10 = vmul.f32 1.442695, %v884_v43  ;;  %991 = vadd.xlane.f32.xlu0 %v990_v52  ;;  %2840 = vpow2.f32 %v933_v48  ;;  %v889_v33 = vsub.f32 %v3571_v53, %v857_v22 }
  0xd2   : > { %v887_v30 = vsub.f32 %v759_v36, %v852_v40  ;;  %v2825_v0 = vpop.eup %2824  ;;  %v888_v56 = vsub.f32 %v760_v24, %v852_v40  ;;  %v966_v45 = vmul.f32 %v2813_v41, %v3350_v31  ;;  %2842 = vpow2.f32 %v943_v16  ;;  %v4365_v40 = vld [vmem:[#allocation7_spill] sm:$0xff] }
  0xd3   : > { %v890_v54 = vsub.f32 %v3600_v39, %v857_v22  ;;  %v1037_v27 = vpack.c.bf16 %v961_v57, %v959_v63  ;;  %v4360_v25 = vunpack.c.2.s8 %v3370_v59  ;;  %v3628_v51 = vpop.eup %2826  ;;  %2844 = vpow2.f32 %v939_v15  ;;  %v4364_v15 = vld [vmem:[#allocation6_spill] sm:$0xff] }
  0xd4   : > { %v947_v1 = vmul.f32 1.442695, %v887_v30  ;;  %v1040_v58 = vpack.c.bf16 %v966_v45, %v964_v26  ;;  %v993_v2 = vadd.f32 %v960_v55, %v959_v63  ;;  %v3630_v4 = vpop.eup %2828  ;;  %2846 = vpow2.f32 %v941_v10 }
  0xd5   : > { %v3626_v20 = vcvt.s32.f32 %v4360_v25  ;;  %1188 = vmatmul.mubr.bf16.gmra.mrb[4].mxu0 %v1037_v27  ;;  %v1252_v53 = vpop.permute.xlu1 %1251  ;;  %v1248_v36 = vpop.permute.xlu0 %1247  ;;  %v987_v39 = vadd.f32 %v3583_v23, %v3579_v17  ;;  %v963_v41 = vmul.f32 %v2815_v6, %v3359_v37  ;;  %v456_v34 = vunpack.c.3.s8 %v3370_v59  ;;  %v4363_v17 = vld [vmem:[#allocation5_spill] sm:$0xff]  ;;  %v4367_v25 = vld [vmem:[#allocation10_spill] sm:$0xff] }
  0xd6   : > { %v2831_v47 = vpop.eup %2830  ;;  %2848 = vpow2.f32 %v945_v29  ;;  %v951_v7 = vmul.f32 1.442695, %v889_v33  ;;  %v949_v24 = vmul.f32 1.442695, %v888_v56  ;;  %1195 = vmatprep.mubr.bf16.mxu0 %v1040_v58  ;;  %v1321_v55 = vadd.f32 %v3355_v35, %v1248_v36  ;;  %994 = vadd.xlane.f32.xlu0 %v993_v2 }
  0xd7   : > { %4361 = vst [vmem:[#allocation22_spill] sm:$0xff] %v3626_v20  ;;  %v1323_v21 = vadd.f32 %v3355_v35, %v1252_v53  ;;  %v3639_v62 = vadd.f32 %v4362_v42, %v1252_v53  ;;  %v1322_v49 = vadd.f32 %v4362_v42, %v1248_v36  ;;  %988 = vadd.xlane.f32.xlu1 %v987_v39  ;;  %v2833_v6 = vpop.eup %2832  ;;  %v953_v44 = vmul.f32 1.442695, %v890_v54  ;;  %v4368_v39 = vld [vmem:[#allocation11_spill] sm:$0xff] }
  0xd8   : > { %v965_v23 = vmul.f32 %v3594_v5, %v4363_v17  ;;  %2850 = vpow2.f32 %v947_v1  ;;  %v1385_v48 = vmul.f32 0.2, %v1321_v55  ;;  %v999_v43 = vadd.f32 %v964_v26, %v963_v41  ;;  %v3644_v50 = vpop.eup %2834  ;;  %v4366_v5 = vld [vmem:[#allocation8_spill] sm:$0xff] }
  0xd9   : > { %v1386_v16 = vmul.f32 0.2, %v1322_v49  ;;  %v1722_v52 = vpop.permute.xlu1 %1721  ;;  %v1706_v63 = vpop.permute.xlu0 %1705  ;;  %v968_v22 = vmul.f32 %v2825_v0, %v4364_v15  ;;  %v970_v29 = vmul.f32 %v2821_v3, %v4365_v40  ;;  %v996_v10 = vadd.f32 %v3592_v61, %v961_v57 }
  0xda   : > { %v3649_v30 = vpop.eup %2836  ;;  %2852 = vpow2.f32 %v949_v24  ;;  %1000 = vadd.xlane.f32.xlu0 %v999_v43  ;;  %2677 = vmatprep.subr.bf16.mxu1 %v1722_v52  ;;  %vm1353_vm0 = vcmp.gt.f32.partialorder %v1321_v55, 0.0  ;;  %vm1354_vm1 = vcmp.gt.f32.partialorder %v1322_v49, 0.0  ;;  %v3652_v26 = vmul.f32 %v2823_v46, %v4366_v5 }
  0xdb   : > { %v2839_v33 = vpop.eup %2838  ;;  %v1387_v56 = vmul.f32 0.2, %v1323_v21  ;;  %v1388_v54 = vmul.f32 0.2, %v3639_v62  ;;  %v1039_v27 = vpack.c.bf16 %v965_v23, %v963_v41  ;;  %997 = vadd.xlane.f32.xlu1 %v996_v10  ;;  %2678 = vmatpush3.bf16.msra.mxu1 %v1706_v63  ;;  %v1002_v3 = vadd.f32 %v966_v45, %v965_v23  ;;  %v4369_v45 = vld [vmem:[#allocation9_spill] sm:$0xff]  ;;  %v4372_v10 = vld [vmem:[#allocation15_spill] sm:$0xff] }
  0xdc   : > { %v2841_v0 = vpop.eup %2840  ;;  %v1042_v61 = vpack.c.bf16 %v970_v29, %v968_v22  ;;  %v1005_v57 = vadd.f32 %v968_v22, %v3652_v26  ;;  %vm1355_vm2 = vcmp.gt.f32.partialorder %v1323_v21, 0.0  ;;  %v3657_v1 = vmul.f32 %v2831_v47, %v4367_v25 }
  0xdd   : > { %v3659_v58 = vpop.eup %2842  ;;  %1196 = vmatmul.mubr.bf16.gmra.mrb[8].mxu0 %v1039_v27  ;;  %v1724_v46 = vpop.permute.xlu1 %1723  ;;  %v1417_v2 = vsel %vm1353_vm0, %v1321_v55, %v1385_v48  ;;  %v1418_v53 = vsel %vm1354_vm1, %v1322_v49, %v1386_v16  ;;  %v972_v41 = vmul.f32 %v2833_v6, %v4368_v39  ;;  %v969_v24 = vmul.f32 %v3616_v38, %v4369_v45  ;;  %v4370_v49 = vld [vmem:[#allocation12_spill] sm:$0xff]  ;;  %v4371_v48 = vld [vmem:[#allocation14_spill] sm:$0xff] }
  0xde   : > { %v1451_v36 = vpop.permute.xlu0 %1450  ;;  %v2845_v23 = vpop.eup %2844  ;;  %2854 = vpow2.f32 %v951_v7  ;;  %1203 = vmatprep.mubr.bf16.mxu0 %v1042_v61  ;;  %1006 = vadd.xlane.f32.xlu0 %v1005_v57  ;;  %vm1356_vm3 = vcmp.gt.f32.partialorder %v3639_v62, 0.0  ;;  %v1419_v55 = vsel %vm1355_vm2, %v1323_v21, %v1387_v56  ;;  %v974_v6 = vmul.f32 %v3630_v4, %v4370_v49  ;;  %v4373_v21 = vld [vmem:[#allocation13_spill] sm:$0xff]  ;;  %v4374_v4 = vld [vmem:[#allocation18_spill] sm:$0xff] }
  0xdf   : > { %v1513_v43 = vsub.f32 %v1417_v2, %v1451_v36  ;;  %v1514_v47 = vsub.f32 %v1418_v53, %v1451_v36  ;;  %v2847_v52 = vpop.eup %2846  ;;  %2856 = vpow2.f32 %v953_v44  ;;  %2679 = vmatprep.subr.bf16.mxu1 %v1724_v46  ;;  %1003 = vadd.xlane.f32.xlu1 %v1002_v3  ;;  %v3671_v16 = vmul.f32 %v2839_v33, %v4371_v48 }
  0xe0   : > { %v2849_v38 = vpop.eup %2848  ;;  %v1011_v22 = vadd.f32 %v972_v41, %v3657_v1  ;;  %v3675_v27 = vmul.f32 %v2841_v0, %v4372_v10  ;;  %v1420_v44 = vsel %vm1356_vm3, %v3639_v62, %v1388_v54  ;;  %v1008_v57 = vadd.f32 %v970_v29, %v969_v24  ;;  %v4375_v0 = vld [vmem:[#allocation19_spill] sm:$0xff] }
  0xe1   : > { %v1545_v7 = vmul.f32 1.442695, %v1513_v43  ;;  %v1547_v63 = vmul.f32 1.442695, %v1514_v47  ;;  %v1455_v61 = vpop.permute.xlu1 %1454  ;;  %v3680_v56 = vmul.f32 %v3628_v51, %v4373_v21  ;;  %v3683_v33 = vmul.f32 %v2845_v23, %v4374_v4 }
  0xe2   : > { %v1708_v3 = vpop.permute.xlu0 %1707  ;;  %v2851_v46 = vpop.eup %2850  ;;  %v1515_v2 = vsub.f32 %v1419_v55, %v1455_v61  ;;  %v1516_v53 = vsub.f32 %v1420_v44, %v1455_v61  ;;  %1012 = vadd.xlane.f32.xlu0 %v1011_v22  ;;  %v3686_v36 = vmul.f32 %v2847_v52, %v4375_v0  ;;  %v1041_v62 = vpack.c.bf16 %v969_v24, %v3652_v26  ;;  %v4377_v26 = vld [vmem:[#allocation16_spill] sm:$0xff]  ;;  %v4378_v22 = vld [vmem:[#allocation17_spill] sm:$0xff] }
  0xe3   : > { %2858 = vpow2.f32 %v1545_v7  ;;  %2680 = vmatpush3.bf16.msra.mxu1 %v1708_v3  ;;  %1009 = vadd.xlane.f32.xlu1 %v1008_v57  ;;  %v3691_v51 = vcvt.s32.f32 %v455_v32  ;;  %v457_v29 = vunpack.c.3.s8 %v3373_v60  ;;  %v1044_v47 = vpack.c.bf16 %v974_v6, %v972_v41  ;;  %v4379_v57 = vld [vmem:[#allocation20_spill] sm:$0xff] }
  0xe4   : > { %2860 = vpow2.f32 %v1547_v63  ;;  %v2853_v54 = vpop.eup %2852  ;;  %v1549_v23 = vmul.f32 1.442695, %v1515_v2  ;;  %v1551_v43 = vmul.f32 1.442695, %v1516_v53  ;;  %v1017_v55 = vadd.f32 %v3675_v27, %v3671_v16  ;;  %v4380_v53 = vld [vmem:[#allocation21_spill] sm:$0xff] }
  0xe5   : > { %4376 = vst [vmem:[#allocation4_spill] sm:$0xff] %v3691_v51  ;;  %1204 = vmatmul.mubr.bf16.gmra.mrb[12].mxu0 %v1041_v62  ;;  %v1256_v52 = vpop.permute.xlu1 %1255  ;;  %v1014_v63 = vadd.f32 %v974_v6, %v3680_v56  ;;  %v978_v24 = vmul.f32 %v3649_v30, %v4377_v26  ;;  %v3701_v32 = vmul.f32 %v3644_v50, %v4378_v22  ;;  %v3705_v60 = vcvt.s32.f32 %v456_v34 }
  0xe6   : > { %v1260_v7 = vpop.permute.xlu0 %1259  ;;  %2862 = vpow2.f32 %v1549_v23  ;;  %1211 = vmatprep.mubr.bf16.mxu0 %v1044_v47  ;;  %v1325_v41 = vadd.f32 %v3355_v35, %v1256_v52  ;;  %v1326_v44 = vadd.f32 %v4362_v42, %v1256_v52  ;;  %1018 = vadd.xlane.f32.xlu0 %v1017_v55  ;;  %v1023_v6 = vadd.f32 %v3686_v36, %v3683_v33 }
  0xe7   : > { %2864 = vpow2.f32 %v1551_v43  ;;  %v1327_v30 = vadd.f32 %v3355_v35, %v1260_v7  ;;  %1015 = vadd.xlane.f32.xlu1 %v1014_v63  ;;  %v3713_v50 = vmul.f32 %v2851_v46, %v3626_v20  ;;  %v3716_v59 = vmul.f32 %v2853_v54, %v3691_v51 }
  0xe8   : > { %v2855_v34 = vpop.eup %2854  ;;  %v1389_v61 = vmul.f32 0.2, %v1325_v41  ;;  %v1328_v3 = vadd.f32 %v4362_v42, %v1260_v7  ;;  %v3721_v2 = vmul.f32 %v3659_v58, %v4379_v57  ;;  %v3724_v62 = vmul.f32 %v2849_v38, %v4380_v53 }
  0xe9   : > { %v2857_v23 = vpop.eup %2856  ;;  %v1390_v43 = vmul.f32 0.2, %v1326_v44  ;;  %v1726_v47 = vpop.permute.xlu1 %1725  ;;  %v1020_v46 = vadd.f32 %v978_v24, %v3701_v32  ;;  %vm1357_vm4 = vcmp.gt.f32.partialorder %v1325_v41, 0.0  ;;  %v3727_v54 = vcvt.s32.f32 %v457_v29 }
  0xea   : > { %v1710_v55 = vpop.permute.xlu0 %1709  ;;  %1024 = vadd.xlane.f32.xlu0 %v1023_v6  ;;  %2681 = vmatprep.subr.bf16.mxu1 %v1726_v47  ;;  %vm1358_vm5 = vcmp.gt.f32.partialorder %v1326_v44, 0.0  ;;  %v1391_v52 = vmul.f32 0.2, %v1327_v30  ;;  %v1043_v58 = vpack.c.bf16 %v3680_v56, %v3657_v1  ;;  %v1046_v7 = vpack.c.bf16 %v978_v24, %v3675_v27 }
  0xeb   : > { %1021 = vadd.xlane.f32.xlu1 %v1020_v46  ;;  %2682 = vmatpush3.bf16.msra.mxu1 %v1710_v55  ;;  %v1029_v38 = vadd.f32 %v3716_v59, %v3713_v50  ;;  %v1392_v51 = vmul.f32 0.2, %v1328_v3  ;;  %v1421_v20 = vsel %vm1357_vm4, %v1325_v41, %v1389_v61  ;;  %v1026_v29 = vadd.f32 %v3724_v62, %v3721_v2 }
  0xec   : > { %vm1359_vm6 = vcmp.gt.f32.partialorder %v1327_v30, 0.0  ;;  %v1422_v53 = vsel %vm1358_vm5, %v1326_v44, %v1390_v43  ;;  %v3740_v27 = vmul.f32 %v2855_v34, %v3705_v60  ;;  %v3743_v56 = vmul.f32 %v2857_v23, %v3727_v54 }
  0xed   : > { %v2859_v63 = vpop.eup %2858  ;;  %1212 = vmatmul.mubr.bf16.gmra.mrb[16].mxu0 %v1043_v58  ;;  %v1728_v47 = vpop.permute.xlu1 %1727  ;;  %vm1360_vm7 = vcmp.gt.f32.partialorder %v1328_v3, 0.0  ;;  %v1423_v58 = vsel %vm1359_vm6, %v1327_v30, %v1391_v52 }
  0xee   : > { %v2861_v6 = vpop.eup %2860  ;;  %v1459_v57 = vpop.permute.xlu0 %1458  ;;  %v3737_v1 = vmul.f32 %v2859_v63, %v3331_v11  ;;  %1219 = vmatprep.mubr.bf16.mxu0 %v1046_v7  ;;  %1030 = vadd.xlane.f32.xlu0 %v1029_v38  ;;  %v1424_v23 = vsel %vm1360_vm7, %v1328_v3, %v1392_v51  ;;  %v1045_v38 = vpack.c.bf16 %v3701_v32, %v3671_v16 }
  0xef   : > { %v1517_v24 = vsub.f32 %v1421_v20, %v1459_v57  ;;  %v1518_v41 = vsub.f32 %v1422_v53, %v1459_v57  ;;  %v1610_v61 = vmul.f32 %v2861_v6, %v3327_v8  ;;  %2683 = vmatprep.subr.bf16.mxu1 %v1728_v47  ;;  %1027 = vadd.xlane.f32.xlu1 %v1026_v29 }
  0xf0   : > { %v2863_v44 = vpop.eup %2862  ;;  %v1032_v20 = vadd.f32 %v3743_v56, %v3740_v27  ;;  %v1048_v51 = vpack.c.bf16 %v3724_v62, %v3686_v36 }
  0xf1   : > { %v1553_v43 = vmul.f32 1.442695, %v1517_v24  ;;  %v1555_v55 = vmul.f32 1.442695, %v1518_v41  ;;  %v1641_v11 = vadd.f32 %v1610_v61, %v3737_v1  ;;  %v2865_v46 = vpop.eup %2864  ;;  %v1463_v34 = vpop.permute.xlu1 %1462  ;;  %v3751_v57 = vmul.f32 %v2863_v44, %v3333_v12 }
  0xf2   : > { %v1712_v63 = vpop.permute.xlu0 %1711  ;;  %v1519_v8 = vsub.f32 %v1423_v58, %v1463_v34  ;;  %v1520_v53 = vsub.f32 %v1424_v23, %v1463_v34  ;;  %v1612_v7 = vmul.f32 %v2865_v46, %v3329_v9  ;;  %v1050_v44 = vpack.c.bf16 %v3743_v56, %v3716_v59 }
  0xf3   : > { %2866 = vpow2.f32 %v1553_v43  ;;  %1642 = vadd.xlane.f32.xlu0 %v1641_v11  ;;  %2684 = vmatpush3.bf16.msra.mxu1 %v1712_v63 }
  0xf4   : > { %2868 = vpow2.f32 %v1555_v55  ;;  %1033 = vadd.xlane.f32.xlu1 %v1032_v20  ;;  %v1557_v30 = vmul.f32 1.442695, %v1519_v8  ;;  %v1559_v3 = vmul.f32 1.442695, %v1520_v53  ;;  %v1690_v52 = vpack.c.bf16 %v1612_v7, %v1610_v61 }
  0xf5   : > { %v1644_v12 = vadd.f32 %v1612_v7, %v3751_v57  ;;  %1220 = vmatmul.mubr.bf16.gmra.mrb[20].mxu0 %v1045_v38  ;;  %v1264_v29 = vpop.permute.xlu1 %1263  ;;  %v1047_v61 = vpack.c.bf16 %v3721_v2, %v3683_v33  ;;  %v2981_v8 = vmov 0.0  }
  0xf6   : > { %v1268_v6 = vpop.permute.xlu0 %1267  ;;  %2870 = vpow2.f32 %v1557_v30  ;;  %1227 = vmatprep.mubr.bf16.mxu0 %v1048_v51  ;;  %v1329_v9 = vadd.f32 %v3355_v35, %v1264_v29  ;;  %v1330_v47 = vadd.f32 %v4362_v42, %v1264_v29  ;;  %1785 = vmatprep.mubr.bf16.mxu1 %v1690_v52  ;;  %385 = vst.msk [vmem:[#allocation2] sm:$0xff] %vm384_vm10, %v2981_v8  ;;  %386 = vst.msk [vmem:[#allocation2 + $0x8] sm:$0xff] %vm384_vm10, %v2981_v8 }
  0xf7   : > { %2872 = vpow2.f32 %v1559_v3  ;;  %v1331_v16 = vadd.f32 %v3355_v35, %v1268_v6  ;;  %v1332_v36 = vadd.f32 %v4362_v42, %v1268_v6  ;;  %387 = vst.msk [vmem:[#allocation2 + $0x10] sm:$0xff] %vm384_vm10, %v2981_v8  ;;  %388 = vst.msk [vmem:[#allocation2 + $0x18] sm:$0xff] %vm384_vm10, %v2981_v8 }
  0xf8   : > { %1645 = vadd.xlane.f32.xlu1 %v1644_v12  ;;  %v1393_v32 = vmul.f32 0.2, %v1329_v9  ;;  %v1394_v62 = vmul.f32 0.2, %v1330_v47  ;;  %vm1361_vm8 = vcmp.gt.f32.partialorder %v1329_v9, 0.0  ;;  %vm1362_vm9 = vcmp.gt.f32.partialorder %v1330_v47, 0.0 }
  0xf9   : > { %v1730_v24 = vpop.permute.xlu1 %1729  ;;  %v1395_v55 = vmul.f32 0.2, %v1331_v16  ;;  %v1396_v11 = vmul.f32 0.2, %v1332_v36  ;;  %vm1363_vm11 = vcmp.gt.f32.partialorder %v1331_v16, 0.0  ;;  %389 = vst.msk [vmem:[#allocation2 + $0x20] sm:$0xff] %vm384_vm10, %v2981_v8 }
  0xfa   : > { %v1714_v41 = vpop.permute.xlu0 %1713  ;;  %2685 = vmatprep.subr.bf16.mxu1 %v1730_v24  ;;  %v1425_v58 = vsel %vm1361_vm8, %v1329_v9, %v1393_v32  ;;  %v1426_v23 = vsel %vm1362_vm9, %v1330_v47, %v1394_v62  ;;  %390 = vst.msk [vmem:[#allocation2 + $0x28] sm:$0xff] %vm384_vm10, %v2981_v8  ;;  %391 = vst.msk [vmem:[#allocation2 + $0x30] sm:$0xff] %vm384_vm10, %v2981_v8  ;;  %vm1364_vm12 = vcmp.gt.f32.partialorder %v1332_v36, 0.0 }
  0xfb   : > { %2686 = vmatpush3.bf16.msra.mxu1 %v1714_v41  ;;  %392 = vst.msk [vmem:[#allocation2 + $0x38] sm:$0xff] %vm384_vm10, %v2981_v8  ;;  %393 = vst.msk [vmem:[#allocation2 + $0x40] sm:$0xff] %vm384_vm10, %v2981_v8  ;;  %v1427_v30 = vsel %vm1363_vm11, %v1331_v16, %v1395_v55  ;;  %v1428_v3 = vsel %vm1364_vm12, %v1332_v36, %v1396_v11  ;;  %v1049_v9 = vpack.c.bf16 %v3740_v27, %v3713_v50 }
  0xfc   : > { %394 = vst.msk [vmem:[#allocation2 + $0x48] sm:$0xff] %vm384_vm10, %v2981_v8  ;;  %395 = vst.msk [vmem:[#allocation2 + $0x50] sm:$0xff] %vm384_vm10, %v2981_v8 }
  0xfd   : > { %v2867_v43 = vpop.eup %2866  ;;  %1228 = vmatmul.mubr.bf16.gmra.mrb[24].mxu0 %v1047_v61  ;;  %v1732_v34 = vpop.permute.xlu1 %1731  ;;  %396 = vst.msk [vmem:[#allocation2 + $0x58] sm:$0xff] %vm384_vm10, %v2981_v8  ;;  %397 = vst.msk [vmem:[#allocation2 + $0x60] sm:$0xff] %vm384_vm10, %v2981_v8 }
  0xfe   : > { %v2869_v46 = vpop.eup %2868  ;;  %v1467_v63 = vpop.permute.xlu0 %1466  ;;  %v3768_v20 = vmul.f32 %v2867_v43, %v3342_v18  ;;  %398 = vst.msk [vmem:[#allocation2 + $0x68] sm:$0xff] %vm384_vm10, %v2981_v8  ;;  %399 = vst.msk [vmem:[#allocation2 + $0x70] sm:$0xff] %vm384_vm10, %v2981_v8  ;;  %1235 = vmatprep.mubr.bf16.mxu0 %v1050_v44  ;;  %2687 = vmatprep.subr.bf16.mxu1 %v1732_v34 }
  0xff   : > { %400 = vst.msk [vmem:[#allocation2 + $0x78] sm:$0xff] %vm384_vm10, %v2981_v8  ;;  %v1521_v18 = vsub.f32 %v1425_v58, %v1467_v63  ;;  %v1522_v33 = vsub.f32 %v1426_v23, %v1467_v63  ;;  %v3803_v59 = vmul.f32 %v2869_v46, %v3335_v13 }
 0x100   : > { %v2871_v2 = vpop.eup %2870 }
 0x101   : > { %v1561_v56 = vmul.f32 1.442695, %v1521_v18  ;;  %v1563_v53 = vmul.f32 1.442695, %v1522_v33  ;;  %v1647_v7 = vadd.f32 %v3803_v59, %v3768_v20  ;;  %v2873_v38 = vpop.eup %2872  ;;  %v1471_v51 = vpop.permute.xlu1 %1470  ;;  %v3809_v12 = vmul.f32 %v2871_v2, %v3344_v19 }
 0x102   : > { %v1716_v52 = vpop.permute.xlu0 %1715  ;;  %v1523_v29 = vsub.f32 %v1427_v30, %v1471_v51  ;;  %v1524_v6 = vsub.f32 %v1428_v3, %v1471_v51  ;;  %v3812_v13 = vmul.f32 %v2873_v38, %v3337_v14 }
 0x103   : > { %2874 = vpow2.f32 %v1561_v56  ;;  %1648 = vadd.xlane.f32.xlu0 %v1647_v7  ;;  %2688 = vmatpush3.bf16.msra.mxu1 %v1716_v52 }
 0x104   : > { %2876 = vpow2.f32 %v1563_v53  ;;  %v1565_v47 = vmul.f32 1.442695, %v1523_v29  ;;  %v1567_v32 = vmul.f32 1.442695, %v1524_v6  ;;  %v1650_v16 = vadd.f32 %v3812_v13, %v3809_v12 }
 0x105   : > { %1236 = vmatmul.mubr.bf16.gmra.mrb[28].mxu0 %v1049_v9  ;;  %v1272_v19 = vpop.permute.xlu1 %1271 }
 0x106   : > { %v1276_v36 = vpop.permute.xlu0 %1275  ;;  %2878 = vpow2.f32 %v1565_v47  ;;  %v1333_v62 = vadd.f32 %v3355_v35, %v1272_v19  ;;  %v1334_v24 = vadd.f32 %v4362_v42, %v1272_v19  ;;  %1651 = vadd.xlane.f32.xlu1 %v1650_v16 }
 0x107   : > { %2880 = vpow2.f32 %v1567_v32  ;;  %v1335_v14 = vadd.f32 %v3355_v35, %v1276_v36  ;;  %v1336_v41 = vadd.f32 %v4362_v42, %v1276_v36  ;;  %v1689_v32 = vpack.c.bf16 %v3751_v57, %v3737_v1 }
 0x108   : > { %v1397_v61 = vmul.f32 0.2, %v1333_v62  ;;  %v1398_v44 = vmul.f32 0.2, %v1334_v24  ;;  %vm1365_vm13 = vcmp.gt.f32.partialorder %v1333_v62, 0.0  ;;  %vm1366_vm14 = vcmp.gt.f32.partialorder %v1334_v24, 0.0 }
 0x109   : > { %v1734_v50 = vpop.permute.xlu1 %1733  ;;  %v1399_v55 = vmul.f32 0.2, %v1335_v14  ;;  %v1400_v11 = vmul.f32 0.2, %v1336_v41  ;;  %vm1367_vm15 = vcmp.gt.f32.partialorder %v1335_v14, 0.0  ;;  %vm1368_vm0 = vcmp.gt.f32.partialorder %v1336_v41, 0.0 }
 0x10a   : > { %v1718_v27 = vpop.permute.xlu0 %1717  ;;  %2689 = vmatprep.subr.bf16.mxu1 %v1734_v50  ;;  %v1429_v58 = vsel %vm1365_vm13, %v1333_v62, %v1397_v61  ;;  %v1430_v23 = vsel %vm1366_vm14, %v1334_v24, %v1398_v44  ;;  %v1692_v62 = vpack.c.bf16 %v3812_v13, %v3803_v59  ;;  %v1691_v57 = vpack.c.bf16 %v3809_v12, %v3768_v20 }
 0x10b   : > { %2690 = vmatpush3.bf16.msra.mxu1 %v1718_v27  ;;  %v1431_v52 = vsel %vm1367_vm15, %v1335_v14, %v1399_v55  ;;  %v1432_v29 = vsel %vm1368_vm0, %v1336_v41, %v1400_v11 }
 0x10d   : > { %v2875_v43 = vpop.eup %2874  ;;  %v1736_v34 = vpop.permute.xlu1 %1735 }
 0x10e   : > { %v2877_v46 = vpop.eup %2876  ;;  %v1475_v63 = vpop.permute.xlu0 %1474  ;;  %v3823_v18 = vmul.f32 %v2875_v43, %v3359_v37  ;;  %2691 = vmatprep.subr.bf16.mxu1 %v1736_v34 }
 0x10f   : > { %v1525_v33 = vsub.f32 %v1429_v58, %v1475_v63  ;;  %v1526_v2 = vsub.f32 %v1430_v23, %v1475_v63  ;;  %v3826_v56 = vmul.f32 %v2877_v46, %v3348_v28 }
 0x110   : > { %v2879_v53 = vpop.eup %2878 }
 0x111   : > { %v1569_v7 = vmul.f32 1.442695, %v1525_v33  ;;  %v1571_v38 = vmul.f32 1.442695, %v1526_v2  ;;  %v1653_v51 = vadd.f32 %v3826_v56, %v3823_v18  ;;  %v2881_v30 = vpop.eup %2880  ;;  %v1479_v3 = vpop.permute.xlu1 %1478  ;;  %v3831_v37 = vmul.f32 %v2879_v53, %v4363_v17 }
 0x112   : > { %v1720_v6 = vpop.permute.xlu0 %1719  ;;  %v1527_v9 = vsub.f32 %v1431_v52, %v1479_v3  ;;  %v1528_v47 = vsub.f32 %v1432_v29, %v1479_v3  ;;  %v1620_v28 = vmul.f32 %v2881_v30, %v3350_v31 }
 0x113   : > { %2882 = vpow2.f32 %v1569_v7  ;;  %1654 = vadd.xlane.f32.xlu0 %v1653_v51  ;;  %2692 = vmatpush3.bf16.msra.mxu1 %v1720_v6  ;;  %v1693_v30 = vpack.c.bf16 %v3831_v37, %v3823_v18 }
 0x114   : > { %2884 = vpow2.f32 %v1571_v38  ;;  %v1573_v16 = vmul.f32 1.442695, %v1527_v9  ;;  %v1575_v19 = vmul.f32 1.442695, %v1528_v47  ;;  %v1656_v36 = vadd.f32 %v1620_v28, %v3831_v37 }
 0x115   : > { %v1280_v17 = vpop.permute.xlu1 %1279  ;;  %v1694_v12 = vpack.c.bf16 %v1620_v28, %v3826_v56 }
 0x116   : > { %v1284_v24 = vpop.permute.xlu0 %1283  ;;  %1786 = vmatmul.mubr.bf16.vlgmr.msra.gmra.mrb[0].mxu1 %v1689_v32  ;;  %v1337_v14 = vadd.f32 %v3355_v35, %v1280_v17  ;;  %v1338_v41 = vadd.f32 %v4362_v42, %v1280_v17  ;;  %1657 = vadd.xlane.f32.xlu1 %v1656_v36  ;;  %2886 = vpow2.f32 %v1573_v16 }
 0x117   : > { %v1339_v31 = vadd.f32 %v3355_v35, %v1284_v24  ;;  %1793 = vmatprep.mubr.bf16.mxu1 %v1692_v62  ;;  %v1340_v1 = vadd.f32 %v4362_v42, %v1284_v24  ;;  %2888 = vpow2.f32 %v1575_v19 }
 0x118   : > { %v1401_v50 = vmul.f32 0.2, %v1337_v14  ;;  %v1402_v59 = vmul.f32 0.2, %v1338_v41  ;;  %vm1369_vm1 = vcmp.gt.f32.partialorder %v1337_v14, 0.0  ;;  %vm1370_vm2 = vcmp.gt.f32.partialorder %v1338_v41, 0.0 }
 0x119   : > { %v1403_v13 = vmul.f32 0.2, %v1339_v31  ;;  %v1404_v27 = vmul.f32 0.2, %v1340_v1  ;;  %v1483_v61 = vpop.permute.xlu1 %1482  ;;  %vm1371_vm3 = vcmp.gt.f32.partialorder %v1339_v31, 0.0  ;;  %vm1372_vm4 = vcmp.gt.f32.partialorder %v1340_v1, 0.0 }
 0x11a   : > { %v1487_v44 = vpop.permute.xlu0 %1486  ;;  %v1433_v43 = vsel %vm1369_vm1, %v1337_v14, %v1401_v50  ;;  %v1434_v55 = vsel %vm1370_vm2, %v1338_v41, %v1402_v59  ;;  %vm1866_vm2 = vcmask 7168  }
 0x11b   : > { %v1435_v11 = vsel %vm1371_vm3, %v1339_v31, %v1403_v13  ;;  %v1529_v46 = vsub.f32 %v1433_v43, %v1483_v61  ;;  %v1530_v34 = vsub.f32 %v1434_v55, %v1483_v61  ;;  %v1436_v58 = vsel %vm1372_vm4, %v1340_v1, %v1404_v27 }
 0x11c   : > { %v1531_v23 = vsub.f32 %v1435_v11, %v1487_v44  ;;  %v1532_v20 = vsub.f32 %v1436_v58, %v1487_v44  ;;  %vm1996_vm3 = vcmask 130048   ;;  %vm2415_vm4 = vcmask 257024  }
 0x11d   : > { %v2883_v63 = vpop.eup %2882  ;;  %v1577_v2 = vmul.f32 1.442695, %v1529_v46  ;;  %v1579_v53 = vmul.f32 1.442695, %v1530_v34  ;;  %v1288_v38 = vpop.permute.xlu1 %1287 }
 0x11e   : > { %v2885_v33 = vpop.eup %2884  ;;  %v1581_v7 = vmul.f32 1.442695, %v1531_v23  ;;  %v1292_v51 = vpop.permute.xlu0 %1291  ;;  %1794 = vmatmul.mubr.bf16.gmra.mrb[4].mxu1 %v1691_v57  ;;  %v1583_v3 = vmul.f32 1.442695, %v1532_v20  ;;  %v1341_v52 = vadd.f32 %v3355_v35, %v1288_v38  ;;  %v1342_v29 = vadd.f32 %v4362_v42, %v1288_v38 }
 0x11f   : > { %v1343_v6 = vadd.f32 %v3355_v35, %v1292_v51  ;;  %1801 = vmatprep.mubr.bf16.mxu1 %v1694_v12  ;;  %2890 = vpow2.f32 %v1577_v2  ;;  %v1344_v56 = vadd.f32 %v4362_v42, %v1292_v51  ;;  %v3853_v9 = vmul.f32 %v2883_v63, %v4366_v5 }
 0x120   : > { %v1622_v47 = vmul.f32 %v2885_v33, %v4364_v15  ;;  %2892 = vpow2.f32 %v1579_v53  ;;  %v1405_v28 = vmul.f32 0.2, %v1341_v52  ;;  %v1406_v32 = vmul.f32 0.2, %v1342_v29  ;;  %v2887_v37 = vpop.eup %2886 }
 0x121   : > { %v1407_v18 = vmul.f32 0.2, %v1343_v6  ;;  %2894 = vpow2.f32 %v1581_v7  ;;  %v1408_v16 = vmul.f32 0.2, %v1344_v56  ;;  %vm1373_vm5 = vcmp.gt.f32.partialorder %v1341_v52, 0.0  ;;  %v1491_v19 = vpop.permute.xlu1 %1490  ;;  %v2889_v62 = vpop.eup %2888 }
 0x122   : > { %vm1374_vm6 = vcmp.gt.f32.partialorder %v1342_v29, 0.0  ;;  %v1495_v36 = vpop.permute.xlu0 %1494  ;;  %2896 = vpow2.f32 %v1583_v3  ;;  %v1437_v17 = vsel %vm1373_vm5, %v1341_v52, %v1405_v28  ;;  %vm1375_vm7 = vcmp.gt.f32.partialorder %v1343_v6, 0.0 }
 0x123   : > { %v1438_v24 = vsel %vm1374_vm6, %v1342_v29, %v1406_v32  ;;  %v1533_v5 = vsub.f32 %v1437_v17, %v1491_v19  ;;  %vm1376_vm8 = vcmp.gt.f32.partialorder %v1344_v56, 0.0  ;;  %v1439_v15 = vsel %vm1375_vm7, %v1343_v6, %v1407_v18 }
 0x124   : > { %v1534_v14 = vsub.f32 %v1438_v24, %v1491_v19  ;;  %v1440_v41 = vsel %vm1376_vm8, %v1344_v56, %v1408_v16  ;;  %v1535_v31 = vsub.f32 %v1439_v15, %v1495_v36  ;;  %v1659_v1 = vadd.f32 %v1622_v47, %v3853_v9 }
 0x125   : > { %v1623_v57 = vmul.f32 %v2887_v37, %v4369_v45  ;;  %v1585_v50 = vmul.f32 1.442695, %v1533_v5  ;;  %v1536_v13 = vsub.f32 %v1440_v41, %v1495_v36  ;;  %v1296_v27 = vpop.permute.xlu1 %1295  ;;  %v1624_v44 = vmul.f32 %v2889_v62, %v4365_v40 }
 0x126   : > { %v1587_v59 = vmul.f32 1.442695, %v1534_v14  ;;  %v1300_v61 = vpop.permute.xlu0 %1299  ;;  %1802 = vmatmul.mubr.bf16.gmra.mrb[8].mxu1 %v1693_v30  ;;  %v1589_v43 = vmul.f32 1.442695, %v1535_v31  ;;  %1660 = vadd.xlane.f32.xlu0 %v1659_v1  ;;  %v1345_v55 = vadd.f32 %v3355_v35, %v1296_v27  ;;  %v1346_v11 = vadd.f32 %v4362_v42, %v1296_v27 }
 0x127   : > { %v1347_v46 = vadd.f32 %v3355_v35, %v1300_v61  ;;  %2898 = vpow2.f32 %v1585_v50  ;;  %v1591_v34 = vmul.f32 1.442695, %v1536_v13  ;;  %v1348_v45 = vadd.f32 %v4362_v42, %v1300_v61 }
 0x128   : > { %v1662_v58 = vadd.f32 %v1624_v44, %v1623_v57  ;;  %2900 = vpow2.f32 %v1587_v59  ;;  %v1409_v23 = vmul.f32 0.2, %v1345_v55  ;;  %v1410_v63 = vmul.f32 0.2, %v1346_v11 }
 0x129   : > { %v1411_v20 = vmul.f32 0.2, %v1347_v46  ;;  %v2891_v12 = vpop.eup %2890  ;;  %2902 = vpow2.f32 %v1589_v43  ;;  %v1412_v40 = vmul.f32 0.2, %v1348_v45  ;;  %v1696_v33 = vpack.c.bf16 %v1624_v44, %v1622_v47  ;;  %v1499_v2 = vpop.permute.xlu1 %1498 }
 0x12a   : > { %1663 = vadd.xlane.f32.xlu1 %v1662_v58  ;;  %vm1377_vm9 = vcmp.gt.f32.partialorder %v1345_v55, 0.0  ;;  %v1503_v53 = vpop.permute.xlu0 %1502  ;;  %v2893_v7 = vpop.eup %2892  ;;  %2904 = vpow2.f32 %v1591_v34  ;;  %vm1378_vm11 = vcmp.gt.f32.partialorder %v1346_v11, 0.0  ;;  %vm1379_vm12 = vcmp.gt.f32.partialorder %v1347_v46, 0.0 }
 0x12b   : > { %v1441_v38 = vsel %vm1377_vm9, %v1345_v55, %v1409_v23  ;;  %v2895_v51 = vpop.eup %2894  ;;  %1809 = vmatprep.mubr.bf16.mxu1 %v1696_v33  ;;  %v1442_v30 = vsel %vm1378_vm11, %v1346_v11, %v1410_v63  ;;  %vm1380_vm13 = vcmp.gt.f32.partialorder %v1348_v45, 0.0  ;;  %v1443_v52 = vsel %vm1379_vm12, %v1347_v46, %v1411_v20 }
 0x12c   : > { %v1537_v3 = vsub.f32 %v1441_v38, %v1499_v2  ;;  %v2897_v29 = vpop.eup %2896  ;;  %v1538_v6 = vsub.f32 %v1442_v30, %v1499_v2  ;;  %v1444_v56 = vsel %vm1380_vm13, %v1348_v45, %v1412_v40  ;;  %v1539_v28 = vsub.f32 %v1443_v52, %v1503_v53 }
 0x12d   : > { %v1695_v47 = vpack.c.bf16 %v1623_v57, %v3853_v9  ;;  %v1540_v18 = vsub.f32 %v1444_v56, %v1503_v53  ;;  %v1304_v37 = vpop.permute.xlu1 %1303  ;;  %v1626_v19 = vmul.f32 %v2893_v7, %v4368_v39  ;;  %v1628_v36 = vmul.f32 %v2897_v29, %v4370_v49 }
 0x12e   : > { %v1593_v32 = vmul.f32 1.442695, %v1537_v3  ;;  %v1308_v16 = vpop.permute.xlu0 %1307  ;;  %v1595_v62 = vmul.f32 1.442695, %v1538_v6  ;;  %v1597_v17 = vmul.f32 1.442695, %v1539_v28  ;;  %v1349_v24 = vadd.f32 %v3355_v35, %v1304_v37 }
 0x12f   : > { %v1350_v5 = vadd.f32 %v4362_v42, %v1304_v37  ;;  %1810 = vmatmul.mubr.bf16.gmra.mrb[12].mxu1 %v1695_v47  ;;  %v1599_v14 = vmul.f32 1.442695, %v1540_v18  ;;  %v1351_v15 = vadd.f32 %v3355_v35, %v1308_v16  ;;  %v1352_v9 = vadd.f32 %v4362_v42, %v1308_v16  ;;  %v4382_v28 = vld [vmem:[#allocation21_spill] sm:$0xff] }
 0x130   : > { %2906 = vpow2.f32 %v1593_v32  ;;  %v1413_v41 = vmul.f32 0.2, %v1349_v24  ;;  %v1698_v1 = vpack.c.bf16 %v1628_v36, %v1626_v19  ;;  %v1625_v50 = vmul.f32 %v2891_v12, %v4367_v25 }
 0x131   : > { %2908 = vpow2.f32 %v1595_v62  ;;  %v1414_v31 = vmul.f32 0.2, %v1350_v5  ;;  %v2899_v39 = vpop.eup %2898  ;;  %v1415_v49 = vmul.f32 0.2, %v1351_v15  ;;  %v1416_v57 = vmul.f32 0.2, %v1352_v9  ;;  %v1507_v59 = vpop.permute.xlu1 %1506 }
 0x132   : > { %2910 = vpow2.f32 %v1597_v17  ;;  %v2901_v13 = vpop.eup %2900  ;;  %1817 = vmatprep.mubr.bf16.mxu1 %v1698_v1  ;;  %v1627_v27 = vmul.f32 %v2895_v51, %v4373_v21  ;;  %vm1381_vm14 = vcmp.gt.f32.partialorder %v1349_v24, 0.0  ;;  %vm1382_vm15 = vcmp.gt.f32.partialorder %v1350_v5, 0.0  ;;  %v1511_v43 = vpop.permute.xlu0 %1510 }
 0x133   : > { %2912 = vpow2.f32 %v1599_v14  ;;  %v2903_v35 = vpop.eup %2902  ;;  %v1665_v42 = vadd.f32 %v1626_v19, %v1625_v50  ;;  %v1445_v61 = vsel %vm1381_vm14, %v1349_v24, %v1413_v41  ;;  %v1446_v44 = vsel %vm1382_vm15, %v1350_v5, %v1414_v31  ;;  %v4383_v19 = vld [vmem:[#allocation22_spill] sm:$0xff] }
 0x134   : > { %vm1383_vm0 = vcmp.gt.f32.partialorder %v1351_v15, 0.0  ;;  %v2905_v55 = vpop.eup %2904  ;;  %v1668_v11 = vadd.f32 %v1628_v36, %v1627_v27  ;;  %v1541_v46 = vsub.f32 %v1445_v61, %v1507_v59  ;;  %v1542_v34 = vsub.f32 %v1446_v44, %v1507_v59 }
 0x135   : > { %vm1384_vm1 = vcmp.gt.f32.partialorder %v1352_v9, 0.0  ;;  %1666 = vadd.xlane.f32.xlu0 %v1665_v42  ;;  %v1447_v25 = vsel %vm1383_vm0, %v1351_v15, %v1415_v49  ;;  %v1697_v58 = vpack.c.bf16 %v1627_v27, %v1625_v50  ;;  %v1630_v23 = vmul.f32 %v2901_v13, %v4372_v10 }
 0x136   : > { %v1448_v45 = vsel %vm1384_vm1, %v1352_v9, %v1416_v57  ;;  %1669 = vadd.xlane.f32.xlu1 %v1668_v11  ;;  %v1601_v21 = vmul.f32 1.442695, %v1541_v46  ;;  %v1603_v63 = vmul.f32 1.442695, %v1542_v34  ;;  %v1543_v20 = vsub.f32 %v1447_v25, %v1511_v43  ;;  %v1850_v11 = vld [vmem:[#allocation2] sm:$0xff] }
 0x137   : > { %v1544_v12 = vsub.f32 %v1448_v45, %v1511_v43  ;;  %1818 = vmatmul.mubr.bf16.gmra.mrb[16].mxu1 %v1697_v58  ;;  %v1632_v40 = vmul.f32 %v2905_v55, %v4377_v26  ;;  %v1629_v33 = vmul.f32 %v2899_v39, %v4371_v48  ;;  %v1631_v2 = vmul.f32 %v2903_v35, %v4378_v22  ;;  %v4381_v22 = vld [vmem:[#allocation20_spill] sm:$0xff]  ;;  %v1851_v58 = vld [vmem:[#allocation2 + $0x8] sm:$0xff] }
 0x138   : > { %2914 = vpow2.f32 %v1601_v21  ;;  %v1605_v53 = vmul.f32 1.442695, %v1543_v20 }
 0x139   : > { %v1607_v7 = vmul.f32 1.442695, %v1544_v12  ;;  %2916 = vpow2.f32 %v1603_v63  ;;  %v1700_v51 = vpack.c.bf16 %v1632_v40, %v1630_v23  ;;  %v1671_v30 = vadd.f32 %v1630_v23, %v1629_v33 }
 0x13a   : > { %v2907_v38 = vpop.eup %2906  ;;  %v1674_v10 = vadd.f32 %v1632_v40, %v1631_v2  ;;  %2918 = vpow2.f32 %v1605_v53  ;;  %v1699_v56 = vpack.c.bf16 %v1631_v2, %v1629_v33  ;;  %v1852_v40 = vld [vmem:[#allocation2 + $0x10] sm:$0xff] }
 0x13b   : > { %v2909_v3 = vpop.eup %2908  ;;  %v1633_v52 = vmul.f32 %v2907_v38, %v4374_v4  ;;  %2920 = vpow2.f32 %v1607_v7  ;;  %1825 = vmatprep.mubr.bf16.mxu1 %v1700_v51  ;;  %1672 = vadd.xlane.f32.xlu0 %v1671_v30  ;;  %v1853_v51 = vld [vmem:[#allocation2 + $0x18] sm:$0xff] }
 0x13c   : > { %v2911_v29 = vpop.eup %2910  ;;  %v1634_v48 = vmul.f32 %v2909_v3, %v4375_v0  ;;  %1675 = vadd.xlane.f32.xlu1 %v1674_v10  ;;  %v4384_v0 = vld [vmem:[#allocation4_spill] sm:$0xff] }
 0x13d   : > { %v2913_v26 = vpop.eup %2912  ;;  %v1635_v6 = vmul.f32 %v2911_v29, %v4381_v22 }
 0x13e   : > { %v1636_v47 = vmul.f32 %v2913_v26, %v4382_v28  ;;  %v1677_v32 = vadd.f32 %v1634_v48, %v1633_v52 }
 0x13f   : > { %1826 = vmatmul.mubr.bf16.gmra.mrb[20].mxu1 %v1699_v56  ;;  %v1701_v5 = vpack.c.bf16 %v1635_v6, %v1633_v52 }
 0x140   : > { %v1702_v18 = vpack.c.bf16 %v1636_v47, %v1634_v48  ;;  %1678 = vadd.xlane.f32.xlu0 %v1677_v32  ;;  %v1680_v37 = vadd.f32 %v1636_v47, %v1635_v6  ;;  %v1854_v6 = vld [vmem:[#allocation2 + $0x20] sm:$0xff] }
 0x142   : > { %1833 = vmatprep.mubr.bf16.mxu1 %v1702_v18  ;;  %1681 = vadd.xlane.f32.xlu1 %v1680_v37  ;;  %v2915_v4 = vpop.eup %2914 }
 0x143   : > { %v2917_v16 = vpop.eup %2916  ;;  %v1637_v36 = vmul.f32 %v2915_v4, %v4383_v19  ;;  %v1855_v19 = vld [vmem:[#allocation2 + $0x28] sm:$0xff] }
 0x144   : > { %v2919_v62 = vpop.eup %2918  ;;  %v1638_v17 = vmul.f32 %v2917_v16, %v4384_v0 }
 0x145   : > { %v2921_v24 = vpop.eup %2920  ;;  %v1639_v14 = vmul.f32 %v2919_v62, %v3705_v60 }
 0x146   : > { %v1640_v15 = vmul.f32 %v2921_v24, %v3727_v54  ;;  %v1683_v9 = vadd.f32 %v1638_v17, %v1637_v36 }
 0x147   : > { %1834 = vmatmul.mubr.bf16.gmra.mrb[24].mxu1 %v1701_v5  ;;  %v1703_v1 = vpack.c.bf16 %v1639_v14, %v1637_v36 }
 0x148   : > { %v1704_v41 = vpack.c.bf16 %v1640_v15, %v1638_v17  ;;  %1684 = vadd.xlane.f32.xlu0 %v1683_v9  ;;  %v1686_v31 = vadd.f32 %v1640_v15, %v1639_v14 }
 0x14a   : > { %1841 = vmatprep.mubr.bf16.mxu1 %v1704_v41  ;;  %1687 = vadd.xlane.f32.xlu1 %v1686_v31 }
 0x14f   : > { %1842 = vmatmul.mubr.bf16.gmra.mrb[28].mxu1 %v1703_v1 }
 0x15e   : > { %v992_v39 = vpop.xlane.xlu0 %991 }
 0x163   : > { %v995_v49 = vpop.xlane.xlu0 %994 }
 0x164   : > { %v989_v57 = vpop.xlane.xlu1 %988 }
 0x167   : > { %v1001_v50 = vpop.xlane.xlu0 %1000 }
 0x168   : > { %v998_v59 = vpop.xlane.xlu1 %997 }
 0x16b   : > { %v3884_v13 = vpop.xlane.xlu0 %1006 }
 0x16c   : > { %v1004_v27 = vpop.xlane.xlu1 %1003 }
 0x16f   : > { %v3886_v60 = vpop.xlane.xlu0 %1012 }
 0x170   : > { %v3888_v54 = vpop.xlane.xlu1 %1009 }
 0x173   : > { %v3890_v35 = vpop.xlane.xlu0 %1018 }
 0x174   : > { %v3892_v42 = vpop.xlane.xlu1 %1015 }
 0x177   : > { %v3894_v61 = vpop.xlane.xlu0 %1024 }
 0x178   : > { %v3896_v44 = vpop.xlane.xlu1 %1021 }
 0x17b   : > { %v3898_v43 = vpop.xlane.xlu0 %1030 }
 0x17c   : > { %v3900_v55 = vpop.xlane.xlu1 %1027 }
 0x180   : > { %v1643_v46 = vpop.xlane.xlu0 %1642 }
 0x181   : > { %v1867_v34 = vsel %vm1866_vm2, %v989_v57, %v1643_v46  ;;  %v3903_v25 = vpop.xlane.xlu1 %1033 }
 0x182   : > { %v1883_v45 = vadd.f32 %v1867_v34, %v1850_v11  ;;  %v1856_v34 = vld [vmem:[#allocation2 + $0x30] sm:$0xff] }
 0x184   : > { %1900 = vst.msk [vmem:[#allocation2] sm:$0xff] %vm384_vm10, %v1883_v45 }
 0x185   : > { %v1646_v23 = vpop.xlane.xlu1 %1645 }
 0x186   : > { %v1868_v21 = vsel %vm1866_vm2, %v992_v39, %v1646_v23 }
 0x187   : > { %v1884_v63 = vadd.f32 %v1868_v21, %v1851_v58 }
 0x189   : > { %1901 = vst.msk [vmem:[#allocation2 + $0x8] sm:$0xff] %vm384_vm10, %v1884_v63 }
 0x18b   : > { %v2049_v20 = vld [vmem:[#allocation2] sm:$0xff] }
 0x18c   : > { %v2065_v12 = vadd.f32 1e-20, %v2049_v20 }
 0x18e   : > { %2922 = vrcp.f32 %v2065_v12  ;;  %v1857_v12 = vld [vmem:[#allocation2 + $0x38] sm:$0xff] }
 0x190   : > { %v2050_v33 = vld [vmem:[#allocation2 + $0x8] sm:$0xff]  ;;  %v1649_v2 = vpop.xlane.xlu0 %1648 }
 0x191   : > { %v2066_v53 = vadd.f32 1e-20, %v2050_v33  ;;  %v1869_v7 = vsel %vm1866_vm2, %v995_v49, %v1649_v2 }
 0x192   : > { %v1885_v38 = vadd.f32 %v1869_v7, %v1852_v40 }
 0x193   : > { %2924 = vrcp.f32 %v2066_v53  ;;  %v1652_v30 = vpop.xlane.xlu1 %1651 }
 0x194   : > { %1902 = vst.msk [vmem:[#allocation2 + $0x10] sm:$0xff] %vm384_vm10, %v1885_v38  ;;  %v1870_v10 = vsel %vm1866_vm2, %v998_v59, %v1652_v30 }
 0x195   : > { %v1886_v3 = vadd.f32 %v1870_v10, %v1853_v51 }
 0x197   : > { %1903 = vst.msk [vmem:[#allocation2 + $0x18] sm:$0xff] %vm384_vm10, %v1886_v3 }
 0x198   : > { %v3911_v52 = vpop.eup %2922 }
 0x199   : > { %2099 = vperm.xlu1 %2774, %v3911_v52  }
 0x19b   : > { %v2051_v29 = vld [vmem:[#allocation2 + $0x10] sm:$0xff] }
 0x19c   : > { %v2067_v48 = vadd.f32 1e-20, %v2051_v29 }
 0x19d   : > { %v3915_v26 = vpop.eup %2924 }
 0x19e   : > { %2926 = vrcp.f32 %v2067_v48  ;;  %2104 = vperm.xlu0 %2775, %v3915_v26   ;;  %v2052_v22 = vld [vmem:[#allocation2 + $0x18] sm:$0xff] }
 0x19f   : > { %v2068_v56 = vadd.f32 1e-20, %v2052_v22  ;;  %v2629_v47 = vpop.f32.mrb[0].mxu0 }
 0x1a0   : > { %v1655_v28 = vpop.xlane.xlu0 %1654  ;;  %v2630_v18 = vpop.f32.mrb[1].mxu0 }
 0x1a1   : > { %v1871_v32 = vsel %vm1866_vm2, %v1001_v50, %v1655_v28  ;;  %2928 = vrcp.f32 %v2068_v56  ;;  %v3919_v4 = vadd.f32 %v2630_v18, %v2629_v47  ;;  %v2632_v16 = vpop.f32.mrb[2].mxu0 }
 0x1a2   : > { %v1887_v37 = vadd.f32 %v1871_v32, %v1854_v6  ;;  %v2633_v36 = vpop.f32.mrb[3].mxu0  ;;  %v1858_v6 = vld [vmem:[#allocation2 + $0x40] sm:$0xff]  ;;  %v1859_v32 = vld [vmem:[#allocation2 + $0x48] sm:$0xff] }
 0x1a3   : > { %v1658_v62 = vpop.xlane.xlu1 %1657  ;;  %v3922_v0 = vadd.f32 %v2633_v36, %v2632_v16 }
 0x1a4   : > { %1904 = vst.msk [vmem:[#allocation2 + $0x20] sm:$0xff] %vm384_vm10, %v1887_v37  ;;  %v1872_v17 = vsel %vm1866_vm2, %v1004_v27, %v1658_v62 }
 0x1a5   : > { %v1888_v24 = vadd.f32 %v1872_v17, %v1855_v19 }
 0x1a7   : > { %1905 = vst.msk [vmem:[#allocation2 + $0x28] sm:$0xff] %vm384_vm10, %v1888_v24 }
 0x1a8   : > { %v3925_v5 = vpop.eup %2926  ;;  %v2635_v14 = vpop.f32.mrb[4].mxu0 }
 0x1a9   : > { %2109 = vperm.xlu1 %2774, %v3925_v5   ;;  %v2636_v15 = vpop.f32.mrb[5].mxu0 }
 0x1aa   : > { %v3929_v41 = vadd.f32 %v2636_v15, %v2635_v14  ;;  %v2638_v31 = vpop.f32.mrb[6].mxu0  ;;  %v1860_v15 = vld [vmem:[#allocation2 + $0x50] sm:$0xff] }
 0x1ab   : > { %v2053_v9 = vld [vmem:[#allocation2 + $0x20] sm:$0xff]  ;;  %v3931_v1 = vpop.eup %2928  ;;  %v2639_v49 = vpop.f32.mrb[7].mxu0 }
 0x1ac   : > { %v2069_v39 = vadd.f32 1e-20, %v2053_v9  ;;  %v3933_v57 = vadd.f32 %v2639_v49, %v2638_v31  ;;  %v1861_v31 = vld [vmem:[#allocation2 + $0x58] sm:$0xff] }
 0x1ad   : > { %2114 = vperm.xlu1 %2774, %v3931_v1  }
 0x1ae   : > { %2930 = vrcp.f32 %v2069_v39  ;;  %v2054_v50 = vld [vmem:[#allocation2 + $0x28] sm:$0xff] }
 0x1af   : > { %v2070_v59 = vadd.f32 1e-20, %v2054_v50 }
 0x1b0   : > { %v2641_v27 = vpop.f32.mrb[8].mxu0 }
 0x1b1   : > { %2932 = vrcp.f32 %v2070_v59  ;;  %v2642_v11 = vpop.f32.mrb[9].mxu0 }
 0x1b2   : > { %v3936_v46 = vadd.f32 %v2642_v11, %v2641_v27  ;;  %v2644_v45 = vpop.f32.mrb[10].mxu0 }
 0x1b3   : > { %v1661_v58 = vpop.xlane.xlu0 %1660  ;;  %v2645_v23 = vpop.f32.mrb[11].mxu0 }
 0x1b4   : > { %v1873_v21 = vsel %vm1866_vm2, %v3884_v13, %v1661_v58  ;;  %v3940_v63 = vadd.f32 %v2645_v23, %v2644_v45  ;;  %v1862_v23 = vld [vmem:[#allocation2 + $0x60] sm:$0xff] }
 0x1b5   : > { %v1889_v20 = vadd.f32 %v1873_v21, %v1856_v34 }
 0x1b7   : > { %v1664_v40 = vpop.xlane.xlu1 %1663  ;;  %1906 = vst.msk [vmem:[#allocation2 + $0x30] sm:$0xff] %vm384_vm10, %v1889_v20 }
 0x1b8   : > { %v3942_v33 = vpop.eup %2930  ;;  %v1874_v2 = vsel %vm1866_vm2, %v3888_v54, %v1664_v40  ;;  %v2647_v7 = vpop.f32.mrb[12].mxu0 }
 0x1b9   : > { %v1890_v53 = vadd.f32 %v1874_v2, %v1857_v12  ;;  %2119 = vperm.xlu0 %2775, %v3942_v33   ;;  %v2648_v38 = vpop.f32.mrb[13].mxu0  ;;  %v1863_v12 = vld [vmem:[#allocation2 + $0x68] sm:$0xff] }
 0x1ba   : > { %v3949_v13 = vadd.f32 %v2648_v38, %v2647_v7  ;;  %v2650_v51 = vpop.f32.mrb[14].mxu0 }
 0x1bb   : > { %1907 = vst.msk [vmem:[#allocation2 + $0x38] sm:$0xff] %vm384_vm10, %v1890_v53  ;;  %v3951_v30 = vpop.eup %2932  ;;  %v2651_v10 = vpop.f32.mrb[15].mxu0 }
 0x1bc   : > { %v3953_v3 = vadd.f32 %v2651_v10, %v2650_v51  ;;  %2124 = vperm.xlu1 %2774, %v3951_v30  }
 0x1be   : > { %v2055_v29 = vld [vmem:[#allocation2 + $0x30] sm:$0xff] }
 0x1bf   : > { %v2071_v48 = vadd.f32 1e-20, %v2055_v29 }
 0x1c0   : > { %v2653_v54 = vpop.f32.mrb[16].mxu0 }
 0x1c1   : > { %2934 = vrcp.f32 %v2071_v48  ;;  %v2654_v56 = vpop.f32.mrb[17].mxu0 }
 0x1c2   : > { %v2056_v22 = vld [vmem:[#allocation2 + $0x38] sm:$0xff]  ;;  %v1667_v47 = vpop.xlane.xlu0 %1666  ;;  %v3956_v18 = vadd.f32 %v2654_v56, %v2653_v54  ;;  %v2656_v37 = vpop.f32.mrb[18].mxu0 }
 0x1c3   : > { %v2072_v28 = vadd.f32 1e-20, %v2056_v22  ;;  %v1875_v16 = vsel %vm1866_vm2, %v3886_v60, %v1667_v47  ;;  %v1670_v19 = vpop.xlane.xlu1 %1669  ;;  %v2657_v36 = vpop.f32.mrb[19].mxu0 }
 0x1c4   : > { %v1891_v62 = vadd.f32 %v1875_v16, %v1858_v6  ;;  %v1876_v17 = vsel %vm1866_vm2, %v3892_v42, %v1670_v19  ;;  %v3962_v24 = vadd.f32 %v2657_v36, %v2656_v37  ;;  %v1864_v37 = vld [vmem:[#allocation2 + $0x70] sm:$0xff]  ;;  %v1865_v36 = vld [vmem:[#allocation2 + $0x78] sm:$0xff] }
 0x1c5   : > { %2936 = vrcp.f32 %v2072_v28  ;;  %v1892_v14 = vadd.f32 %v1876_v17, %v1859_v32 }
 0x1c6   : > { %1908 = vst.msk [vmem:[#allocation2 + $0x40] sm:$0xff] %vm384_vm10, %v1891_v62 }
 0x1c7   : > { %1909 = vst.msk [vmem:[#allocation2 + $0x48] sm:$0xff] %vm384_vm10, %v1892_v14 }
 0x1c8   : > { %v1673_v9 = vpop.xlane.xlu0 %1672  ;;  %v2659_v39 = vpop.f32.mrb[20].mxu0 }
 0x1c9   : > { %v1877_v60 = vsel %vm1866_vm2, %v3890_v35, %v1673_v9  ;;  %v1676_v49 = vpop.xlane.xlu1 %1675  ;;  %v2660_v50 = vpop.f32.mrb[21].mxu0 }
 0x1ca   : > { %v1893_v59 = vadd.f32 %v1877_v60, %v1860_v15  ;;  %v1878_v42 = vsel %vm1866_vm2, %v3896_v44, %v1676_v49  ;;  %v3970_v27 = vadd.f32 %v2660_v50, %v2659_v39  ;;  %v2662_v11 = vpop.f32.mrb[22].mxu0 }
 0x1cb   : > { %v3972_v34 = vpop.eup %2934  ;;  %v1894_v45 = vadd.f32 %v1878_v42, %v1861_v31  ;;  %v2663_v58 = vpop.f32.mrb[23].mxu0 }
 0x1cc   : > { %1910 = vst.msk [vmem:[#allocation2 + $0x50] sm:$0xff] %vm384_vm10, %v1893_v59  ;;  %v3975_v21 = vadd.f32 %v2663_v58, %v2662_v11  ;;  %2129 = vperm.xlu0 %2775, %v3972_v34  }
 0x1cd   : > { %v1679_v35 = vpop.xlane.xlu0 %1678  ;;  %v2057_v20 = vld [vmem:[#allocation2 + $0x40] sm:$0xff]  ;;  %1911 = vst.msk [vmem:[#allocation2 + $0x58] sm:$0xff] %vm384_vm10, %v1894_v45 }
 0x1ce   : > { %v1879_v44 = vsel %vm1866_vm2, %v3894_v61, %v1679_v35  ;;  %v2073_v2 = vadd.f32 1e-20, %v2057_v20  ;;  %v2058_v53 = vld [vmem:[#allocation2 + $0x48] sm:$0xff] }
 0x1cf   : > { %v3981_v40 = vpop.eup %2936  ;;  %v1895_v7 = vadd.f32 %v1879_v44, %v1862_v23  ;;  %v1682_v38 = vpop.xlane.xlu1 %1681  ;;  %v2074_v51 = vadd.f32 1e-20, %v2058_v53 }
 0x1d0   : > { %2134 = vperm.xlu1 %2774, %v3981_v40   ;;  %v1880_v10 = vsel %vm1866_vm2, %v3900_v55, %v1682_v38  ;;  %2938 = vrcp.f32 %v2073_v2  ;;  %v2665_v48 = vpop.f32.mrb[24].mxu0 }
 0x1d1   : > { %1912 = vst.msk [vmem:[#allocation2 + $0x60] sm:$0xff] %vm384_vm10, %v1895_v7  ;;  %v1896_v29 = vadd.f32 %v1880_v10, %v1863_v12  ;;  %2940 = vrcp.f32 %v2074_v51  ;;  %v2666_v61 = vpop.f32.mrb[25].mxu0 }
 0x1d2   : > { %v3988_v54 = vadd.f32 %v2666_v61, %v2665_v48  ;;  %v2668_v22 = vpop.f32.mrb[26].mxu0 }
 0x1d3   : > { %1913 = vst.msk [vmem:[#allocation2 + $0x68] sm:$0xff] %vm384_vm10, %v1896_v29  ;;  %v2059_v6 = vld [vmem:[#allocation2 + $0x50] sm:$0xff]  ;;  %v2669_v56 = vpop.f32.mrb[27].mxu0 }
 0x1d4   : > { %v2075_v28 = vadd.f32 1e-20, %v2059_v6  ;;  %v2060_v47 = vld [vmem:[#allocation2 + $0x58] sm:$0xff]  ;;  %v3990_v32 = vadd.f32 %v2669_v56, %v2668_v22 }
 0x1d5   : > { %v2076_v55 = vadd.f32 1e-20, %v2060_v47  ;;  %v1685_v16 = vpop.xlane.xlu0 %1684 }
 0x1d6   : > { %2942 = vrcp.f32 %v2075_v28  ;;  %v1881_v19 = vsel %vm1866_vm2, %v3898_v43, %v1685_v16  ;;  %v4385_v28 = vmov 1  }
 0x1d7   : > { %2944 = vrcp.f32 %v2076_v55  ;;  %v1897_v17 = vadd.f32 %v1881_v19, %v1864_v37  ;;  %v1688_v14 = vpop.xlane.xlu1 %1687 }
 0x1d8   : > { %v2061_v62 = vld [vmem:[#allocation2 + $0x60] sm:$0xff]  ;;  %v1882_v9 = vsel %vm1866_vm2, %v3903_v25, %v1688_v14  ;;  %v2671_v31 = vpop.f32.mrb[28].mxu0 }
 0x1d9   : > { %v2077_v15 = vadd.f32 1e-20, %v2061_v62  ;;  %1914 = vst.msk [vmem:[#allocation2 + $0x70] sm:$0xff] %vm384_vm10, %v1897_v17  ;;  %v1898_v60 = vadd.f32 %v1882_v9, %v1865_v36  ;;  %v2672_v49 = vpop.f32.mrb[29].mxu0 }
 0x1da   : > { %v2062_v39 = vld [vmem:[#allocation2 + $0x68] sm:$0xff]  ;;  %v3997_v50 = vpop.eup %2938  ;;  %v3999_v43 = vadd.f32 %v2672_v49, %v2671_v31  ;;  %v2674_v42 = vpop.f32.mrb[30].mxu0 }
 0x1db   : > { %2946 = vrcp.f32 %v2077_v15  ;;  %v2078_v59 = vadd.f32 1e-20, %v2062_v39  ;;  %v2941_v11 = vpop.eup %2940  ;;  %1915 = vst.msk [vmem:[#allocation2 + $0x78] sm:$0xff] %vm384_vm10, %v1898_v60  ;;  %2139 = vperm.xlu0 %2775, %v3997_v50   ;;  %v2675_v45 = vpop.f32.mrb[31].mxu0  ;;  %vm401_vm10 = vcmask 261120  }
 0x1dc   : > { %2144 = vperm.xlu1 %2774, %v2941_v11   ;;  %v4003_v25 = vadd.f32 %v2675_v45, %v2674_v42  ;;  %402 = vst.msk [vmem:[#allocation3] sm:$0xff] %vm401_vm10, %v2981_v8  ;;  %403 = vst.msk [vmem:[#allocation3 + $0x8] sm:$0xff] %vm401_vm10, %v2981_v8 }
 0x1dd   : > { %2948 = vrcp.f32 %v2078_v59  ;;  %404 = vst.msk [vmem:[#allocation3 + $0x10] sm:$0xff] %vm401_vm10, %v2981_v8  ;;  %405 = vst.msk [vmem:[#allocation3 + $0x18] sm:$0xff] %vm401_vm10, %v2981_v8 }
 0x1de   : > { %406 = vst.msk [vmem:[#allocation3 + $0x20] sm:$0xff] %vm401_vm10, %v2981_v8  ;;  %407 = vst.msk [vmem:[#allocation3 + $0x28] sm:$0xff] %vm401_vm10, %v2981_v8 }
 0x1df   : > { %408 = vst.msk [vmem:[#allocation3 + $0x30] sm:$0xff] %vm401_vm10, %v2981_v8  ;;  %409 = vst.msk [vmem:[#allocation3 + $0x38] sm:$0xff] %vm401_vm10, %v2981_v8 }
 0x1e0   : > { %v2943_v58 = vpop.eup %2942  ;;  %v2063_v23 = vld [vmem:[#allocation2 + $0x70] sm:$0xff]  ;;  %410 = vst.msk [vmem:[#allocation3 + $0x40] sm:$0xff] %vm401_vm10, %v2981_v8  ;;  %411 = vst.msk [vmem:[#allocation3 + $0x48] sm:$0xff] %vm401_vm10, %v2981_v8 }
 0x1e1   : > { %v2945_v35 = vpop.eup %2944  ;;  %v2079_v20 = vadd.f32 1e-20, %v2063_v23  ;;  %2149 = vperm.xlu0 %2775, %v2943_v58   ;;  %412 = vst.msk [vmem:[#allocation3 + $0x50] sm:$0xff] %vm401_vm10, %v2981_v8  ;;  %413 = vst.msk [vmem:[#allocation3 + $0x58] sm:$0xff] %vm401_vm10, %v2981_v8 }
 0x1e2   : > { %v2064_v44 = vld [vmem:[#allocation2 + $0x78] sm:$0xff]  ;;  %2154 = vperm.xlu1 %2774, %v2945_v35   ;;  %414 = vst.msk [vmem:[#allocation3 + $0x60] sm:$0xff] %vm401_vm10, %v2981_v8  ;;  %415 = vst.msk [vmem:[#allocation3 + $0x68] sm:$0xff] %vm401_vm10, %v2981_v8 }
 0x1e3   : > { %2950 = vrcp.f32 %v2079_v20  ;;  %v2080_v12 = vadd.f32 1e-20, %v2064_v44  ;;  %416 = vst.msk [vmem:[#allocation3 + $0x70] sm:$0xff] %vm401_vm10, %v2981_v8  ;;  %417 = vst.msk [vmem:[#allocation3 + $0x78] sm:$0xff] %vm401_vm10, %v2981_v8 }
 0x1e5   : > { %v2947_v2 = vpop.eup %2946  ;;  %2952 = vrcp.f32 %v2080_v12 }
 0x1e6   : > { %2159 = vperm.xlu0 %2775, %v2947_v2  }
 0x1e7   : > { %v2949_v53 = vpop.eup %2948 }
 0x1e8   : > { %2164 = vperm.xlu1 %2774, %v2949_v53  }
 0x1e9   : > { %v2693_v7 = vpop.f32.mrb[0].mxu1 }
 0x1ea   : > { %v2694_v38 = vpop.f32.mrb[1].mxu1 }
 0x1eb   : > { %v4005_v51 = vadd.f32 %v2694_v38, %v2693_v7  ;;  %v2696_v10 = vpop.f32.mrb[2].mxu1 }
 0x1ec   : > { %v2697_v29 = vpop.f32.mrb[3].mxu1 }
 0x1ed   : > { %v4007_v48 = vadd.f32 %v2697_v29, %v2696_v10  ;;  %v4009_v61 = vpop.eup %2950 }
 0x1ee   : > { %2169 = vperm.xlu0 %2775, %v4009_v61  }
 0x1ef   : > { %v4012_v22 = vpop.eup %2952 }
 0x1f0   : > { %2174 = vperm.xlu1 %2774, %v4012_v22  }
 0x1f1   : > { %v2699_v6 = vpop.f32.mrb[4].mxu1 }
 0x1f2   : > { %v2700_v56 = vpop.f32.mrb[5].mxu1  ;;  %2776 = vset.pattern.permute.xlu0 %v4385_v28 }
 0x1f3   : > { %v2701_v47 = vadd.f32 %v2700_v56, %v2699_v6  ;;  %v2702_v37 = vpop.f32.mrb[6].mxu1  ;;  %2178 = vperm.xlu0 %2776, %v3911_v52  }
 0x1f4   : > { %v2703_v55 = vpop.f32.mrb[7].mxu1  ;;  %2777 = vset.pattern.permute.xlu1 %v4385_v28 }
 0x1f5   : > { %v2704_v16 = vadd.f32 %v2703_v55, %v2702_v37  ;;  %2182 = vperm.xlu1 %2777, %v3915_v26  }
 0x1f7   : > { %2190 = vperm.xlu0 %2776, %v3931_v1  }
 0x1f9   : > { %v2705_v19 = vpop.f32.mrb[8].mxu1  ;;  %2186 = vperm.xlu1 %2777, %v3925_v5  }
 0x1fa   : > { %v2706_v36 = vpop.f32.mrb[9].mxu1 }
 0x1fb   : > { %v2707_v62 = vadd.f32 %v2706_v36, %v2705_v19  ;;  %v2708_v17 = vpop.f32.mrb[10].mxu1  ;;  %2198 = vperm.xlu0 %2776, %v3951_v30  }
 0x1fc   : > { %v2709_v14 = vpop.f32.mrb[11].mxu1 }
 0x1fd   : > { %v2710_v15 = vadd.f32 %v2709_v14, %v2708_v17  ;;  %2194 = vperm.xlu1 %2777, %v3942_v33  }
 0x1ff   : > { %2206 = vperm.xlu0 %2776, %v3981_v40  }
 0x201   : > { %2202 = vperm.xlu1 %2777, %v3972_v34  }
 0x202   : > { %v2711_v52 = vpop.f32.mrb[12].mxu1 }
 0x203   : > { %v2712_v26 = vpop.f32.mrb[13].mxu1  ;;  %2214 = vperm.xlu0 %2776, %v2941_v11  }
 0x204   : > { %v2713_v9 = vadd.f32 %v2712_v26, %v2711_v52  ;;  %v2714_v1 = vpop.f32.mrb[14].mxu1 }
 0x205   : > { %v2715_v31 = vpop.f32.mrb[15].mxu1  ;;  %2210 = vperm.xlu1 %2777, %v3997_v50  }
 0x206   : > { %v2716_v5 = vadd.f32 %v2715_v31, %v2714_v1 }
 0x207   : > { %2222 = vperm.xlu0 %2776, %v2945_v35  }
 0x209   : > { %2218 = vperm.xlu1 %2777, %v2943_v58  }
 0x20a   : > { %v2717_v30 = vpop.f32.mrb[16].mxu1 }
 0x20b   : > { %v2718_v39 = vpop.f32.mrb[17].mxu1  ;;  %2230 = vperm.xlu0 %2776, %v2949_v53  }
 0x20c   : > { %v2719_v60 = vadd.f32 %v2718_v39, %v2717_v30  ;;  %v2720_v33 = vpop.f32.mrb[18].mxu1 }
 0x20d   : > { %2226 = vperm.xlu1 %2777, %v2947_v2   ;;  %v2721_v40 = vpop.f32.mrb[19].mxu1 }
 0x20e   : > { %v2722_v34 = vadd.f32 %v2721_v40, %v2720_v33 }
 0x20f   : > { %1948 = vrot.lane.b32.xlu0 %v4005_v51, %s2982_s20 }
 0x211   : > { %1950 = vrot.lane.b32.xlu1 %v4007_v48, %s2982_s20 }
 0x212   : > { %v2723_v49 = vpop.f32.mrb[20].mxu1 }
 0x213   : > { %v2724_v50 = vpop.f32.mrb[21].mxu1  ;;  %1954 = vrot.lane.b32.xlu0 %v2704_v16, %s2982_s20 }
 0x214   : > { %v2725_v59 = vadd.f32 %v2724_v50, %v2723_v49  ;;  %v2726_v42 = vpop.f32.mrb[22].mxu1  ;;  %v1916_v49 = vld [vmem:[#allocation3] sm:$0xff] }
 0x215   : > { %1952 = vrot.lane.b32.xlu1 %v2701_v47, %s2982_s20  ;;  %v2727_v11 = vpop.f32.mrb[23].mxu1 }
 0x216   : > { %v2728_v45 = vadd.f32 %v2727_v11, %v2726_v42  ;;  %v1917_v42 = vld [vmem:[#allocation3 + $0x8] sm:$0xff] }
 0x217   : > { %1958 = vrot.lane.b32.xlu0 %v2710_v15, %s2982_s20 }
 0x218   : > { %v2100_v10 = vpop.permute.xlu1 %2099 }
 0x219   : > { %1956 = vrot.lane.b32.xlu1 %v2707_v62, %s2982_s20 }
 0x21a   : > { %v2729_v8 = vpop.f32.mrb[24].mxu1 }
 0x21b   : > { %v2730_v58 = vpop.f32.mrb[25].mxu1  ;;  %1962 = vrot.lane.b32.xlu0 %v2716_v5, %s2982_s20 }
 0x21c   : > { %v2731_v23 = vadd.f32 %v2730_v58, %v2729_v8  ;;  %v2732_v35 = vpop.f32.mrb[26].mxu1  ;;  %v1919_v58 = vld [vmem:[#allocation3 + $0x18] sm:$0xff] }
 0x21d   : > { %1960 = vrot.lane.b32.xlu1 %v2713_v9, %s2982_s20  ;;  %v2733_v20 = vpop.f32.mrb[27].mxu1  ;;  %v4080_v48 = vpop.permute.xlu0 %2104 }
 0x21e   : > { %v2734_v44 = vadd.f32 %v2733_v20, %v2732_v35 }
 0x21f   : > { %1966 = vrot.lane.b32.xlu0 %v2722_v34, %s2982_s20 }
 0x221   : > { %1964 = vrot.lane.b32.xlu1 %v2719_v60, %s2982_s20 }
 0x222   : > { %v2735_v12 = vpop.f32.mrb[28].mxu1 }
 0x223   : > { %v2736_v2 = vpop.f32.mrb[29].mxu1  ;;  %1970 = vrot.lane.b32.xlu0 %v2728_v45, %s2982_s20 }
 0x224   : > { %v2737_v53 = vadd.f32 %v2736_v2, %v2735_v12  ;;  %v2738_v7 = vpop.f32.mrb[30].mxu1 }
 0x225   : > { %1968 = vrot.lane.b32.xlu1 %v2725_v59, %s2982_s20  ;;  %v2739_v38 = vpop.f32.mrb[31].mxu1 }
 0x226   : > { %v2740_v51 = vadd.f32 %v2739_v38, %v2738_v7 }
 0x227   : > { %1974 = vrot.lane.b32.xlu0 %v2734_v44, %s2982_s20  ;;  %v1918_v44 = vld [vmem:[#allocation3 + $0x10] sm:$0xff] }
 0x228   : > { %v4078_v29 = vpop.permute.xlu1 %2109 }
 0x229   : > { %1972 = vrot.lane.b32.xlu1 %v2731_v23, %s2982_s20 }
 0x22b   : > { %1978 = vrot.lane.b32.xlu0 %v2740_v51, %s2982_s20  ;;  %v1920_v51 = vld [vmem:[#allocation3 + $0x20] sm:$0xff] }
 0x22c   : > { %v4082_v6 = vpop.permute.xlu1 %2114 }
 0x22d   : > { %1976 = vrot.lane.b32.xlu1 %v2737_v53, %s2982_s20  ;;  %v1921_v53 = vld [vmem:[#allocation3 + $0x28] sm:$0xff] }
 0x22f   : > { %2238 = vperm.xlu0 %2776, %v4012_v22  }
 0x231   : > { %2234 = vperm.xlu1 %2777, %v4009_v61  }
 0x238   : > { %v4084_v56 = vpop.permute.xlu0 %2119 }
 0x23b   : > { %v4086_v28 = vpop.permute.xlu1 %2124 }
 0x24b   : > { %v4088_v47 = vpop.permute.xlu0 %2129 }
 0x24f   : > { %v4090_v37 = vpop.permute.xlu1 %2134 }
 0x25a   : > { %v4092_v55 = vpop.permute.xlu0 %2139 }
 0x25b   : > { %v4094_v22 = vpop.permute.xlu1 %2144 }
 0x260   : > { %v4096_v61 = vpop.permute.xlu0 %2149 }
 0x261   : > { %v4098_v16 = vpop.permute.xlu1 %2154 }
 0x265   : > { %v4100_v19 = vpop.permute.xlu0 %2159 }
 0x267   : > { %v4102_v36 = vpop.permute.xlu1 %2164 }
 0x26d   : > { %v4104_v62 = vpop.permute.xlu0 %2169 }
 0x26f   : > { %v4106_v17 = vpop.permute.xlu1 %2174 }
 0x272   : > { %v2179_v14 = vpop.permute.xlu0 %2178 }
 0x274   : > { %v2183_v15 = vpop.permute.xlu1 %2182 }
 0x276   : > { %v2191_v52 = vpop.permute.xlu0 %2190 }
 0x278   : > { %v4108_v26 = vpop.permute.xlu1 %2186 }
 0x27a   : > { %v4110_v9 = vpop.permute.xlu0 %2198 }
 0x27c   : > { %v4112_v1 = vpop.permute.xlu1 %2194 }
 0x27e   : > { %v4114_v31 = vpop.permute.xlu0 %2206 }
 0x280   : > { %v4116_v5 = vpop.permute.xlu1 %2202 }
 0x282   : > { %v4118_v30 = vpop.permute.xlu0 %2214 }
 0x284   : > { %v4120_v39 = vpop.permute.xlu1 %2210 }
 0x286   : > { %v4122_v60 = vpop.permute.xlu0 %2222 }
 0x288   : > { %v4124_v33 = vpop.permute.xlu1 %2218 }
 0x28a   : > { %v4126_v40 = vpop.permute.xlu0 %2230 }
 0x28c   : > { %v4128_v34 = vpop.permute.xlu1 %2226 }
 0x28e   : > { %v1949_v50 = vpop.permute.xlu0 %1948 }
 0x28f   : > { %v1997_v59 = vsel %vm1996_vm3, %v3919_v4, %v1949_v50  ;;  %v2241_v50 = vsel %vm1996_vm3, %v2100_v10, %v2179_v14  ;;  %v4158_v10 = vld [vmem:[%s4315_s6] ss:$0 sm:$0xff] }
 0x290   : > { %v2013_v11 = vadd.f32 %v1997_v59, %v1916_v49  ;;  %v1951_v45 = vpop.permute.xlu1 %1950  ;;  %v4148_v59 = vld [vmem:[%s4314_s5] ss:$0 sm:$0xff] }
 0x291   : > { %v1998_v8 = vsel %vm1996_vm3, %v3922_v0, %v1951_v45 }
 0x292   : > { %2030 = vst.msk [vmem:[#allocation3] sm:$0xff] %vm401_vm10, %v2013_v11  ;;  %v2014_v23 = vadd.f32 %v1998_v8, %v1917_v42  ;;  %v1955_v35 = vpop.permute.xlu0 %1954  ;;  %v1923_v11 = vld [vmem:[#allocation3 + $0x38] sm:$0xff] }
 0x293   : > { %v2000_v20 = vsel %vm1996_vm3, %v3933_v57, %v1955_v35 }
 0x294   : > { %2031 = vst.msk [vmem:[#allocation3 + $0x8] sm:$0xff] %vm401_vm10, %v2014_v23  ;;  %v2016_v12 = vadd.f32 %v2000_v20, %v1919_v58  ;;  %v1953_v2 = vpop.permute.xlu1 %1952  ;;  %v2242_v58 = vsel %vm1996_vm3, %v4080_v48, %v2183_v15  ;;  %v2244_v48 = vsel %vm1996_vm3, %v4082_v6, %v2191_v52 }
 0x295   : > { %v1999_v4 = vsel %vm1996_vm3, %v3929_v41, %v1953_v2 }
 0x296   : > { %2033 = vst.msk [vmem:[#allocation3 + $0x18] sm:$0xff] %vm401_vm10, %v2016_v12  ;;  %v2015_v0 = vadd.f32 %v1999_v4, %v1918_v44  ;;  %v1959_v7 = vpop.permute.xlu0 %1958 }
 0x297   : > { %v2002_v38 = vsel %vm1996_vm3, %v3940_v63, %v1959_v7  ;;  %v1925_v7 = vld [vmem:[#allocation3 + $0x48] sm:$0xff] }
 0x298   : > { %2032 = vst.msk [vmem:[#allocation3 + $0x10] sm:$0xff] %vm401_vm10, %v2015_v0  ;;  %v2018_v57 = vadd.f32 %v2002_v38, %v1921_v53  ;;  %v1957_v49 = vpop.permute.xlu1 %1956 }
 0x299   : > { %v2257_v41 = vld [vmem:[#allocation3] sm:$0xff]  ;;  %v2001_v42 = vsel %vm1996_vm3, %v3936_v46, %v1957_v49  ;;  %v1922_v46 = vld [vmem:[#allocation3 + $0x30] sm:$0xff] }
 0x29a   : > { %v2273_v45 = vmul.f32 %v2257_v41, %v2241_v50  ;;  %2035 = vst.msk [vmem:[#allocation3 + $0x28] sm:$0xff] %vm401_vm10, %v2018_v57  ;;  %v2017_v63 = vadd.f32 %v2001_v42, %v1920_v51  ;;  %v1963_v8 = vpop.permute.xlu0 %1962  ;;  %v2243_v51 = vsel %vm1996_vm3, %v4078_v29, %v4108_v26  ;;  %v1924_v41 = vld [vmem:[#allocation3 + $0x40] sm:$0xff]  ;;  %v2246_v29 = vsel %vm1996_vm3, %v4086_v28, %v4110_v9 }
 0x29b   : > { %v2258_v14 = vld [vmem:[#allocation3 + $0x8] sm:$0xff]  ;;  %v2004_v23 = vsel %vm1996_vm3, %v3953_v3, %v1963_v8 }
 0x29c   : > { %v2296_v35 = vmul.f32 %v4148_v59, %v2273_v45  ;;  %v2274_v20 = vmul.f32 %v2258_v14, %v2242_v58  ;;  %2034 = vst.msk [vmem:[#allocation3 + $0x20] sm:$0xff] %vm401_vm10, %v2017_v63  ;;  %v2020_v44 = vadd.f32 %v2004_v23, %v1923_v11  ;;  %v1961_v12 = vpop.permute.xlu1 %1960  ;;  %v1927_v14 = vld [vmem:[#allocation3 + $0x58] sm:$0xff] }
 0x29d   : > { %v2260_v15 = vld [vmem:[#allocation3 + $0x18] sm:$0xff]  ;;  %v2003_v2 = vsel %vm1996_vm3, %v3949_v13, %v1961_v12 }
 0x29e   : > { %v2319_v4 = vadd.f32 %v4158_v10, %v2296_v35  ;;  %v2297_v3 = vmul.f32 %v4148_v59, %v2274_v20  ;;  %v2276_v53 = vmul.f32 %v2260_v15, %v2244_v48  ;;  %2037 = vst.msk [vmem:[#allocation3 + $0x38] sm:$0xff] %vm401_vm10, %v2020_v44  ;;  %v2019_v0 = vadd.f32 %v2003_v2, %v1922_v46  ;;  %v1967_v38 = vpop.permute.xlu0 %1966  ;;  %v1926_v15 = vld [vmem:[#allocation3 + $0x50] sm:$0xff] }
 0x29f   : > { %v2259_v6 = vld [vmem:[#allocation3 + $0x10] sm:$0xff]  ;;  %v2006_v52 = vsel %vm1996_vm3, %v3962_v24, %v1967_v38  ;;  %v2245_v46 = vsel %vm1996_vm3, %v4084_v56, %v4112_v1  ;;  %v2248_v56 = vsel %vm1996_vm3, %v4090_v37, %v4114_v31  ;;  %v2247_v37 = vsel %vm1996_vm3, %v4088_v47, %v4116_v5 }
 0x2a0   : > { %v2335_v13 = vmax.f32 %v2319_v4, 0.0  ;;  %v2320_v57 = vadd.f32 %v4158_v10, %v2297_v3  ;;  %v2299_v49 = vmul.f32 %v4148_v59, %v2276_v53  ;;  %v2275_v50 = vmul.f32 %v2259_v6, %v2243_v51  ;;  %2036 = vst.msk [vmem:[#allocation3 + $0x30] sm:$0xff] %vm401_vm10, %v2019_v0  ;;  %v1965_v42 = vpop.permute.xlu1 %1964  ;;  %v1929_v51 = vld [vmem:[#allocation3 + $0x68] sm:$0xff] }
 0x2a1   : > { %v2262_v24 = vld [vmem:[#allocation3 + $0x28] sm:$0xff]  ;;  %v2022_v26 = vadd.f32 %v2006_v52, %v1925_v7  ;;  %v2005_v11 = vsel %vm1996_vm3, %v3956_v18, %v1965_v42  ;;  %v2250_v5 = vsel %vm1996_vm3, %v4094_v22, %v4118_v30  ;;  %v2249_v22 = vsel %vm1996_vm3, %v4092_v55, %v4120_v39 }
 0x2a2   : > { %v2597_v45 = vpack.c.bf16 %v2335_v13, %v2335_v13  ;;  %v2336_v63 = vmax.f32 %v2320_v57, 0.0  ;;  %v2322_v8 = vadd.f32 %v4158_v10, %v2299_v49  ;;  %v2298_v58 = vmul.f32 %v4148_v59, %v2275_v50  ;;  %v1971_v23 = vpop.permute.xlu0 %1970  ;;  %v1928_v57 = vld [vmem:[#allocation3 + $0x60] sm:$0xff] }
 0x2a3   : > { %v2278_v28 = vmul.f32 %v2262_v24, %v2246_v29  ;;  %v2261_v9 = vld [vmem:[#allocation3 + $0x20] sm:$0xff]  ;;  %2039 = vst.msk [vmem:[#allocation3 + $0x48] sm:$0xff] %vm401_vm10, %v2022_v26  ;;  %v2021_v35 = vadd.f32 %v2005_v11, %v1924_v41  ;;  %v2008_v18 = vsel %vm1996_vm3, %v3975_v21, %v1971_v23  ;;  %v1931_v26 = vld [vmem:[#allocation3 + $0x78] sm:$0xff] }
 0x2a4   : > { %2416 = vst.msk [vmem:[%s4183_s15] sm:$0xf] %vm2415_vm4, %v2597_v45  ;;  %v2598_v20 = vpack.c.bf16 %v2336_v63, %v2336_v63  ;;  %v2338_v44 = vmax.f32 %v2322_v8, 0.0  ;;  %v2321_v12 = vadd.f32 %v4158_v10, %v2298_v58  ;;  %v2277_v48 = vmul.f32 %v2261_v9, %v2245_v46  ;;  %v1969_v2 = vpop.permute.xlu1 %1968  ;;  %v1930_v46 = vld [vmem:[#allocation3 + $0x70] sm:$0xff] }
 0x2a5   : > { %v2301_v1 = vmul.f32 %v4148_v59, %v2278_v28  ;;  %v2264_v4 = vld [vmem:[#allocation3 + $0x38] sm:$0xff]  ;;  %2038 = vst.msk [vmem:[#allocation3 + $0x40] sm:$0xff] %vm401_vm10, %v2021_v35  ;;  %v2024_v3 = vadd.f32 %v2008_v18, %v1927_v14  ;;  %v2007_v21 = vsel %vm1996_vm3, %v3970_v27, %v1969_v2 }
 0x2a6   : > { %2417 = vst.msk [vmem:[%s4183_s15 + $0x4] sm:$0xf] %vm2415_vm4, %v2598_v20  ;;  %v2600_v53 = vpack.c.bf16 %v2338_v44, %v2338_v44  ;;  %v2337_v0 = vmax.f32 %v2321_v12, 0.0  ;;  %v2300_v7 = vmul.f32 %v4148_v59, %v2277_v48  ;;  %v2280_v38 = vmul.f32 %v2264_v4, %v2248_v56  ;;  %v1975_v6 = vpop.permute.xlu0 %1974 }
 0x2a7   : > { %v2324_v31 = vadd.f32 %v4158_v10, %v2301_v1  ;;  %v2263_v52 = vld [vmem:[#allocation3 + $0x30] sm:$0xff]  ;;  %2041 = vst.msk [vmem:[#allocation3 + $0x58] sm:$0xff] %vm401_vm10, %v2024_v3  ;;  %v2023_v27 = vadd.f32 %v2007_v21, %v1926_v15  ;;  %v2010_v13 = vsel %vm1996_vm3, %v3990_v32, %v1975_v6 }
 0x2a8   : > { %2419 = vst.msk [vmem:[%s4183_s15 + $0xc] sm:$0xf] %vm2415_vm4, %v2600_v53  ;;  %v2599_v49 = vpack.c.bf16 %v2337_v0, %v2337_v0  ;;  %v2323_v50 = vadd.f32 %v4158_v10, %v2300_v7  ;;  %v2303_v41 = vmul.f32 %v4148_v59, %v2280_v38  ;;  %v2279_v42 = vmul.f32 %v2263_v52, %v2247_v37  ;;  %v1973_v47 = vpop.permute.xlu1 %1972 }
 0x2a9   : > { %v2340_v29 = vmax.f32 %v2324_v31, 0.0  ;;  %2040 = vst.msk [vmem:[#allocation3 + $0x50] sm:$0xff] %vm401_vm10, %v2023_v27  ;;  %v2026_v24 = vadd.f32 %v2010_v13, %v1929_v51  ;;  %v2009_v32 = vsel %vm1996_vm3, %v3988_v54, %v1973_v47  ;;  %v2254_v38 = vsel %vm1996_vm3, %v4102_v36, %v4126_v40 }
 0x2aa   : > { %2418 = vst.msk [vmem:[%s4183_s15 + $0x8] sm:$0xf] %vm2415_vm4, %v2599_v49  ;;  %v2339_v11 = vmax.f32 %v2323_v50, 0.0  ;;  %v2326_v45 = vadd.f32 %v4158_v10, %v2303_v41  ;;  %v2302_v63 = vmul.f32 %v4148_v59, %v2279_v42  ;;  %v2266_v8 = vld [vmem:[#allocation3 + $0x48] sm:$0xff]  ;;  %v2025_v58 = vadd.f32 %v2009_v32, %v1928_v57  ;;  %v1979_v14 = vpop.permute.xlu0 %1978 }
 0x2ab   : > { %v2602_v30 = vpack.c.bf16 %v2340_v29, %v2340_v29  ;;  %v2282_v23 = vmul.f32 %v2266_v8, %v2250_v5  ;;  %2043 = vst.msk [vmem:[#allocation3 + $0x68] sm:$0xff] %vm401_vm10, %v2026_v24  ;;  %v2012_v54 = vsel %vm1996_vm3, %v4003_v25, %v1979_v14  ;;  %v2252_v25 = vsel %vm1996_vm3, %v4098_v16, %v4122_v60 }
 0x2ac   : > { %v2601_v28 = vpack.c.bf16 %v2339_v11, %v2339_v11  ;;  %v2342_v9 = vmax.f32 %v2326_v45, 0.0  ;;  %v2325_v35 = vadd.f32 %v4158_v10, %v2302_v63  ;;  %v2265_v18 = vld [vmem:[#allocation3 + $0x40] sm:$0xff]  ;;  %2042 = vst.msk [vmem:[#allocation3 + $0x60] sm:$0xff] %vm401_vm10, %v2025_v58  ;;  %v2028_v20 = vadd.f32 %v2012_v54, %v1931_v26  ;;  %v1977_v44 = vpop.permute.xlu1 %1976 }
 0x2ad   : > { %2421 = vst.msk [vmem:[%s4183_s15 + $0x14] sm:$0xf] %vm2415_vm4, %v2602_v30  ;;  %v2305_v55 = vmul.f32 %v4148_v59, %v2282_v23  ;;  %v2281_v39 = vmul.f32 %v2265_v18, %v2249_v22  ;;  %v2011_v12 = vsel %vm1996_vm3, %v3999_v43, %v1977_v44  ;;  %v2251_v43 = vsel %vm1996_vm3, %v4096_v61, %v4124_v33 }
 0x2ae   : > { %2420 = vst.msk [vmem:[%s4183_s15 + $0x10] sm:$0xf] %vm2415_vm4, %v2601_v28  ;;  %v2604_v48 = vpack.c.bf16 %v2342_v9, %v2342_v9  ;;  %v2341_v15 = vmax.f32 %v2325_v35, 0.0  ;;  %v2268_v2 = vld [vmem:[#allocation3 + $0x58] sm:$0xff]  ;;  %v2027_v56 = vadd.f32 %v2011_v12, %v1930_v46  ;;  %v2253_v61 = vsel %vm1996_vm3, %v4100_v19, %v4128_v34  ;;  %v2239_v51 = vpop.permute.xlu0 %2238 }
 0x2af   : > { %2045 = vst.msk [vmem:[#allocation3 + $0x78] sm:$0xff] %vm401_vm10, %v2028_v20  ;;  %v2328_v1 = vadd.f32 %v4158_v10, %v2305_v55  ;;  %v2304_v4 = vmul.f32 %v4148_v59, %v2281_v39  ;;  %v2284_v3 = vmul.f32 %v2268_v2, %v2252_v25  ;;  %v2256_v50 = vsel %vm1996_vm3, %v4106_v17, %v2239_v51 }
 0x2b0   : > { %2423 = vst.msk [vmem:[%s4183_s15 + $0x1c] sm:$0xf] %vm2415_vm4, %v2604_v48  ;;  %v2603_v16 = vpack.c.bf16 %v2341_v15, %v2341_v15  ;;  %v2267_v60 = vld [vmem:[#allocation3 + $0x50] sm:$0xff]  ;;  %v2235_v49 = vpop.permute.xlu1 %2234 }
 0x2b1   : > { %2044 = vst.msk [vmem:[#allocation3 + $0x70] sm:$0xff] %vm401_vm10, %v2027_v56  ;;  %v2344_v21 = vmax.f32 %v2328_v1, 0.0  ;;  %v2327_v53 = vadd.f32 %v4158_v10, %v2304_v4  ;;  %v2307_v0 = vmul.f32 %v4148_v59, %v2284_v3  ;;  %v2283_v7 = vmul.f32 %v2267_v60, %v2251_v43 }
 0x2b2   : > { %2422 = vst.msk [vmem:[%s4183_s15 + $0x18] sm:$0xf] %vm2415_vm4, %v2603_v16  ;;  %v2270_v33 = vld [vmem:[#allocation3 + $0x68] sm:$0xff]  ;;  %v2255_v32 = vsel %vm1996_vm3, %v4104_v62, %v2235_v49 }
 0x2b3   : > { %v2606_v6 = vpack.c.bf16 %v2344_v21, %v2344_v21  ;;  %v2343_v37 = vmax.f32 %v2327_v53, 0.0  ;;  %v2330_v31 = vadd.f32 %v4158_v10, %v2307_v0  ;;  %v2306_v52 = vmul.f32 %v4148_v59, %v2283_v7  ;;  %v2269_v27 = vld [vmem:[#allocation3 + $0x60] sm:$0xff] }
 0x2b4   : > { %v2286_v13 = vmul.f32 %v2270_v33, %v2254_v38  ;;  %v2285_v57 = vmul.f32 %v2269_v27, %v2253_v61 }
 0x2b5   : > { %2425 = vst.msk [vmem:[%s4183_s15 + $0x24] sm:$0xf] %vm2415_vm4, %v2606_v6  ;;  %v2605_v36 = vpack.c.bf16 %v2343_v37, %v2343_v37  ;;  %v2346_v40 = vmax.f32 %v2330_v31, 0.0  ;;  %v2329_v19 = vadd.f32 %v4158_v10, %v2306_v52 }
 0x2b6   : > { %v2272_v34 = vld [vmem:[#allocation3 + $0x78] sm:$0xff]  ;;  %v2309_v41 = vmul.f32 %v4148_v59, %v2286_v13  ;;  %v2308_v42 = vmul.f32 %v4148_v59, %v2285_v57 }
 0x2b7   : > { %v2288_v47 = vmul.f32 %v2272_v34, %v2256_v50  ;;  %2424 = vst.msk [vmem:[%s4183_s15 + $0x20] sm:$0xf] %vm2415_vm4, %v2605_v36  ;;  %v2608_v5 = vpack.c.bf16 %v2346_v40, %v2346_v40  ;;  %v2345_v29 = vmax.f32 %v2329_v19, 0.0 }
 0x2b8   : > { %v2271_v24 = vld [vmem:[#allocation3 + $0x70] sm:$0xff]  ;;  %v2332_v26 = vadd.f32 %v4158_v10, %v2309_v41  ;;  %v2331_v17 = vadd.f32 %v4158_v10, %v2308_v42 }
 0x2b9   : > { %v2311_v11 = vmul.f32 %v4148_v59, %v2288_v47  ;;  %v2287_v45 = vmul.f32 %v2271_v24, %v2255_v32  ;;  %2427 = vst.msk [vmem:[%s4183_s15 + $0x2c] sm:$0xf] %vm2415_vm4, %v2608_v5  ;;  %v2607_v63 = vpack.c.bf16 %v2345_v29, %v2345_v29 }
 0x2ba   : > { %v2348_v8 = vmax.f32 %v2332_v26, 0.0  ;;  %v2347_v58 = vmax.f32 %v2331_v17, 0.0 }
 0x2bb   : > { %v2334_v14 = vadd.f32 %v4158_v10, %v2311_v11  ;;  %v2310_v62 = vmul.f32 %v4148_v59, %v2287_v45  ;;  %2426 = vst.msk [vmem:[%s4183_s15 + $0x28] sm:$0xf] %vm2415_vm4, %v2607_v63 }
 0x2bc   : > { %v2610_v22 = vpack.c.bf16 %v2348_v8, %v2348_v8  ;;  %v2609_v30 = vpack.c.bf16 %v2347_v58, %v2347_v58 }
 0x2bd   : > { %v2350_v23 = vmax.f32 %v2334_v14, 0.0  ;;  %v2333_v54 = vadd.f32 %v4158_v10, %v2310_v62 }
 0x2be   : > { %2429 = vst.msk [vmem:[%s4183_s15 + $0x34] sm:$0xf] %vm2415_vm4, %v2610_v22  ;;  %2428 = vst.msk [vmem:[%s4183_s15 + $0x30] sm:$0xf] %vm2415_vm4, %v2609_v30 }
 0x2bf   : > { %v2612_v46 = vpack.c.bf16 %v2350_v23, %v2350_v23  ;;  %v2349_v28 = vmax.f32 %v2333_v54, 0.0 }
 0x2c1   : > { %2431 = vst.msk [vmem:[%s4183_s15 + $0x3c] sm:$0xf] %vm2415_vm4, %v2612_v46  ;;  %v2611_v9 = vpack.c.bf16 %v2349_v28, %v2349_v28 }
 0x2c3   : > { %2430 = vst.msk [vmem:[%s4183_s15 + $0x38] sm:$0xf] %vm2415_vm4, %v2611_v9 }
 0x2c4 PF: > { %s17_s26 = sadd.s32 1, %s2976_s26   ;;  %s4386_s24 = smov %s2972_s25 }
 0x2c5   : > { %p14_p6 = scmp.ge.s32.totalorder %s17_s26, 4   ;;  %s4387_s25 = smov %s4389_s27 }
 0x2c7   :  { %16 = sbr.rel (!%p14_p6) target bundleno = 2 (0x2), region = 97 }

// kernel: gat_forward.11
= control target key start
LH: loop header
LB: loop body
LE: loop exit
PB: predicated region body
PF: predicated region fallthrough
CT: control target
= control target key end

     0   :  { %s2251_s24 = smov 0   ;;  %s2253_s25 = smov 0   ;;  %s2911_s0 = inlined_call_operand.vmem [shape: s8[256,256], index: 0, kind: input, shape index: {}]   ;;  %s2912_s1 = inlined_call_operand.vmem [shape: bf16[256,8], index: 1, kind: input, shape index: {}]   ;;  %s2913_s2 = inlined_call_operand.vmem [shape: f32[1,256], index: 2, kind: input, shape index: {}]   ;;  %s2914_s3 = inlined_call_operand.vmem [shape: f32[256,1], index: 3, kind: input, shape index: {}]   ;;  %s2915_s4 = inlined_call_operand.vmem [shape: f32[256,1], index: 4, kind: input, shape index: {}]   ;;  %s2916_s5 = inlined_call_operand.vmem [shape: f32[1,8], index: 5, kind: input, shape index: {}]   ;;  %s2917_s6 = inlined_call_operand.vmem [shape: f32[1,8], index: 6, kind: input, shape index: {}]   ;;  %s2918_s7 = inlined_call_operand.vmem [shape: f32[256,8], index: 7, kind: output, shape index: {}]  }
   0x1   :  { %s2255_s26 = smov 0  }
   0x2 LB: > { %s29_s27 = sadd.s32 1, %s2203_s25  ;;  %p1870_p0 = scmp.ge.s32.totalorder %s2207_s26, 1  ;;  %s2207_s26 = sphi %s2255_s26, %s17_s26   ;;  %s2203_s25 = sphi %s2253_s25, %s2929_s25   ;;  %s2199_s24 = sphi %s2251_s24, %s2928_s24  }
   0x3   : > { %p31_p1 = scmp.ge.s32.totalorder %s29_s27, 2  ;;  %p290_p2 = scmp.lt.s32.totalorder %s2207_s26, 3 }
   0x5   : > { %s2931_s27 = smov (%p31_p1, %s29_s27), 0  ;;  %p291_p3 = pnand %p1870_p0, %p290_p2 }
   0x7   : > { %294 = sbr.rel (%p291_p3) target bundleno = 861 (0x35d), region = 48 }
   0xe   : > { %s1874_s28 = sshll.u32 %s2199_s24, 4  ;;  %v2209_v0 = vmov 0   ;;  %v2009_v1 = vld [vmem:[%s2912_s1 + $0x40] sm:$0xff]   ;;  %v2011_v11 = vld [vmem:[%s2912_s1 + $0x48] sm:$0xff]   ;;  %v2013_v13 = vld [vmem:[%s2912_s1 + $0x50] sm:$0xff]   ;;  %s1871_s11 = sshll.u32 %s2199_s24, 2  ;;  %v622_v50 = vlaneseq }
   0xf   : > { %2008 = vset.pattern.permute.xlu1 %v2209_v0  ;;  %2007 = vset.pattern.permute.xlu0 %v2209_v0  ;;  %p359_p4 = scmp.lt.s32.totalorder %s1874_s28, 31  ;;  %v2010_v2 = vld [vmem:[%s2912_s1] sm:$0xff]   ;;  %v2012_v12 = vld [vmem:[%s2912_s1 + $0x8] sm:$0xff]   ;;  %v2014_v16 = vld [vmem:[%s2912_s1 + $0x10] sm:$0xff]   ;;  %vm381_vm0 = vcmask 7168   ;;  %v2919_v49 = vmov 0.0  }
  0x10   : > { %1901 = vmatprep.subr.bf16.mxu0 %v2009_v1  ;;  %1965 = vmatprep.subr.bf16.mxu1 %v2009_v1  ;;  %v2015_v17 = vld [vmem:[%s2912_s1 + $0x58] sm:$0xff]   ;;  %v2017_v21 = vld [vmem:[%s2912_s1 + $0x60] sm:$0xff]   ;;  %v2019_v25 = vld [vmem:[%s2912_s1 + $0x68] sm:$0xff]   ;;  %382 = vst.msk [vmem:[#allocation2] sm:$0xff] %vm381_vm0, %v2919_v49  ;;  %p343_p5 = scmp.lt.s32.totalorder %s1871_s11, 7  ;;  %v623_v51 = vshrl.u32 %v622_v50, 7 }
  0x11   : > { %s2933_s28 = smov (!%p359_p4, %s1874_s28), 31  ;;  %1902 = vmatpush3.bf16.msra.mxu0 %v2010_v2  ;;  %1973 = vmatpush3.bf16.msra.mxu1 %v2010_v2  ;;  %v2016_v20 = vld [vmem:[%s2912_s1 + $0x18] sm:$0xff]   ;;  %v2018_v24 = vld [vmem:[%s2912_s1 + $0x20] sm:$0xff]   ;;  %v2020_v28 = vld [vmem:[%s2912_s1 + $0x28] sm:$0xff]   ;;  %383 = vst.msk [vmem:[#allocation2 + $0x8] sm:$0xff] %vm381_vm0, %v2919_v49 }
  0x12   : > { %s2278_s10 = sshll.u32 %s2933_s28, 3  ;;  %1903 = vmatprep.subr.bf16.mxu0 %v2011_v11  ;;  %1966 = vmatprep.subr.bf16.mxu1 %v2011_v11  ;;  %v2021_v29 = vld [vmem:[%s2912_s1 + $0x70] sm:$0xff]   ;;  %v2023_v33 = vld [vmem:[%s2912_s1 + $0x78] sm:$0xff]   ;;  %384 = vst.msk [vmem:[#allocation2 + $0x10] sm:$0xff] %vm381_vm0, %v2919_v49  ;;  %385 = vst.msk [vmem:[#allocation2 + $0x18] sm:$0xff] %vm381_vm0, %v2919_v49  ;;  %s2935_s11 = smov (!%p343_p5, %s1871_s11), 7 }
  0x13   : > { %s2284_s13 = scalar_lea.vmem %s2914_s3, %s2278_s10  ;;  %s2294_s16 = scalar_lea.vmem %s2915_s4, %s2278_s10  ;;  %v2022_v32 = vld [vmem:[%s2912_s1 + $0x30] sm:$0xff]   ;;  %v2024_v36 = vld [vmem:[%s2912_s1 + $0x38] sm:$0xff]   ;;  %386 = vst.msk [vmem:[#allocation2 + $0x20] sm:$0xff] %vm381_vm0, %v2919_v49  ;;  %387 = vst.msk [vmem:[#allocation2 + $0x28] sm:$0xff] %vm381_vm0, %v2919_v49  ;;  %v624_v54 = vsub.s32 0, %v623_v51  ;;  %v628_v55 = vsub.s32 1, %v623_v51 }
  0x14   : > { %v532_v3 = vld [vmem:[%s2284_s13 + $0x40] sm:$0xff]  ;;  %v533_v5 = vld [vmem:[%s2284_s13 + $0x48] sm:$0xff]  ;;  %v527_v14 = vld [vmem:[%s2284_s13 + $0x18] sm:$0xff]  ;;  %388 = vst.msk [vmem:[#allocation2 + $0x30] sm:$0xff] %vm381_vm0, %v2919_v49  ;;  %s1900_s24 = sshll.u32 %s2935_s11, 4  ;;  %s2852_s23 = scalar_lea.vmem %s2918_s7, %s2278_s10 }
  0x15   : > { %v524_v4 = vld [vmem:[%s2284_s13] sm:$0xff]  ;;  %583 = vperm.xlu1 %2008, %v532_v3   ;;  %v525_v6 = vld [vmem:[%s2284_s13 + $0x8] sm:$0xff]  ;;  %v526_v15 = vld [vmem:[%s2284_s13 + $0x10] sm:$0xff]  ;;  %1904 = vmatpush3.bf16.msra.mxu0 %v2012_v12  ;;  %389 = vst.msk [vmem:[#allocation2 + $0x38] sm:$0xff] %vm381_vm0, %v2919_v49  ;;  %s2402_s12 = scalar_lea.vmem %s2911_s0, %s1900_s24 }
  0x16   : > { %543 = vperm.xlu0 %2007, %v524_v4   ;;  %v761_v7 = vld [vmem:[%s2294_s16 + $0x8] sm:$0xff]  ;;  %v760_v8 = vld [vmem:[%s2294_s16] sm:$0xff]  ;;  %1974 = vmatpush3.bf16.msra.mxu1 %v2012_v12  ;;  %v535_v18 = vld [vmem:[%s2284_s13 + $0x58] sm:$0xff]  ;;  %390 = vst.msk [vmem:[#allocation2 + $0x40] sm:$0xff] %vm381_vm0, %v2919_v49 }
  0x17   : > { %v769_v9 = vld [vmem:[%s2294_s16 + $0x48] sm:$0xff]  ;;  %v768_v10 = vld [vmem:[%s2294_s16 + $0x40] sm:$0xff]  ;;  %1905 = vmatprep.subr.bf16.mxu0 %v2013_v13  ;;  %1967 = vmatprep.subr.bf16.mxu1 %v2013_v13  ;;  %v534_v19 = vld [vmem:[%s2284_s13 + $0x50] sm:$0xff]  ;;  %391 = vst.msk [vmem:[#allocation2 + $0x48] sm:$0xff] %vm381_vm0, %v2919_v49 }
  0x18   : > { %v763_v22 = vld [vmem:[%s2294_s16 + $0x18] sm:$0xff]  ;;  %v762_v23 = vld [vmem:[%s2294_s16 + $0x10] sm:$0xff]  ;;  %v529_v30 = vld [vmem:[%s2284_s13 + $0x28] sm:$0xff]  ;;  %392 = vst.msk [vmem:[#allocation2 + $0x50] sm:$0xff] %vm381_vm0, %v2919_v49 }
  0x19   : > { %588 = vperm.xlu1 %2008, %v533_v5   ;;  %1906 = vmatpush3.bf16.msra.mxu0 %v2014_v16  ;;  %v771_v26 = vld [vmem:[%s2294_s16 + $0x58] sm:$0xff]  ;;  %v770_v27 = vld [vmem:[%s2294_s16 + $0x50] sm:$0xff]  ;;  %v528_v31 = vld [vmem:[%s2284_s13 + $0x20] sm:$0xff]  ;;  %393 = vst.msk [vmem:[#allocation2 + $0x58] sm:$0xff] %vm381_vm0, %v2919_v49 }
  0x1a   : > { %548 = vperm.xlu0 %2007, %v525_v6   ;;  %1975 = vmatpush3.bf16.msra.mxu1 %v2014_v16  ;;  %v537_v34 = vld [vmem:[%s2284_s13 + $0x68] sm:$0xff]  ;;  %v536_v35 = vld [vmem:[%s2284_s13 + $0x60] sm:$0xff]  ;;  %v531_v41 = vld [vmem:[%s2284_s13 + $0x38] sm:$0xff]  ;;  %394 = vst.msk [vmem:[#allocation2 + $0x60] sm:$0xff] %vm381_vm0, %v2919_v49 }
  0x1b   : > { %1907 = vmatprep.subr.bf16.mxu0 %v2015_v17  ;;  %1968 = vmatprep.subr.bf16.mxu1 %v2015_v17  ;;  %v765_v37 = vld [vmem:[%s2294_s16 + $0x28] sm:$0xff]  ;;  %v764_v38 = vld [vmem:[%s2294_s16 + $0x20] sm:$0xff]  ;;  %v530_v42 = vld [vmem:[%s2284_s13 + $0x30] sm:$0xff]  ;;  %395 = vst.msk [vmem:[#allocation2 + $0x68] sm:$0xff] %vm381_vm0, %v2919_v49 }
  0x1c   : > { %v773_v39 = vld [vmem:[%s2294_s16 + $0x68] sm:$0xff]  ;;  %v772_v40 = vld [vmem:[%s2294_s16 + $0x60] sm:$0xff]  ;;  %v539_v43 = vld [vmem:[%s2284_s13 + $0x78] sm:$0xff]  ;;  %396 = vst.msk [vmem:[#allocation2 + $0x70] sm:$0xff] %vm381_vm0, %v2919_v49 }
  0x1d   : > { %783 = vperm.xlu1 %2008, %v761_v7   ;;  %1908 = vmatpush3.bf16.msra.mxu0 %v2016_v20  ;;  %v538_v44 = vld [vmem:[%s2284_s13 + $0x70] sm:$0xff]  ;;  %v767_v45 = vld [vmem:[%s2294_s16 + $0x38] sm:$0xff]  ;;  %397 = vst.msk [vmem:[#allocation2 + $0x78] sm:$0xff] %vm381_vm0, %v2919_v49  ;;  %v415_v52 = vld [vmem:[%s2402_s12] sm:$0xff] }
  0x1e   : > { %778 = vperm.xlu0 %2007, %v760_v8   ;;  %1976 = vmatpush3.bf16.msra.mxu1 %v2016_v20  ;;  %v766_v46 = vld [vmem:[%s2294_s16 + $0x30] sm:$0xff]  ;;  %v775_v47 = vld [vmem:[%s2294_s16 + $0x78] sm:$0xff]  ;;  %v416_v53 = vld [vmem:[%s2402_s12 + $0x8] sm:$0xff]  ;;  %v423_v56 = vunpack.c.0.s8 %v415_v52  ;;  %v425_v62 = vunpack.c.1.s8 %v415_v52  ;;  %v427_v12 = vunpack.c.2.s8 %v415_v52  ;;  %v429_v13 = vunpack.c.3.s8 %v415_v52 }
  0x1f   : > { %1909 = vmatprep.subr.bf16.mxu0 %v2017_v21  ;;  %1969 = vmatprep.subr.bf16.mxu1 %v2017_v21  ;;  %v774_v48 = vld [vmem:[%s2294_s16 + $0x70] sm:$0xff]  ;;  %v420_v57 = vld [vmem:[%s2402_s12 + $0x28] sm:$0xff]  ;;  %v419_v58 = vld [vmem:[%s2402_s12 + $0x20] sm:$0xff]  ;;  %v424_v60 = vunpack.c.0.s8 %v416_v53  ;;  %v426_v61 = vunpack.c.1.s8 %v416_v53  ;;  %v428_v7 = vunpack.c.2.s8 %v416_v53  ;;  %v430_v8 = vunpack.c.3.s8 %v416_v53 }
  0x20   : > { %v540_v59 = vld [vmem:[%s2913_s2] sm:$0x3]  ;;  %v440_v63 = vunpack.c.0.s8 %v420_v57  ;;  %v442_v0 = vunpack.c.1.s8 %v420_v57  ;;  %v439_v1 = vunpack.c.0.s8 %v419_v58  ;;  %v2415_v4 = vcvt.s32.f32 %v423_v56 }
  0x21   : > { %823 = vperm.xlu1 %2008, %v769_v9   ;;  %1910 = vmatpush3.bf16.msra.mxu0 %v2018_v24  ;;  %v2411_v2 = vrot.slane %v540_v59, %v624_v54  ;;  %v2413_v3 = vrot.slane %v540_v59, %v628_v55  ;;  %v2417_v5 = vcvt.s32.f32 %v424_v60  ;;  %v441_v6 = vunpack.c.1.s8 %v419_v58  ;;  %v2420_v9 = vld [vmem:[%s2402_s12 + $0x10] sm:$0xff] }
  0x22   : > { %818 = vperm.xlu0 %2007, %v768_v10   ;;  %1977 = vmatpush3.bf16.msra.mxu1 %v2018_v24  ;;  %v2422_v10 = vcvt.s32.f32 %v426_v61  ;;  %v2424_v11 = vcvt.s32.f32 %v425_v62  ;;  %v2431_v16 = vcvt.s32.f32 %v442_v0  ;;  %v2433_v17 = vcvt.s32.f32 %v439_v1  ;;  %v2440_v24 = vld [vmem:[%s2402_s12 + $0x30] sm:$0xff] }
  0x23   : > { %1911 = vmatprep.subr.bf16.mxu0 %v2019_v25  ;;  %1970 = vmatprep.subr.bf16.mxu1 %v2019_v25  ;;  %v443_v20 = vunpack.c.2.s8 %v419_v58  ;;  %v445_v21 = vunpack.c.3.s8 %v419_v58  ;;  %v2442_v25 = vcvt.s32.f32 %v441_v6  ;;  %v449_v51 = vunpack.c.1.s8 %v2440_v24 }
  0x25   : > { %558 = vperm.xlu1 %2008, %v527_v14   ;;  %1912 = vmatpush3.bf16.msra.mxu0 %v2020_v28  ;;  %v2427_v14 = vld [vmem:[%s2402_s12 + $0x18] sm:$0xff] }
  0x26   : > { %553 = vperm.xlu0 %2007, %v526_v15   ;;  %1978 = vmatpush3.bf16.msra.mxu1 %v2020_v28  ;;  %v2429_v15 = vcvt.s32.f32 %v440_v63  ;;  %v432_v28 = vunpack.c.0.s8 %v2427_v14 }
  0x27   : > { %1913 = vmatprep.subr.bf16.mxu0 %v2021_v29  ;;  %1971 = vmatprep.subr.bf16.mxu1 %v2021_v29  ;;  %v2449_v29 = vcvt.s32.f32 %v427_v12 }
  0x29   : > { %598 = vperm.xlu1 %2008, %v535_v18   ;;  %1914 = vmatpush3.bf16.msra.mxu0 %v2022_v32  ;;  %v444_v18 = vunpack.c.2.s8 %v420_v57 }
  0x2a   : > { %593 = vperm.xlu0 %2007, %v534_v19   ;;  %1979 = vmatpush3.bf16.msra.mxu1 %v2022_v32  ;;  %v446_v19 = vunpack.c.3.s8 %v420_v57  ;;  %v433_v32 = vunpack.c.1.s8 %v2420_v9 }
  0x2b   : > { %1915 = vmatprep.subr.bf16.mxu0 %v2023_v33  ;;  %1972 = vmatprep.subr.bf16.mxu1 %v2023_v33  ;;  %v2455_v33 = vcvt.s32.f32 %v444_v18 }
  0x2c   : > { %v2476_v50 = vcvt.s32.f32 %v433_v32  ;;  %v2489_v32 = vcvt.s32.f32 %v449_v51 }
  0x2d   : > { %793 = vperm.xlu1 %2008, %v763_v22   ;;  %1916 = vmatpush3.bf16.msra.mxu0 %v2024_v36  ;;  %v431_v22 = vunpack.c.0.s8 %v2420_v9 }
  0x2e   : > { %788 = vperm.xlu0 %2007, %v762_v23   ;;  %1980 = vmatpush3.bf16.msra.mxu1 %v2024_v36  ;;  %v2437_v23 = vld [vmem:[%s2402_s12 + $0x38] sm:$0xff]  ;;  %v447_v36 = vunpack.c.0.s8 %v2440_v24 }
  0x30   : > { %v2483_v55 = vcvt.s32.f32 %v447_v36 }
  0x31   : > { %833 = vperm.xlu1 %2008, %v771_v26   ;;  %v2444_v26 = vcvt.s32.f32 %v428_v7 }
  0x32   : > { %828 = vperm.xlu0 %2007, %v770_v27   ;;  %v2446_v27 = vcvt.s32.f32 %v430_v8 }
  0x35   : > { %568 = vperm.xlu1 %2008, %v529_v30   ;;  %v2451_v30 = vcvt.s32.f32 %v429_v13 }
  0x36   : > { %563 = vperm.xlu0 %2007, %v528_v31   ;;  %v434_v31 = vunpack.c.1.s8 %v2427_v14 }
  0x39   : > { %608 = vperm.xlu1 %2008, %v537_v34   ;;  %v448_v34 = vunpack.c.0.s8 %v2437_v23 }
  0x3a   : > { %603 = vperm.xlu0 %2007, %v536_v35   ;;  %v450_v35 = vunpack.c.1.s8 %v2437_v23 }
  0x3b   : > { %v2479_v53 = vcvt.s32.f32 %v448_v34  ;;  %v438_v34 = vunpack.c.3.s8 %v2427_v14 }
  0x3c   : > { %v2481_v54 = vcvt.s32.f32 %v450_v35 }
  0x3d   : > { %803 = vperm.xlu1 %2008, %v765_v37  }
  0x3e   : > { %798 = vperm.xlu0 %2007, %v764_v38  }
  0x41   : > { %843 = vperm.xlu1 %2008, %v773_v39   ;;  %v2460_v39 = vcvt.s32.f32 %v446_v19 }
  0x42   : > { %838 = vperm.xlu0 %2007, %v772_v40   ;;  %v2462_v40 = vcvt.s32.f32 %v443_v20 }
  0x45   : > { %578 = vperm.xlu1 %2008, %v531_v41   ;;  %v2464_v41 = vcvt.s32.f32 %v445_v21 }
  0x46   : > { %573 = vperm.xlu0 %2007, %v530_v42   ;;  %v2466_v42 = vcvt.s32.f32 %v431_v22 }
  0x49   : > { %618 = vperm.xlu1 %2008, %v539_v43  }
  0x4a   : > { %613 = vperm.xlu0 %2007, %v538_v44  }
  0x4d   : > { %813 = vperm.xlu1 %2008, %v767_v45  }
  0x4e   : > { %808 = vperm.xlu0 %2007, %v766_v46   ;;  %v2471_v46 = vcvt.s32.f32 %v432_v28 }
  0x51   : > { %853 = vperm.xlu1 %2008, %v775_v47  }
  0x52   : > { %848 = vperm.xlu0 %2007, %v774_v48   ;;  %v2474_v48 = vcvt.s32.f32 %v434_v31 }
  0x94   : > { %v584_v37 = vpop.permute.xlu1 %583 }
  0x95   : > { %v544_v38 = vpop.permute.xlu0 %543  ;;  %v648_v43 = vadd.f32 %v2411_v2, %v584_v37  ;;  %v649_v47 = vadd.f32 %v2413_v3, %v584_v37 }
  0x96   : > { %v632_v44 = vadd.f32 %v2411_v2, %v544_v38  ;;  %v633_v45 = vadd.f32 %v2413_v3, %v544_v38 }
  0x97   : > { %v712_v56 = vmul.f32 0.2, %v648_v43  ;;  %v713_v0 = vmul.f32 0.2, %v649_v47  ;;  %vm680_vm3 = vcmp.gt.f32.partialorder %v648_v43, 0.0  ;;  %vm681_vm4 = vcmp.gt.f32.partialorder %v649_v47, 0.0 }
  0x98   : > { %v696_v52 = vmul.f32 0.2, %v632_v44  ;;  %v697_v57 = vmul.f32 0.2, %v633_v45  ;;  %v589_v58 = vpop.permute.xlu1 %588  ;;  %vm664_vm1 = vcmp.gt.f32.partialorder %v632_v44, 0.0  ;;  %vm665_vm2 = vcmp.gt.f32.partialorder %v633_v45, 0.0 }
  0x99   : > { %v549_v59 = vpop.permute.xlu0 %548  ;;  %v650_v60 = vadd.f32 %v2411_v2, %v589_v58  ;;  %v651_v61 = vadd.f32 %v2413_v3, %v589_v58  ;;  %v744_v37 = vsel %vm680_vm3, %v648_v43, %v712_v56  ;;  %v745_v38 = vsel %vm681_vm4, %v649_v47, %v713_v0 }
  0x9a   : > { %v634_v62 = vadd.f32 %v2411_v2, %v549_v59  ;;  %v635_v63 = vadd.f32 %v2413_v3, %v549_v59  ;;  %v728_v1 = vsel %vm664_vm1, %v632_v44, %v696_v52  ;;  %v729_v12 = vsel %vm665_vm2, %v633_v45, %v697_v57 }
  0x9b   : > { %v714_v6 = vmul.f32 0.2, %v650_v60  ;;  %v715_v7 = vmul.f32 0.2, %v651_v61  ;;  %vm682_vm7 = vcmp.gt.f32.partialorder %v650_v60, 0.0  ;;  %vm683_vm8 = vcmp.gt.f32.partialorder %v651_v61, 0.0 }
  0x9c   : > { %v698_v8 = vmul.f32 0.2, %v634_v62  ;;  %v699_v13 = vmul.f32 0.2, %v635_v63  ;;  %v784_v18 = vpop.permute.xlu1 %783  ;;  %vm666_vm5 = vcmp.gt.f32.partialorder %v634_v62, 0.0  ;;  %vm667_vm6 = vcmp.gt.f32.partialorder %v635_v63, 0.0 }
  0x9d   : > { %v779_v19 = vpop.permute.xlu0 %778  ;;  %v746_v52 = vsel %vm682_vm7, %v650_v60, %v714_v6  ;;  %v747_v57 = vsel %vm683_vm8, %v651_v61, %v715_v7 }
  0x9e   : > { %v730_v20 = vsel %vm666_vm5, %v634_v62, %v698_v8  ;;  %v856_v21 = vsub.f32 %v728_v1, %v779_v19  ;;  %v857_v22 = vsub.f32 %v729_v12, %v779_v19  ;;  %v731_v28 = vsel %vm667_vm6, %v635_v63, %v699_v13 }
  0x9f   : > { %v858_v31 = vsub.f32 %v730_v20, %v784_v18  ;;  %v859_v35 = vsub.f32 %v731_v28, %v784_v18  ;;  %v437_v12 = vunpack.c.3.s8 %v2420_v9 }
  0xa0   : > { %v888_v36 = vmul.f32 1.442695, %v856_v21  ;;  %v890_v45 = vmul.f32 1.442695, %v857_v22  ;;  %v824_v58 = vpop.permute.xlu1 %823  ;;  %v2501_v21 = vcvt.s32.f32 %v438_v34 }
  0xa1   : > { %v892_v44 = vmul.f32 1.442695, %v858_v31  ;;  %v819_v59 = vpop.permute.xlu0 %818  ;;  %v894_v62 = vmul.f32 1.442695, %v859_v35  ;;  %v874_v63 = vsub.f32 %v746_v52, %v824_v58  ;;  %v875_v1 = vsub.f32 %v747_v57, %v824_v58 }
  0xa2   : > { %2025 = vpow2.f32 %v888_v36  ;;  %v872_v51 = vsub.f32 %v744_v37, %v819_v59  ;;  %v873_v8 = vsub.f32 %v745_v38, %v819_v59  ;;  %2921 = vst [vmem:[#allocation4_spill] sm:$0xff] %v2501_v21  ;;  %v2503_v22 = vcvt.s32.f32 %v437_v12 }
  0xa3   : > { %2027 = vpow2.f32 %v892_v44  ;;  %v924_v13 = vmul.f32 1.442695, %v874_v63  ;;  %v926_v43 = vmul.f32 1.442695, %v875_v1 }
  0xa4   : > { %2029 = vpow2.f32 %v894_v62  ;;  %v920_v56 = vmul.f32 1.442695, %v872_v51  ;;  %v922_v60 = vmul.f32 1.442695, %v873_v8  ;;  %v559_v61 = vpop.permute.xlu1 %558  ;;  %2922 = vst [vmem:[#allocation5_spill] sm:$0xff] %v2503_v22 }
  0xa5   : > { %2031 = vpow2.f32 %v890_v45  ;;  %v554_v0 = vpop.permute.xlu0 %553  ;;  %v638_v7 = vadd.f32 %v2411_v2, %v559_v61  ;;  %v639_v18 = vadd.f32 %v2413_v3, %v559_v61 }
  0xa6   : > { %2033 = vpow2.f32 %v924_v13  ;;  %v636_v19 = vadd.f32 %v2411_v2, %v554_v0  ;;  %v637_v20 = vadd.f32 %v2413_v3, %v554_v0 }
  0xa7   : > { %2035 = vpow2.f32 %v926_v43  ;;  %v702_v28 = vmul.f32 0.2, %v638_v7  ;;  %v703_v31 = vmul.f32 0.2, %v639_v18  ;;  %vm670_vm9 = vcmp.gt.f32.partialorder %v638_v7, 0.0 }
  0xa8   : > { %2037 = vpow2.f32 %v920_v56  ;;  %v700_v35 = vmul.f32 0.2, %v636_v19  ;;  %v701_v36 = vmul.f32 0.2, %v637_v20  ;;  %v599_v37 = vpop.permute.xlu1 %598  ;;  %vm671_vm10 = vcmp.gt.f32.partialorder %v639_v18, 0.0 }
  0xa9   : > { %2039 = vpow2.f32 %v922_v60  ;;  %v594_v38 = vpop.permute.xlu0 %593  ;;  %v654_v44 = vadd.f32 %v2411_v2, %v599_v37  ;;  %v655_v45 = vadd.f32 %v2413_v3, %v599_v37  ;;  %v734_v57 = vsel %vm670_vm9, %v638_v7, %v702_v28 }
  0xaa   : > { %v652_v52 = vadd.f32 %v2411_v2, %v594_v38  ;;  %v653_v34 = vadd.f32 %v2413_v3, %v594_v38  ;;  %v735_v58 = vsel %vm671_vm10, %v639_v18, %v703_v31  ;;  %vm668_vm11 = vcmp.gt.f32.partialorder %v636_v19, 0.0 }
  0xab   : > { %vm669_vm12 = vcmp.gt.f32.partialorder %v637_v20, 0.0  ;;  %v718_v62 = vmul.f32 0.2, %v654_v44  ;;  %v719_v63 = vmul.f32 0.2, %v655_v45  ;;  %v732_v51 = vsel %vm668_vm11, %v636_v19, %v700_v35 }
  0xac   : > { %v2026_v59 = vpop.eup %2025  ;;  %v716_v1 = vmul.f32 0.2, %v652_v52  ;;  %v717_v12 = vmul.f32 0.2, %v653_v34  ;;  %v794_v13 = vpop.permute.xlu1 %793  ;;  %v733_v43 = vsel %vm669_vm12, %v637_v20, %v701_v36  ;;  %vm686_vm13 = vcmp.gt.f32.partialorder %v654_v44, 0.0 }
  0xad   : > { %v2028_v8 = vpop.eup %2027  ;;  %v789_v56 = vpop.permute.xlu0 %788  ;;  %vm687_vm14 = vcmp.gt.f32.partialorder %v655_v45, 0.0  ;;  %v862_v61 = vsub.f32 %v734_v57, %v794_v13  ;;  %v863_v0 = vsub.f32 %v735_v58, %v794_v13  ;;  %v750_v28 = vsel %vm686_vm13, %v654_v44, %v718_v62 }
  0xae   : > { %v2030_v60 = vpop.eup %2029  ;;  %v860_v37 = vsub.f32 %v732_v51, %v789_v56  ;;  %v861_v7 = vsub.f32 %v733_v43, %v789_v56  ;;  %v751_v31 = vsel %vm687_vm14, %v655_v45, %v719_v63  ;;  %vm684_vm15 = vcmp.gt.f32.partialorder %v652_v52, 0.0 }
  0xaf   : > { %v2032_v18 = vpop.eup %2031  ;;  %vm685_vm1 = vcmp.gt.f32.partialorder %v653_v34, 0.0  ;;  %v900_v49 = vmul.f32 1.442695, %v862_v61  ;;  %v902_v19 = vmul.f32 1.442695, %v863_v0  ;;  %v748_v6 = vsel %vm684_vm15, %v652_v52, %v716_v1 }
  0xb0   : > { %v2034_v38 = vpop.eup %2033  ;;  %v896_v35 = vmul.f32 1.442695, %v860_v37  ;;  %v898_v20 = vmul.f32 1.442695, %v861_v7  ;;  %v834_v36 = vpop.permute.xlu1 %833  ;;  %v749_v21 = vsel %vm685_vm1, %v653_v34, %v717_v12  ;;  %v952_v57 = vmul.f32 %v2026_v59, %v2415_v4 }
  0xb1   : > { %v2036_v47 = vpop.eup %2035  ;;  %v829_v22 = vpop.permute.xlu0 %828  ;;  %v953_v58 = vmul.f32 %v2032_v18, %v2417_v5  ;;  %2041 = vpow2.f32 %v900_v49  ;;  %v878_v44 = vsub.f32 %v750_v28, %v834_v36  ;;  %v879_v45 = vsub.f32 %v751_v31, %v834_v36 }
  0xb2   : > { %v2038_v51 = vpop.eup %2037  ;;  %v876_v62 = vsub.f32 %v748_v6, %v829_v22  ;;  %2043 = vpow2.f32 %v902_v19  ;;  %v877_v13 = vsub.f32 %v749_v21, %v829_v22  ;;  %v955_v52 = vmul.f32 %v2030_v60, %v2422_v10 }
  0xb3   : > { %v2040_v63 = vpop.eup %2039  ;;  %v984_v43 = vadd.f32 %v953_v58, %v952_v57  ;;  %2045 = vpow2.f32 %v896_v35  ;;  %v932_v1 = vmul.f32 1.442695, %v878_v44  ;;  %v934_v56 = vmul.f32 1.442695, %v879_v45 }
  0xb4   : > { %v928_v34 = vmul.f32 1.442695, %v876_v62  ;;  %2047 = vpow2.f32 %v898_v20  ;;  %v930_v12 = vmul.f32 1.442695, %v877_v13  ;;  %v1033_v4 = vpack.c.bf16 %v955_v52, %v953_v58  ;;  %v569_v49 = vpop.permute.xlu1 %568 }
  0xb5   : > { %985 = vadd.xlane.f32.xlu0 %v984_v43  ;;  %v954_v5 = vmul.f32 %v2028_v8, %v2424_v11  ;;  %v564_v59 = vpop.permute.xlu0 %563  ;;  %2049 = vpow2.f32 %v932_v1  ;;  %v642_v6 = vadd.f32 %v2411_v2, %v569_v49  ;;  %v643_v21 = vadd.f32 %v2413_v3, %v569_v49 }
  0xb6   : > { %v640_v22 = vadd.f32 %v2411_v2, %v564_v59  ;;  %2051 = vpow2.f32 %v934_v56  ;;  %1176 = vmatprep.mubr.bf16.mxu0 %v1033_v4  ;;  %v641_v61 = vadd.f32 %v2413_v3, %v564_v59  ;;  %v2518_v8 = vmul.f32 %v2040_v63, %v2429_v15 }
  0xb7   : > { %v987_v10 = vadd.f32 %v955_v52, %v954_v5  ;;  %v1032_v60 = vpack.c.bf16 %v954_v5, %v952_v57  ;;  %2053 = vpow2.f32 %v928_v34  ;;  %v706_v0 = vmul.f32 0.2, %v642_v6 }
  0xb8   : > { %v707_v37 = vmul.f32 0.2, %v643_v21  ;;  %v704_v7 = vmul.f32 0.2, %v640_v22  ;;  %2055 = vpow2.f32 %v930_v12  ;;  %v705_v11 = vmul.f32 0.2, %v641_v61  ;;  %v609_v28 = vpop.permute.xlu1 %608 }
  0xb9   : > { %988 = vadd.xlane.f32.xlu1 %v987_v10  ;;  %1177 = vmatmul.mubr.bf16.vlgmr.msra.gmra.mrb[0].mxu0 %v1032_v60  ;;  %v2521_v18 = vmul.f32 %v2036_v47, %v2431_v16  ;;  %v604_v31 = vpop.permute.xlu0 %603  ;;  %v2524_v19 = vmul.f32 %v2038_v51, %v2433_v17  ;;  %v2527_v35 = vmul.f32 %v2034_v38, %v2442_v25  ;;  %vm674_vm2 = vcmp.gt.f32.partialorder %v642_v6, 0.0 }
  0xba   : > { %v658_v20 = vadd.f32 %v2411_v2, %v609_v28  ;;  %v659_v36 = vadd.f32 %v2413_v3, %v609_v28  ;;  %v656_v15 = vadd.f32 %v2411_v2, %v604_v31  ;;  %v657_v16 = vadd.f32 %v2413_v3, %v604_v31 }
  0xbb   : > { %v1041_v57 = vpack.c.bf16 %v2521_v18, %v2518_v8  ;;  %v2042_v47 = vpop.eup %2041  ;;  %v1040_v17 = vpack.c.bf16 %v2527_v35, %v2524_v19  ;;  %vm675_vm3 = vcmp.gt.f32.partialorder %v643_v21, 0.0  ;;  %v738_v45 = vsel %vm674_vm2, %v642_v6, %v706_v0 }
  0xbc   : > { %v722_v58 = vmul.f32 0.2, %v658_v20  ;;  %v723_v51 = vmul.f32 0.2, %v659_v36  ;;  %v2044_v25 = vpop.eup %2043  ;;  %v720_v38 = vmul.f32 0.2, %v656_v15  ;;  %v739_v62 = vsel %vm675_vm3, %v643_v21, %v707_v37  ;;  %v804_v63 = vpop.permute.xlu1 %803 }
  0xbd   : > { %1208 = vmatprep.mubr.bf16.mxu1 %v1041_v57  ;;  %v721_v44 = vmul.f32 0.2, %v657_v16  ;;  %v799_v13 = vpop.permute.xlu0 %798  ;;  %v2046_v43 = vpop.eup %2045  ;;  %v866_v52 = vsub.f32 %v738_v45, %v804_v63  ;;  %v867_v1 = vsub.f32 %v739_v62, %v804_v63  ;;  %vm672_vm4 = vcmp.gt.f32.partialorder %v640_v22, 0.0 }
  0xbe   : > { %1209 = vmatmul.mubr.bf16.vlgmr.msra.gmra.mrb[0].mxu1 %v1040_v17  ;;  %vm673_vm5 = vcmp.gt.f32.partialorder %v641_v61, 0.0  ;;  %v2048_v56 = vpop.eup %2047  ;;  %v736_v34 = vsel %vm672_vm4, %v640_v22, %v704_v7  ;;  %vm690_vm6 = vcmp.gt.f32.partialorder %v658_v20, 0.0  ;;  %vm691_vm7 = vcmp.gt.f32.partialorder %v659_v36, 0.0 }
  0xbf   : > { %v737_v12 = vsel %vm673_vm5, %v641_v61, %v705_v11  ;;  %v2050_v4 = vpop.eup %2049  ;;  %v908_v5 = vmul.f32 1.442695, %v866_v52  ;;  %v910_v49 = vmul.f32 1.442695, %v867_v1  ;;  %v864_v59 = vsub.f32 %v736_v34, %v799_v13 }
  0xc0   : > { %v865_v10 = vsub.f32 %v737_v12, %v799_v13  ;;  %v2052_v6 = vpop.eup %2051  ;;  %v754_v21 = vsel %vm690_vm6, %v658_v20, %v722_v58  ;;  %v755_v60 = vsel %vm691_vm7, %v659_v36, %v723_v51  ;;  %v844_v0 = vpop.permute.xlu1 %843  ;;  %vm688_vm8 = vcmp.gt.f32.partialorder %v656_v15, 0.0 }
  0xc1   : > { %vm689_vm9 = vcmp.gt.f32.partialorder %v657_v16, 0.0  ;;  %v839_v37 = vpop.permute.xlu0 %838  ;;  %v2054_v28 = vpop.eup %2053  ;;  %2057 = vpow2.f32 %v908_v5  ;;  %v904_v31 = vmul.f32 1.442695, %v864_v59  ;;  %v882_v22 = vsub.f32 %v754_v21, %v844_v0 }
  0xc2   : > { %v906_v57 = vmul.f32 1.442695, %v865_v10  ;;  %v2056_v61 = vpop.eup %2055  ;;  %2059 = vpow2.f32 %v910_v49  ;;  %v883_v7 = vsub.f32 %v755_v60, %v844_v0  ;;  %v752_v11 = vsel %vm688_vm8, %v656_v15, %v720_v38 }
  0xc3   : > { %v753_v17 = vsel %vm689_vm9, %v657_v16, %v721_v44  ;;  %2061 = vpow2.f32 %v904_v31  ;;  %v940_v45 = vmul.f32 1.442695, %v882_v22  ;;  %v880_v62 = vsub.f32 %v752_v11, %v839_v37 }
  0xc4   : > { %v881_v63 = vsub.f32 %v753_v17, %v839_v37  ;;  %2063 = vpow2.f32 %v906_v57  ;;  %v942_v20 = vmul.f32 1.442695, %v883_v7  ;;  %v957_v36 = vmul.f32 %v2048_v56, %v2444_v26  ;;  %v579_v51 = vpop.permute.xlu1 %578 }
  0xc5   : > { %v959_v58 = vmul.f32 %v2044_v25, %v2446_v27  ;;  %v574_v13 = vpop.permute.xlu0 %573  ;;  %2065 = vpow2.f32 %v940_v45  ;;  %v936_v52 = vmul.f32 1.442695, %v880_v62  ;;  %v956_v34 = vmul.f32 %v2046_v43, %v2449_v29 }
  0xc6   : > { %v938_v1 = vmul.f32 1.442695, %v881_v63  ;;  %2067 = vpow2.f32 %v942_v20  ;;  %v958_v16 = vmul.f32 %v2042_v47, %v2451_v30  ;;  %v646_v38 = vadd.f32 %v2411_v2, %v579_v51 }
  0xc7   : > { %v1035_v15 = vpack.c.bf16 %v959_v58, %v957_v36  ;;  %2069 = vpow2.f32 %v936_v52  ;;  %v990_v44 = vadd.f32 %v957_v36, %v956_v34  ;;  %v647_v12 = vadd.f32 %v2413_v3, %v579_v51 }
  0xc8   : > { %v644_v26 = vadd.f32 %v2411_v2, %v574_v13  ;;  %2071 = vpow2.f32 %v938_v1  ;;  %v1034_v27 = vpack.c.bf16 %v958_v16, %v956_v34  ;;  %v710_v25 = vmul.f32 0.2, %v646_v38  ;;  %v619_v5 = vpop.permute.xlu1 %618 }
  0xc9   : > { %1184 = vmatprep.mubr.bf16.mxu0 %v1035_v15  ;;  %v645_v56 = vadd.f32 %v2413_v3, %v574_v13  ;;  %v614_v29 = vpop.permute.xlu0 %613  ;;  %991 = vadd.xlane.f32.xlu0 %v990_v44  ;;  %v711_v43 = vmul.f32 0.2, %v647_v12  ;;  %v2546_v30 = vmul.f32 %v2056_v61, %v2455_v33  ;;  %v2549_v47 = vmul.f32 %v2052_v6, %v2460_v39 }
  0xca   : > { %v708_v49 = vmul.f32 0.2, %v644_v26  ;;  %1185 = vmatmul.mubr.bf16.gmra.mrb[4].mxu0 %v1034_v27  ;;  %v993_v10 = vadd.f32 %v959_v58, %v958_v16  ;;  %v2552_v21 = vmul.f32 %v2054_v28, %v2462_v40  ;;  %v2555_v60 = vmul.f32 %v2050_v4, %v2464_v41 }
  0xcb   : > { %v709_v59 = vmul.f32 0.2, %v645_v56  ;;  %v2557_v0 = vpop.eup %2057  ;;  %v1043_v37 = vpack.c.bf16 %v2549_v47, %v2546_v30  ;;  %v662_v33 = vadd.f32 %v2411_v2, %v619_v5  ;;  %v663_v31 = vadd.f32 %v2413_v3, %v619_v5 }
  0xcc   : > { %v660_v39 = vadd.f32 %v2411_v2, %v614_v29  ;;  %v2060_v6 = vpop.eup %2059  ;;  %v1042_v57 = vpack.c.bf16 %v2555_v60, %v2552_v21  ;;  %v661_v40 = vadd.f32 %v2413_v3, %v614_v29  ;;  %vm678_vm10 = vcmp.gt.f32.partialorder %v646_v38, 0.0  ;;  %v814_v41 = vpop.permute.xlu1 %813 }
  0xcd   : > { %vm679_vm11 = vcmp.gt.f32.partialorder %v647_v12, 0.0  ;;  %v809_v4 = vpop.permute.xlu0 %808  ;;  %v2062_v28 = vpop.eup %2061  ;;  %1216 = vmatprep.mubr.bf16.mxu1 %v1043_v37  ;;  %994 = vadd.xlane.f32.xlu0 %v993_v10  ;;  %v726_v22 = vmul.f32 0.2, %v662_v33  ;;  %v727_v61 = vmul.f32 0.2, %v663_v31  ;;  %v742_v11 = vsel %vm678_vm10, %v646_v38, %v710_v25 }
  0xce   : > { %v724_v7 = vmul.f32 0.2, %v660_v39  ;;  %v2064_v17 = vpop.eup %2063  ;;  %1217 = vmatmul.mubr.bf16.gmra.mrb[4].mxu1 %v1042_v57  ;;  %v725_v2 = vmul.f32 0.2, %v661_v40  ;;  %v743_v45 = vsel %vm679_vm11, %v647_v12, %v711_v43  ;;  %v870_v62 = vsub.f32 %v742_v11, %v814_v41 }
  0xcf   : > { %vm676_vm12 = vcmp.gt.f32.partialorder %v644_v26, 0.0  ;;  %v2066_v63 = vpop.eup %2065  ;;  %v871_v20 = vsub.f32 %v743_v45, %v814_v41  ;;  %vm677_vm13 = vcmp.gt.f32.partialorder %v645_v56, 0.0  ;;  %vm694_vm14 = vcmp.gt.f32.partialorder %v662_v33, 0.0 }
  0xd0   : > { %v740_v3 = vsel %vm676_vm12, %v644_v26, %v708_v49  ;;  %v2068_v36 = vpop.eup %2067  ;;  %v916_v58 = vmul.f32 1.442695, %v870_v62  ;;  %v741_v51 = vsel %vm677_vm13, %v645_v56, %v709_v59  ;;  %vm695_vm15 = vcmp.gt.f32.partialorder %v663_v31, 0.0  ;;  %v854_v52 = vpop.permute.xlu1 %853  ;;  %v2925_v62 = vld [vmem:[#allocation5_spill] sm:$0xff] }
  0xd1   : > { %v868_v13 = vsub.f32 %v740_v3, %v809_v4  ;;  %v2070_v1 = vpop.eup %2069  ;;  %v918_v34 = vmul.f32 1.442695, %v871_v20  ;;  %v869_v15 = vsub.f32 %v741_v51, %v809_v4  ;;  %v758_v16 = vsel %vm694_vm14, %v662_v33, %v726_v22  ;;  %v849_v5 = vpop.permute.xlu0 %848  ;;  %v2926_v3 = vld [vmem:[#allocation4_spill] sm:$0xff] }
  0xd2   : > { %v759_v38 = vsel %vm695_vm15, %v663_v31, %v727_v61  ;;  %v2072_v44 = vpop.eup %2071  ;;  %2073 = vpow2.f32 %v916_v58  ;;  %v886_v27 = vsub.f32 %v758_v16, %v854_v52  ;;  %vm692_vm1 = vcmp.gt.f32.partialorder %v660_v39, 0.0 }
  0xd3   : > { %v912_v12 = vmul.f32 1.442695, %v868_v13  ;;  %v887_v25 = vsub.f32 %v759_v38, %v854_v52  ;;  %2075 = vpow2.f32 %v918_v34  ;;  %v914_v26 = vmul.f32 1.442695, %v869_v15 }
  0xd4   : > { %vm693_vm2 = vcmp.gt.f32.partialorder %v661_v40, 0.0  ;;  %v948_v56 = vmul.f32 1.442695, %v886_v27  ;;  %v756_v43 = vsel %vm692_vm1, %v660_v39, %v724_v7  ;;  %v960_v10 = vmul.f32 %v2062_v28, %v2466_v42 }
  0xd5   : > { %2077 = vpow2.f32 %v912_v12  ;;  %v950_v29 = vmul.f32 1.442695, %v887_v25  ;;  %v757_v49 = vsel %vm693_vm2, %v661_v40, %v725_v2  ;;  %v884_v59 = vsub.f32 %v756_v43, %v849_v5 }
  0xd6   : > { %2079 = vpow2.f32 %v914_v26  ;;  %v885_v37 = vsub.f32 %v757_v49, %v849_v5  ;;  %v961_v33 = vmul.f32 %v2064_v17, %v2471_v46  ;;  %v963_v31 = vmul.f32 %v2060_v6, %v2474_v48 }
  0xd7   : > { %2081 = vpow2.f32 %v948_v56  ;;  %v944_v57 = vmul.f32 1.442695, %v884_v59  ;;  %v962_v41 = vmul.f32 %v2557_v0, %v2476_v50  ;;  %v2573_v4 = vmul.f32 %v2072_v44, %v2479_v53 }
  0xd8   : > { %2083 = vpow2.f32 %v950_v29  ;;  %v946_v39 = vmul.f32 1.442695, %v885_v37  ;;  %v996_v22 = vadd.f32 %v961_v33, %v960_v10  ;;  %v1037_v40 = vpack.c.bf16 %v963_v31, %v961_v33 }
  0xd9   : > { %v979_v61 = vmul.f32 %v2068_v36, %v2481_v54  ;;  %2085 = vpow2.f32 %v944_v57  ;;  %v999_v42 = vadd.f32 %v963_v31, %v962_v41  ;;  %v1036_v28 = vpack.c.bf16 %v962_v41, %v960_v10 }
  0xda   : > { %v976_v46 = vmul.f32 %v2070_v1, %v2483_v55  ;;  %2087 = vpow2.f32 %v946_v39  ;;  %997 = vadd.xlane.f32.xlu1 %v996_v22  ;;  %1192 = vmatprep.mubr.bf16.mxu0 %v1037_v40  ;;  %v978_v50 = vmul.f32 %v2066_v63, %v2489_v32  ;;  %v453_v53 = vunpack.c.3.s8 %v2440_v24  ;;  %v1243_v22 = vld [vmem:[#allocation2 + $0x10] sm:$0xff] }
  0xdb   : > { %v1045_v48 = vpack.c.bf16 %v979_v61, %v2573_v4  ;;  %1000 = vadd.xlane.f32.xlu0 %v999_v42  ;;  %1193 = vmatmul.mubr.bf16.gmra.mrb[8].mxu0 %v1036_v28  ;;  %v2923_v0 = vunpack.c.2.s8 %v2420_v9  ;;  %v454_v54 = vunpack.c.3.s8 %v2437_v23  ;;  %v2924_v55 = vunpack.c.2.s8 %v2427_v14  ;;  %v1244_v28 = vld [vmem:[#allocation2 + $0x18] sm:$0xff] }
  0xdc   : > { %v2074_v7 = vpop.eup %2073  ;;  %v1044_v11 = vpack.c.bf16 %v978_v50, %v976_v46  ;;  %v451_v2 = vunpack.c.2.s8 %v2440_v24  ;;  %v452_v63 = vunpack.c.2.s8 %v2437_v23  ;;  %v485_v36 = vcvt.s32.f32 %v453_v53 }
  0xdd   : > { %v467_v6 = vcvt.s32.f32 %v2923_v0  ;;  %1224 = vmatprep.mubr.bf16.mxu1 %v1045_v48  ;;  %v468_v17 = vcvt.s32.f32 %v2924_v55  ;;  %v2076_v45 = vpop.eup %2075  ;;  %v966_v32 = vmul.f32 %v2074_v7, %v2925_v62  ;;  %v486_v13 = vcvt.s32.f32 %v454_v54  ;;  %v1245_v54 = vld [vmem:[#allocation2 + $0x20] sm:$0xff] }
  0xde   : > { %1225 = vmatmul.mubr.bf16.gmra.mrb[8].mxu1 %v1044_v11  ;;  %v967_v9 = vmul.f32 %v2076_v45, %v2926_v3  ;;  %v483_v14 = vcvt.s32.f32 %v451_v2  ;;  %v484_v24 = vcvt.s32.f32 %v452_v63  ;;  %v1011_v5 = vadd.f32 %v2521_v18, %v2527_v35  ;;  %v1246_v11 = vld [vmem:[#allocation2 + $0x28] sm:$0xff]  ;;  %v1247_v63 = vld [vmem:[#allocation2 + $0x30] sm:$0xff] }
  0xdf   : > { %v2078_v20 = vpop.eup %2077  ;;  %v1008_v29 = vadd.f32 %v2518_v8, %v2524_v19  ;;  %v1017_v59 = vadd.f32 %v2549_v47, %v2555_v60  ;;  %v1014_v10 = vadd.f32 %v2546_v30, %v2552_v21  ;;  %v1023_v18 = vadd.f32 %v979_v61, %v978_v50  ;;  %v1241_v30 = vld [vmem:[#allocation2] sm:$0xff]  ;;  %v1242_v60 = vld [vmem:[#allocation2 + $0x8] sm:$0xff] }
  0xe0   : > { %v2080_v58 = vpop.eup %2079  ;;  %v964_v51 = vmul.f32 %v2078_v20, %v467_v6  ;;  %v1005_v34 = vadd.f32 %v967_v9, %v966_v32  ;;  %v1020_v35 = vadd.f32 %v2573_v4, %v976_v46  ;;  %vm398_vm3 = vcmask 64512  }
  0xe1   : > { %v2082_v52 = vpop.eup %2081  ;;  %v965_v1 = vmul.f32 %v2080_v58, %v468_v17  ;;  %v2927_v37 = vmov 0.0   ;;  %v1250_v58 = vld [vmem:[#allocation2 + $0x48] sm:$0xff] }
  0xe2   : > { %v2084_v15 = vpop.eup %2083  ;;  %v1038_v16 = vpack.c.bf16 %v966_v32, %v964_v51  ;;  %1006 = vadd.xlane.f32.xlu0 %v1005_v34  ;;  %v982_v12 = vmul.f32 %v2082_v52, %v485_v36  ;;  %399 = vst.msk [vmem:[#allocation3] sm:$0xff] %vm398_vm3, %v2927_v37  ;;  %400 = vst.msk [vmem:[#allocation3 + $0x8] sm:$0xff] %vm398_vm3, %v2927_v37  ;;  %v1248_v32 = vld [vmem:[#allocation2 + $0x38] sm:$0xff]  ;;  %v1249_v34 = vld [vmem:[#allocation2 + $0x40] sm:$0xff] }
  0xe3   : > { %v1002_v38 = vadd.f32 %v965_v1, %v964_v51  ;;  %v1039_v44 = vpack.c.bf16 %v967_v9, %v965_v1  ;;  %v2086_v23 = vpop.eup %2085  ;;  %v983_v27 = vmul.f32 %v2084_v15, %v486_v13  ;;  %401 = vst.msk [vmem:[#allocation3 + $0x10] sm:$0xff] %vm398_vm3, %v2927_v37  ;;  %402 = vst.msk [vmem:[#allocation3 + $0x18] sm:$0xff] %vm398_vm3, %v2927_v37 }
  0xe4   : > { %v2088_v25 = vpop.eup %2087  ;;  %v980_v26 = vmul.f32 %v2086_v23, %v483_v14  ;;  %403 = vst.msk [vmem:[#allocation3 + $0x20] sm:$0xff] %vm398_vm3, %v2927_v37  ;;  %404 = vst.msk [vmem:[#allocation3 + $0x28] sm:$0xff] %vm398_vm3, %v2927_v37 }
  0xe5   : > { %1003 = vadd.xlane.f32.xlu1 %v1002_v38  ;;  %1200 = vmatprep.mubr.bf16.mxu0 %v1039_v44  ;;  %v981_v56 = vmul.f32 %v2088_v25, %v484_v24  ;;  %v1029_v8 = vadd.f32 %v983_v27, %v982_v12  ;;  %405 = vst.msk [vmem:[#allocation3 + $0x30] sm:$0xff] %vm398_vm3, %v2927_v37  ;;  %406 = vst.msk [vmem:[#allocation3 + $0x38] sm:$0xff] %vm398_vm3, %v2927_v37  ;;  %v1252_v38 = vld [vmem:[#allocation2 + $0x58] sm:$0xff] }
  0xe6   : > { %1201 = vmatmul.mubr.bf16.gmra.mrb[12].mxu0 %v1038_v16  ;;  %1012 = vadd.xlane.f32.xlu0 %v1011_v5  ;;  %v1046_v43 = vpack.c.bf16 %v982_v12, %v980_v26  ;;  %407 = vst.msk [vmem:[#allocation3 + $0x40] sm:$0xff] %vm398_vm3, %v2927_v37  ;;  %408 = vst.msk [vmem:[#allocation3 + $0x48] sm:$0xff] %vm398_vm3, %v2927_v37  ;;  %v1251_v12 = vld [vmem:[#allocation2 + $0x50] sm:$0xff]  ;;  %v1254_v5 = vld [vmem:[#allocation2 + $0x68] sm:$0xff] }
  0xe7   : > { %v1047_v49 = vpack.c.bf16 %v983_v27, %v981_v56  ;;  %v1026_v19 = vadd.f32 %v981_v56, %v980_v26  ;;  %409 = vst.msk [vmem:[#allocation3 + $0x50] sm:$0xff] %vm398_vm3, %v2927_v37  ;;  %410 = vst.msk [vmem:[#allocation3 + $0x58] sm:$0xff] %vm398_vm3, %v2927_v37 }
  0xe8   : > { %411 = vst.msk [vmem:[#allocation3 + $0x60] sm:$0xff] %vm398_vm3, %v2927_v37  ;;  %412 = vst.msk [vmem:[#allocation3 + $0x68] sm:$0xff] %vm398_vm3, %v2927_v37 }
  0xe9   : > { %1009 = vadd.xlane.f32.xlu1 %v1008_v29  ;;  %1232 = vmatprep.mubr.bf16.mxu1 %v1047_v49  ;;  %413 = vst.msk [vmem:[#allocation3 + $0x70] sm:$0xff] %vm398_vm3, %v2927_v37  ;;  %414 = vst.msk [vmem:[#allocation3 + $0x78] sm:$0xff] %vm398_vm3, %v2927_v37 }
  0xea   : > { %1233 = vmatmul.mubr.bf16.gmra.mrb[12].mxu1 %v1046_v43  ;;  %1018 = vadd.xlane.f32.xlu0 %v1017_v59  ;;  %v1253_v43 = vld [vmem:[#allocation2 + $0x60] sm:$0xff] }
  0xed   : > { %1015 = vadd.xlane.f32.xlu1 %v1014_v10 }
  0xee   : > { %1024 = vadd.xlane.f32.xlu0 %v1023_v18 }
  0xf1   : > { %1021 = vadd.xlane.f32.xlu1 %v1020_v35 }
  0xf2   : > { %1030 = vadd.xlane.f32.xlu0 %v1029_v8  ;;  %v1256_v8 = vld [vmem:[#allocation2 + $0x78] sm:$0xff] }
  0xf5   : > { %1027 = vadd.xlane.f32.xlu1 %v1026_v19 }
 0x142   : > { %v986_v47 = vpop.xlane.xlu0 %985 }
 0x143   : > { %v1257_v21 = vadd.f32 %v1241_v30, %v986_v47 }
 0x145   : > { %1274 = vst.msk [vmem:[#allocation2] sm:$0xff] %vm381_vm0, %v1257_v21 }
 0x146   : > { %v989_v33 = vpop.xlane.xlu1 %988 }
 0x147   : > { %v1258_v31 = vadd.f32 %v1242_v60, %v989_v33  ;;  %v1255_v60 = vld [vmem:[#allocation2 + $0x70] sm:$0xff] }
 0x149   : > { %1275 = vst.msk [vmem:[#allocation2 + $0x8] sm:$0xff] %vm381_vm0, %v1258_v31 }
 0x14c   : > { %v1342_v57 = vld [vmem:[#allocation2] sm:$0xff] }
 0x14d   : > { %v1358_v41 = vadd.f32 1e-20, %v1342_v57 }
 0x14f   : > { %2089 = vrcp.f32 %v1358_v41 }
 0x150   : > { %v1343_v4 = vld [vmem:[#allocation2 + $0x8] sm:$0xff] }
 0x151   : > { %v1359_v39 = vadd.f32 1e-20, %v1343_v4 }
 0x153   : > { %2091 = vrcp.f32 %v1359_v39 }
 0x156   : > { %v992_v40 = vpop.xlane.xlu0 %991 }
 0x157   : > { %v1259_v61 = vadd.f32 %v1243_v22, %v992_v40 }
 0x159   : > { %v2090_v42 = vpop.eup %2089  ;;  %1276 = vst.msk [vmem:[#allocation2 + $0x10] sm:$0xff] %vm381_vm0, %v1259_v61 }
 0x15a   : > { %1392 = vperm.xlu1 %2008, %v2090_v42   ;;  %v995_v46 = vpop.xlane.xlu0 %994 }
 0x15b   : > { %v1260_v48 = vadd.f32 %v1244_v28, %v995_v46 }
 0x15d   : > { %v2092_v50 = vpop.eup %2091  ;;  %1277 = vst.msk [vmem:[#allocation2 + $0x18] sm:$0xff] %vm381_vm0, %v1260_v48 }
 0x15e   : > { %1397 = vperm.xlu0 %2007, %v2092_v50  }
 0x160   : > { %v1344_v53 = vld [vmem:[#allocation2 + $0x10] sm:$0xff] }
 0x161   : > { %v1360_v0 = vadd.f32 1e-20, %v1344_v53 }
 0x163   : > { %2093 = vrcp.f32 %v1360_v0 }
 0x164   : > { %v1345_v6 = vld [vmem:[#allocation2 + $0x18] sm:$0xff] }
 0x165   : > { %v1361_v7 = vadd.f32 1e-20, %v1345_v6 }
 0x167   : > { %v998_v55 = vpop.xlane.xlu1 %997  ;;  %2095 = vrcp.f32 %v1361_v7 }
 0x168   : > { %v1261_v17 = vadd.f32 %v1245_v54, %v998_v55  ;;  %v1001_v2 = vpop.xlane.xlu0 %1000 }
 0x169   : > { %v1262_v45 = vadd.f32 %v1246_v11, %v1001_v2 }
 0x16a   : > { %1278 = vst.msk [vmem:[#allocation2 + $0x20] sm:$0xff] %vm381_vm0, %v1261_v17 }
 0x16b   : > { %1279 = vst.msk [vmem:[#allocation2 + $0x28] sm:$0xff] %vm381_vm0, %v1262_v45  ;;  %v1290_v45 = vld [vmem:[#allocation3] sm:$0xff] }
 0x16d   : > { %v2094_v62 = vpop.eup %2093 }
 0x16e   : > { %1402 = vperm.xlu1 %2008, %v2094_v62  }
 0x16f   : > { %v1007_v20 = vpop.xlane.xlu0 %1006 }
 0x170   : > { %v1264_v3 = vadd.f32 %v1248_v32, %v1007_v20 }
 0x171   : > { %v2096_v9 = vpop.eup %2095  ;;  %v1346_v51 = vld [vmem:[#allocation2 + $0x20] sm:$0xff] }
 0x172   : > { %v1004_v36 = vpop.xlane.xlu1 %1003  ;;  %1407 = vperm.xlu1 %2008, %v2096_v9   ;;  %1281 = vst.msk [vmem:[#allocation2 + $0x38] sm:$0xff] %vm381_vm0, %v1264_v3  ;;  %v1362_v52 = vadd.f32 1e-20, %v1346_v51  ;;  %v1347_v1 = vld [vmem:[#allocation2 + $0x28] sm:$0xff] }
 0x173   : > { %v1263_v13 = vadd.f32 %v1247_v63, %v1004_v36  ;;  %v1013_v14 = vpop.xlane.xlu0 %1012  ;;  %v1363_v15 = vadd.f32 1e-20, %v1347_v1  ;;  %v1291_v9 = vld [vmem:[#allocation3 + $0x8] sm:$0xff] }
 0x174   : > { %v1266_v16 = vadd.f32 %v1250_v58, %v1013_v14  ;;  %2097 = vrcp.f32 %v1362_v52 }
 0x175   : > { %1280 = vst.msk [vmem:[#allocation2 + $0x30] sm:$0xff] %vm381_vm0, %v1263_v13  ;;  %2099 = vrcp.f32 %v1363_v15 }
 0x176   : > { %v1010_v24 = vpop.xlane.xlu1 %1009  ;;  %1283 = vst.msk [vmem:[#allocation2 + $0x48] sm:$0xff] %vm381_vm0, %v1266_v16 }
 0x177   : > { %v1265_v44 = vadd.f32 %v1249_v34, %v1010_v24  ;;  %v1019_v23 = vpop.xlane.xlu0 %1018  ;;  %v1298_v34 = vld [vmem:[#allocation3 + $0x40] sm:$0xff] }
 0x178   : > { %v1268_v27 = vadd.f32 %v1252_v38, %v1019_v23  ;;  %v1299_v38 = vld [vmem:[#allocation3 + $0x48] sm:$0xff] }
 0x179   : > { %1282 = vst.msk [vmem:[#allocation2 + $0x40] sm:$0xff] %vm381_vm0, %v1265_v44  ;;  %v1349_v26 = vld [vmem:[#allocation2 + $0x38] sm:$0xff] }
 0x17a   : > { %v1016_v25 = vpop.xlane.xlu1 %1015  ;;  %1285 = vst.msk [vmem:[#allocation2 + $0x58] sm:$0xff] %vm381_vm0, %v1268_v27  ;;  %v1365_v29 = vadd.f32 1e-20, %v1349_v26 }
 0x17b   : > { %v1267_v56 = vadd.f32 %v1251_v12, %v1016_v25  ;;  %v1025_v49 = vpop.xlane.xlu0 %1024 }
 0x17c   : > { %v1348_v59 = vld [vmem:[#allocation2 + $0x30] sm:$0xff]  ;;  %v1270_v10 = vadd.f32 %v1254_v5, %v1025_v49  ;;  %2101 = vrcp.f32 %v1365_v29 }
 0x17d   : > { %1284 = vst.msk [vmem:[#allocation2 + $0x50] sm:$0xff] %vm381_vm0, %v1267_v56  ;;  %v1364_v18 = vadd.f32 1e-20, %v1348_v59  ;;  %v1351_v19 = vld [vmem:[#allocation2 + $0x48] sm:$0xff]  ;;  %v1292_v29 = vld [vmem:[#allocation3 + $0x10] sm:$0xff] }
 0x17e   : > { %v1022_v35 = vpop.xlane.xlu1 %1021  ;;  %v2098_v37 = vpop.eup %2097  ;;  %1287 = vst.msk [vmem:[#allocation2 + $0x68] sm:$0xff] %vm381_vm0, %v1270_v10  ;;  %v1367_v47 = vadd.f32 1e-20, %v1351_v19  ;;  %v1293_v10 = vld [vmem:[#allocation3 + $0x18] sm:$0xff] }
 0x17f   : > { %v1269_v30 = vadd.f32 %v1253_v43, %v1022_v35  ;;  %2103 = vrcp.f32 %v1364_v18  ;;  %v2100_v21 = vpop.eup %2099  ;;  %1412 = vperm.xlu0 %2007, %v2098_v37   ;;  %v1031_v33 = vpop.xlane.xlu0 %1030  ;;  %v1300_v37 = vld [vmem:[#allocation3 + $0x50] sm:$0xff] }
 0x180   : > { %v1350_v31 = vld [vmem:[#allocation2 + $0x40] sm:$0xff]  ;;  %1417 = vperm.xlu1 %2008, %v2100_v21   ;;  %v1272_v57 = vadd.f32 %v1256_v8, %v1031_v33  ;;  %2105 = vrcp.f32 %v1367_v47  ;;  %v1301_v33 = vld [vmem:[#allocation3 + $0x58] sm:$0xff] }
 0x181   : > { %1286 = vst.msk [vmem:[#allocation2 + $0x60] sm:$0xff] %vm381_vm0, %v1269_v30  ;;  %v1366_v41 = vadd.f32 1e-20, %v1350_v31  ;;  %v1353_v39 = vld [vmem:[#allocation2 + $0x58] sm:$0xff] }
 0x182   : > { %v1028_v4 = vpop.xlane.xlu1 %1027  ;;  %1289 = vst.msk [vmem:[#allocation2 + $0x78] sm:$0xff] %vm381_vm0, %v1272_v57  ;;  %v1369_v40 = vadd.f32 1e-20, %v1353_v39 }
 0x183   : > { %v1271_v22 = vadd.f32 %v1255_v60, %v1028_v4  ;;  %2107 = vrcp.f32 %v1366_v41 }
 0x184   : > { %v1352_v61 = vld [vmem:[#allocation2 + $0x50] sm:$0xff]  ;;  %2109 = vrcp.f32 %v1369_v40 }
 0x185   : > { %1288 = vst.msk [vmem:[#allocation2 + $0x70] sm:$0xff] %vm381_vm0, %v1271_v22  ;;  %v1368_v42 = vadd.f32 1e-20, %v1352_v61  ;;  %v1355_v28 = vld [vmem:[#allocation2 + $0x68] sm:$0xff]  ;;  %v1294_v22 = vld [vmem:[#allocation3 + $0x20] sm:$0xff] }
 0x186   : > { %v2102_v46 = vpop.eup %2101  ;;  %v1371_v48 = vadd.f32 1e-20, %v1355_v28  ;;  %v1295_v28 = vld [vmem:[#allocation3 + $0x28] sm:$0xff] }
 0x187   : > { %2111 = vrcp.f32 %v1368_v42  ;;  %1427 = vperm.xlu1 %2008, %v2102_v46  }
 0x188   : > { %v1354_v50 = vld [vmem:[#allocation2 + $0x60] sm:$0xff]  ;;  %2113 = vrcp.f32 %v1371_v48 }
 0x189   : > { %v2104_v53 = vpop.eup %2103  ;;  %v1370_v0 = vadd.f32 1e-20, %v1354_v50  ;;  %v1357_v6 = vld [vmem:[#allocation2 + $0x78] sm:$0xff] }
 0x18a   : > { %1422 = vperm.xlu0 %2007, %v2104_v53   ;;  %v2106_v54 = vpop.eup %2105  ;;  %v1373_v7 = vadd.f32 1e-20, %v1357_v6 }
 0x18b   : > { %2115 = vrcp.f32 %v1370_v0  ;;  %1437 = vperm.xlu1 %2008, %v2106_v54   ;;  %v1302_v0 = vld [vmem:[#allocation3 + $0x60] sm:$0xff] }
 0x18c   : > { %v1917_v11 = vpop.f32.mrb[0].mxu0  ;;  %v1356_v55 = vld [vmem:[#allocation2 + $0x70] sm:$0xff]  ;;  %2117 = vrcp.f32 %v1373_v7 }
 0x18d   : > { %v2108_v17 = vpop.eup %2107  ;;  %v1918_v2 = vpop.f32.mrb[1].mxu0  ;;  %v1372_v62 = vadd.f32 1e-20, %v1356_v55  ;;  %v1303_v55 = vld [vmem:[#allocation3 + $0x68] sm:$0xff] }
 0x18e   : > { %v1919_v32 = vadd.f32 %v1918_v2, %v1917_v11  ;;  %v1920_v63 = vpop.f32.mrb[2].mxu0  ;;  %1432 = vperm.xlu0 %2007, %v2108_v17   ;;  %v2110_v20 = vpop.eup %2109 }
 0x18f   : > { %v1921_v3 = vpop.f32.mrb[3].mxu0  ;;  %2119 = vrcp.f32 %v1372_v62  ;;  %1447 = vperm.xlu1 %2008, %v2110_v20  }
 0x190   : > { %v1306_v36 = vadd.f32 %v1919_v32, %v1290_v45  ;;  %v1922_v58 = vadd.f32 %v1921_v3, %v1920_v63  ;;  %v1296_v63 = vld [vmem:[#allocation3 + $0x30] sm:$0xff] }
 0x191   : > { %v2112_v51 = vpop.eup %2111  ;;  %v1941_v13 = vpop.f32.mrb[0].mxu1 }
 0x192   : > { %1323 = vst.msk [vmem:[#allocation3] sm:$0xff] %vm398_vm3, %v1306_v36  ;;  %v1307_v52 = vadd.f32 %v1922_v58, %v1291_v9  ;;  %v1942_v1 = vpop.f32.mrb[1].mxu1  ;;  %1442 = vperm.xlu0 %2007, %v2112_v51   ;;  %v2114_v14 = vpop.eup %2113  ;;  %v1297_v36 = vld [vmem:[#allocation3 + $0x38] sm:$0xff] }
 0x193   : > { %v1943_v15 = vadd.f32 %v1942_v1, %v1941_v13  ;;  %v1944_v16 = vpop.f32.mrb[2].mxu1  ;;  %1457 = vperm.xlu1 %2008, %v2114_v14  }
 0x194   : > { %1324 = vst.msk [vmem:[#allocation3 + $0x8] sm:$0xff] %vm398_vm3, %v1307_v52  ;;  %v1945_v24 = vpop.f32.mrb[3].mxu1 }
 0x195   : > { %v2116_v44 = vpop.eup %2115  ;;  %v1314_v12 = vadd.f32 %v1943_v15, %v1298_v34  ;;  %v1946_v23 = vadd.f32 %v1945_v24, %v1944_v16  ;;  %v1304_v34 = vld [vmem:[#allocation3 + $0x70] sm:$0xff]  ;;  %v1305_v24 = vld [vmem:[#allocation3 + $0x78] sm:$0xff] }
 0x196   : > { %1452 = vperm.xlu0 %2007, %v2116_v44   ;;  %v2118_v27 = vpop.eup %2117 }
 0x197   : > { %1331 = vst.msk [vmem:[#allocation3 + $0x40] sm:$0xff] %vm398_vm3, %v1314_v12  ;;  %v1315_v25 = vadd.f32 %v1946_v23, %v1299_v38  ;;  %1467 = vperm.xlu1 %2008, %v2118_v27   ;;  %v2665_v27 = vld [vmem:[%s2916_s5] ss:$0 sm:$0xff] }
 0x199   : > { %v2120_v5 = vpop.eup %2119  ;;  %1332 = vst.msk [vmem:[#allocation3 + $0x48] sm:$0xff] %vm398_vm3, %v1315_v25  ;;  %v1470_v23 = vld [vmem:[#allocation3] sm:$0xff] }
 0x19a   : > { %1462 = vperm.xlu0 %2007, %v2120_v5  }
 0x19d   : > { %v1923_v26 = vpop.f32.mrb[4].mxu0 }
 0x19e   : > { %v1924_v56 = vpop.f32.mrb[5].mxu0 }
 0x19f   : > { %v1925_v43 = vadd.f32 %v1924_v56, %v1923_v26  ;;  %v1926_v49 = vpop.f32.mrb[6].mxu0  ;;  %v2670_v26 = vld [vmem:[%s2917_s6] ss:$0 sm:$0xff] }
 0x1a0   : > { %v1927_v59 = vpop.f32.mrb[7].mxu0 }
 0x1a1   : > { %v1308_v18 = vadd.f32 %v1925_v43, %v1292_v29  ;;  %v1928_v35 = vadd.f32 %v1927_v59, %v1926_v49  ;;  %v1947_v8 = vpop.f32.mrb[4].mxu1  ;;  %v1471_v29 = vld [vmem:[#allocation3 + $0x8] sm:$0xff] }
 0x1a2   : > { %v1948_v19 = vpop.f32.mrb[5].mxu1 }
 0x1a3   : > { %1325 = vst.msk [vmem:[#allocation3 + $0x10] sm:$0xff] %vm398_vm3, %v1308_v18  ;;  %v1309_v30 = vadd.f32 %v1928_v35, %v1293_v10  ;;  %v1949_v47 = vadd.f32 %v1948_v19, %v1947_v8  ;;  %v1950_v21 = vpop.f32.mrb[6].mxu1 }
 0x1a4   : > { %v1951_v60 = vpop.f32.mrb[7].mxu1 }
 0x1a5   : > { %1326 = vst.msk [vmem:[#allocation3 + $0x18] sm:$0xff] %vm398_vm3, %v1309_v30  ;;  %v1316_v31 = vadd.f32 %v1949_v47, %v1300_v37  ;;  %v1952_v57 = vadd.f32 %v1951_v60, %v1950_v21 }
 0x1a7   : > { %1333 = vst.msk [vmem:[#allocation3 + $0x50] sm:$0xff] %vm398_vm3, %v1316_v31  ;;  %v1317_v41 = vadd.f32 %v1952_v57, %v1301_v33 }
 0x1a9   : > { %1334 = vst.msk [vmem:[#allocation3 + $0x58] sm:$0xff] %vm398_vm3, %v1317_v41 }
 0x1aa   : > { %v1472_v19 = vld [vmem:[#allocation3 + $0x10] sm:$0xff] }
 0x1ac   : > { %v1473_v21 = vld [vmem:[#allocation3 + $0x18] sm:$0xff] }
 0x1ae   : > { %v1929_v4 = vpop.f32.mrb[8].mxu0 }
 0x1af   : > { %v1930_v39 = vpop.f32.mrb[9].mxu0 }
 0x1b0   : > { %v1931_v40 = vadd.f32 %v1930_v39, %v1929_v4  ;;  %v1932_v61 = vpop.f32.mrb[10].mxu0 }
 0x1b1   : > { %v1933_v42 = vpop.f32.mrb[11].mxu0  ;;  %v1953_v46 = vpop.f32.mrb[8].mxu1 }
 0x1b2   : > { %v1310_v48 = vadd.f32 %v1931_v40, %v1294_v22  ;;  %v1934_v50 = vadd.f32 %v1933_v42, %v1932_v61  ;;  %v1954_v53 = vpop.f32.mrb[9].mxu1 }
 0x1b3   : > { %v1955_v6 = vadd.f32 %v1954_v53, %v1953_v46  ;;  %v1956_v54 = vpop.f32.mrb[10].mxu1 }
 0x1b4   : > { %1327 = vst.msk [vmem:[#allocation3 + $0x20] sm:$0xff] %vm398_vm3, %v1310_v48  ;;  %v1311_v7 = vadd.f32 %v1934_v50, %v1295_v28  ;;  %v1957_v11 = vpop.f32.mrb[11].mxu1 }
 0x1b5   : > { %v1318_v17 = vadd.f32 %v1955_v6, %v1302_v0  ;;  %v1958_v2 = vadd.f32 %v1957_v11, %v1956_v54 }
 0x1b6   : > { %1328 = vst.msk [vmem:[#allocation3 + $0x28] sm:$0xff] %vm398_vm3, %v1311_v7 }
 0x1b7   : > { %1335 = vst.msk [vmem:[#allocation3 + $0x60] sm:$0xff] %vm398_vm3, %v1318_v17  ;;  %v1319_v45 = vadd.f32 %v1958_v2, %v1303_v55 }
 0x1b9   : > { %v1935_v62 = vpop.f32.mrb[12].mxu0  ;;  %1336 = vst.msk [vmem:[#allocation3 + $0x68] sm:$0xff] %vm398_vm3, %v1319_v45 }
 0x1ba   : > { %v1936_v32 = vpop.f32.mrb[13].mxu0 }
 0x1bb   : > { %v1937_v20 = vadd.f32 %v1936_v32, %v1935_v62  ;;  %v1938_v3 = vpop.f32.mrb[14].mxu0  ;;  %v1474_v22 = vld [vmem:[#allocation3 + $0x20] sm:$0xff]  ;;  %v1479_v32 = vld [vmem:[#allocation3 + $0x48] sm:$0xff] }
 0x1bc   : > { %v1939_v9 = vpop.f32.mrb[15].mxu0 }
 0x1bd   : > { %v1312_v58 = vadd.f32 %v1937_v20, %v1296_v63  ;;  %v1940_v51 = vadd.f32 %v1939_v9, %v1938_v3  ;;  %v1959_v13 = vpop.f32.mrb[12].mxu1  ;;  %v1475_v61 = vld [vmem:[#allocation3 + $0x28] sm:$0xff] }
 0x1be   : > { %v1960_v1 = vpop.f32.mrb[13].mxu1 }
 0x1bf   : > { %1329 = vst.msk [vmem:[#allocation3 + $0x30] sm:$0xff] %vm398_vm3, %v1312_v58  ;;  %v1313_v52 = vadd.f32 %v1940_v51, %v1297_v36  ;;  %v1961_v14 = vadd.f32 %v1960_v1, %v1959_v13  ;;  %v1962_v15 = vpop.f32.mrb[14].mxu1  ;;  %v1478_v36 = vld [vmem:[#allocation3 + $0x40] sm:$0xff] }
 0x1c0   : > { %v1963_v16 = vpop.f32.mrb[15].mxu1 }
 0x1c1   : > { %1330 = vst.msk [vmem:[#allocation3 + $0x38] sm:$0xff] %vm398_vm3, %v1313_v52  ;;  %v1320_v38 = vadd.f32 %v1961_v14, %v1304_v34  ;;  %v1964_v44 = vadd.f32 %v1963_v16, %v1962_v15  ;;  %v1481_v34 = vld [vmem:[#allocation3 + $0x58] sm:$0xff] }
 0x1c3   : > { %1337 = vst.msk [vmem:[#allocation3 + $0x70] sm:$0xff] %vm398_vm3, %v1320_v38  ;;  %v1321_v12 = vadd.f32 %v1964_v44, %v1305_v24  ;;  %v1480_v44 = vld [vmem:[#allocation3 + $0x50] sm:$0xff] }
 0x1c5   : > { %1338 = vst.msk [vmem:[#allocation3 + $0x78] sm:$0xff] %vm398_vm3, %v1321_v12 }
 0x1c6   : > { %v1476_v17 = vld [vmem:[#allocation3 + $0x30] sm:$0xff] }
 0x1c8   : > { %v1477_v7 = vld [vmem:[#allocation3 + $0x38] sm:$0xff] }
 0x1d9   : > { %v1393_v25 = vpop.permute.xlu1 %1392 }
 0x1da   : > { %v1486_v5 = vmul.f32 %v1470_v23, %v1393_v25 }
 0x1dc   : > { %v1509_v56 = vmul.f32 %v2665_v27, %v1486_v5 }
 0x1dd   : > { %v1398_v43 = vpop.permute.xlu0 %1397 }
 0x1de   : > { %v1487_v49 = vmul.f32 %v1471_v29, %v1398_v43  ;;  %v2674_v59 = vadd.f32 %v2670_v26, %v1509_v56  ;;  %v1483_v29 = vld [vmem:[#allocation3 + $0x68] sm:$0xff] }
 0x1e0   : > { %v1510_v10 = vmul.f32 %v2665_v27, %v1487_v49  ;;  %v1548_v18 = vsel %vm398_vm3, %v2674_v59, -inf }
 0x1e1   : > { %1549 = vmax.xlane.f32.xlu0 %v1548_v18 }
 0x1e2   : > { %v2680_v35 = vadd.f32 %v2670_v26, %v1510_v10 }
 0x1e4   : > { %v1551_v8 = vsel %vm398_vm3, %v2680_v35, -inf }
 0x1e5   : > { %1552 = vmax.xlane.f32.xlu1 %v1551_v8 }
 0x1ed   : > { %v1403_v37 = vpop.permute.xlu1 %1402 }
 0x1ee   : > { %v1488_v30 = vmul.f32 %v1472_v19, %v1403_v37  ;;  %v1482_v19 = vld [vmem:[#allocation3 + $0x60] sm:$0xff] }
 0x1f0   : > { %v1511_v47 = vmul.f32 %v2665_v27, %v1488_v30 }
 0x1f1   : > { %v1408_v60 = vpop.permute.xlu1 %1407 }
 0x1f2   : > { %v1489_v33 = vmul.f32 %v1473_v21, %v1408_v60  ;;  %v2686_v31 = vadd.f32 %v2670_v26, %v1511_v47 }
 0x1f4   : > { %v1512_v57 = vmul.f32 %v2665_v27, %v1489_v33  ;;  %v1554_v41 = vsel %vm398_vm3, %v2686_v31, -inf  ;;  %v1485_v33 = vld [vmem:[#allocation3 + $0x78] sm:$0xff] }
 0x1f5   : > { %1555 = vmax.xlane.f32.xlu0 %v1554_v41 }
 0x1f6   : > { %v2692_v4 = vadd.f32 %v2670_v26, %v1512_v57 }
 0x1f8   : > { %v1557_v39 = vsel %vm398_vm3, %v2692_v4, -inf }
 0x1f9   : > { %1558 = vmax.xlane.f32.xlu0 %v1557_v39 }
 0x1fe   : > { %v1413_v40 = vpop.permute.xlu0 %1412 }
 0x1ff   : > { %v1418_v42 = vpop.permute.xlu1 %1417  ;;  %v1490_v28 = vmul.f32 %v1474_v22, %v1413_v40 }
 0x200   : > { %v1491_v46 = vmul.f32 %v1475_v61, %v1418_v42  ;;  %v1484_v61 = vld [vmem:[#allocation3 + $0x70] sm:$0xff] }
 0x201   : > { %v1513_v48 = vmul.f32 %v2665_v27, %v1490_v28 }
 0x202   : > { %v1514_v50 = vmul.f32 %v2665_v27, %v1491_v46 }
 0x203   : > { %v2699_v53 = vadd.f32 %v2670_v26, %v1513_v48 }
 0x204   : > { %v2702_v0 = vadd.f32 %v2670_v26, %v1514_v50 }
 0x205   : > { %v1560_v6 = vsel %vm398_vm3, %v2699_v53, -inf }
 0x206   : > { %v1563_v54 = vsel %vm398_vm3, %v2702_v0, -inf  ;;  %1561 = vmax.xlane.f32.xlu1 %v1560_v6  ;;  %v1428_v11 = vpop.permute.xlu1 %1427 }
 0x207   : > { %1564 = vmax.xlane.f32.xlu0 %v1563_v54  ;;  %v1493_v55 = vmul.f32 %v1477_v7, %v1428_v11 }
 0x209   : > { %v1423_v2 = vpop.permute.xlu0 %1422  ;;  %v1516_v45 = vmul.f32 %v2665_v27, %v1493_v55 }
 0x20a   : > { %v1492_v62 = vmul.f32 %v1476_v17, %v1423_v2  ;;  %v1438_v63 = vpop.permute.xlu1 %1437 }
 0x20b   : > { %v1495_v3 = vmul.f32 %v1479_v32, %v1438_v63  ;;  %v2711_v9 = vadd.f32 %v2670_v26, %v1516_v45 }
 0x20c   : > { %v1515_v20 = vmul.f32 %v2665_v27, %v1492_v62 }
 0x20d   : > { %v1433_v58 = vpop.permute.xlu0 %1432  ;;  %v1518_v51 = vmul.f32 %v2665_v27, %v1495_v3  ;;  %v1569_v52 = vsel %vm398_vm3, %v2711_v9, -inf }
 0x20e   : > { %v1494_v13 = vmul.f32 %v1478_v36, %v1433_v58  ;;  %v2717_v1 = vadd.f32 %v2670_v26, %v1515_v20  ;;  %1570 = vmax.xlane.f32.xlu0 %v1569_v52  ;;  %v1448_v14 = vpop.permute.xlu1 %1447 }
 0x20f   : > { %v1497_v16 = vmul.f32 %v1481_v34, %v1448_v14  ;;  %v2723_v38 = vadd.f32 %v2670_v26, %v1518_v51 }
 0x210   : > { %v1517_v15 = vmul.f32 %v2665_v27, %v1494_v13  ;;  %v1566_v24 = vsel %vm398_vm3, %v2717_v1, -inf }
 0x211   : > { %1567 = vmax.xlane.f32.xlu1 %v1566_v24  ;;  %v1443_v12 = vpop.permute.xlu0 %1442  ;;  %v1520_v23 = vmul.f32 %v2665_v27, %v1497_v16  ;;  %v1575_v5 = vsel %vm398_vm3, %v2723_v38, -inf }
 0x212   : > { %v1496_v25 = vmul.f32 %v1480_v44, %v1443_v12  ;;  %v2729_v56 = vadd.f32 %v2670_v26, %v1517_v15  ;;  %1576 = vmax.xlane.f32.xlu0 %v1575_v5  ;;  %v1458_v43 = vpop.permute.xlu1 %1457 }
 0x213   : > { %v1499_v10 = vmul.f32 %v1483_v29, %v1458_v43  ;;  %v2735_v8 = vadd.f32 %v2670_v26, %v1520_v23 }
 0x214   : > { %v1519_v49 = vmul.f32 %v2665_v27, %v1496_v25  ;;  %v1572_v18 = vsel %vm398_vm3, %v2729_v56, -inf }
 0x215   : > { %1573 = vmax.xlane.f32.xlu1 %v1572_v18  ;;  %v1453_v37 = vpop.permute.xlu0 %1452  ;;  %v1522_v30 = vmul.f32 %v2665_v27, %v1499_v10  ;;  %v1581_v21 = vsel %vm398_vm3, %v2735_v8, -inf }
 0x216   : > { %v1498_v47 = vmul.f32 %v1482_v19, %v1453_v37  ;;  %v2741_v60 = vadd.f32 %v2670_v26, %v1519_v49  ;;  %1582 = vmax.xlane.f32.xlu0 %v1581_v21  ;;  %v1468_v57 = vpop.permute.xlu1 %1467 }
 0x217   : > { %v1501_v39 = vmul.f32 %v1485_v33, %v1468_v57  ;;  %v2747_v40 = vadd.f32 %v2670_v26, %v1522_v30 }
 0x218   : > { %v1521_v41 = vmul.f32 %v2665_v27, %v1498_v47  ;;  %v1578_v22 = vsel %vm398_vm3, %v2741_v60, -inf }
 0x219   : > { %1579 = vmax.xlane.f32.xlu1 %v1578_v22  ;;  %v1463_v42 = vpop.permute.xlu0 %1462  ;;  %v1524_v28 = vmul.f32 %v2665_v27, %v1501_v39  ;;  %v1587_v48 = vsel %vm398_vm3, %v2747_v40, -inf }
 0x21a   : > { %v1500_v46 = vmul.f32 %v1484_v61, %v1463_v42  ;;  %v2753_v50 = vadd.f32 %v2670_v26, %v1521_v41  ;;  %1588 = vmax.xlane.f32.xlu0 %v1587_v48 }
 0x21b   : > { %v2759_v7 = vadd.f32 %v2670_v26, %v1524_v28 }
 0x21c   : > { %v1523_v6 = vmul.f32 %v2665_v27, %v1500_v46  ;;  %v1584_v54 = vsel %vm398_vm3, %v2753_v50, -inf }
 0x21d   : > { %1585 = vmax.xlane.f32.xlu1 %v1584_v54  ;;  %v1593_v11 = vsel %vm398_vm3, %v2759_v7, -inf }
 0x21e   : > { %v2764_v55 = vadd.f32 %v2670_v26, %v1523_v6  ;;  %1594 = vmax.xlane.f32.xlu0 %v1593_v11 }
 0x220   : > { %v1590_v17 = vsel %vm398_vm3, %v2764_v55, -inf }
 0x221   : > { %1591 = vmax.xlane.f32.xlu1 %v1590_v17 }
 0x26e   : > { %v1550_v2 = vpop.xlane.xlu0 %1549 }
 0x26f   : > { %v2769_v27 = vsub.f32 %v2674_v59, %v1550_v2 }
 0x271   : > { %v1612_v45 = vmul.f32 1.442695, %v2769_v27 }
 0x272   : > { %v1553_v62 = vpop.xlane.xlu1 %1552 }
 0x273   : > { %2121 = vpow2.f32 %v1612_v45  ;;  %v2773_v32 = vsub.f32 %v2680_v35, %v1553_v62 }
 0x275   : > { %v1614_v63 = vmul.f32 1.442695, %v2773_v32 }
 0x277   : > { %2123 = vpow2.f32 %v1614_v63 }
 0x27d   : > { %v2122_v26 = vpop.eup %2121 }
 0x27e   : > { %v1644_v20 = vsel %vm398_vm3, %v2122_v26, 0.0 }
 0x27f   : > { %1645 = vadd.xlane.f32.xlu1 %v1644_v20 }
 0x281   : > { %v2124_v3 = vpop.eup %2123 }
 0x282   : > { %v1647_v36 = vsel %vm398_vm3, %v2124_v3, 0.0  ;;  %v1556_v58 = vpop.xlane.xlu0 %1555 }
 0x283   : > { %1648 = vadd.xlane.f32.xlu0 %v1647_v36  ;;  %v2779_v59 = vsub.f32 %v2686_v31, %v1556_v58 }
 0x285   : > { %v1616_v51 = vmul.f32 1.442695, %v2779_v59 }
 0x286   : > { %v1559_v13 = vpop.xlane.xlu0 %1558 }
 0x287   : > { %2125 = vpow2.f32 %v1616_v51  ;;  %v2783_v35 = vsub.f32 %v2692_v4, %v1559_v13 }
 0x289   : > { %v1618_v52 = vmul.f32 1.442695, %v2783_v35 }
 0x28b   : > { %2127 = vpow2.f32 %v1618_v52 }
 0x291   : > { %v2126_v34 = vpop.eup %2125 }
 0x292   : > { %v1650_v14 = vsel %vm398_vm3, %v2126_v34, 0.0 }
 0x293   : > { %v1562_v15 = vpop.xlane.xlu1 %1561  ;;  %1651 = vadd.xlane.f32.xlu1 %v1650_v14 }
 0x294   : > { %v2788_v16 = vsub.f32 %v2699_v53, %v1562_v15  ;;  %v1565_v31 = vpop.xlane.xlu0 %1564 }
 0x295   : > { %v2128_v24 = vpop.eup %2127  ;;  %v2791_v44 = vsub.f32 %v2702_v0, %v1565_v31 }
 0x296   : > { %v1620_v12 = vmul.f32 1.442695, %v2788_v16  ;;  %v1653_v4 = vsel %vm398_vm3, %v2128_v24, 0.0 }
 0x297   : > { %v1622_v23 = vmul.f32 1.442695, %v2791_v44  ;;  %1654 = vadd.xlane.f32.xlu0 %v1653_v4 }
 0x298   : > { %2129 = vpow2.f32 %v1620_v12 }
 0x299   : > { %2131 = vpow2.f32 %v1622_v23 }
 0x29b   : > { %v1571_v25 = vpop.xlane.xlu0 %1570 }
 0x29c   : > { %v2797_v5 = vsub.f32 %v2711_v9, %v1571_v25 }
 0x29e   : > { %v1568_v53 = vpop.xlane.xlu1 %1567  ;;  %v1626_v0 = vmul.f32 1.442695, %v2797_v5 }
 0x29f   : > { %v2800_v29 = vsub.f32 %v2717_v1, %v1568_v53  ;;  %v1577_v43 = vpop.xlane.xlu0 %1576 }
 0x2a0   : > { %2133 = vpow2.f32 %v1626_v0  ;;  %v2805_v10 = vsub.f32 %v2723_v38, %v1577_v43 }
 0x2a1   : > { %v1624_v49 = vmul.f32 1.442695, %v2800_v29 }
 0x2a2   : > { %v1574_v18 = vpop.xlane.xlu1 %1573  ;;  %v2130_v19 = vpop.eup %2129  ;;  %v1630_v9 = vmul.f32 1.442695, %v2805_v10 }
 0x2a3   : > { %2135 = vpow2.f32 %v1624_v49  ;;  %v2808_v37 = vsub.f32 %v2729_v56, %v1574_v18  ;;  %v2132_v30 = vpop.eup %2131  ;;  %v1656_v1 = vsel %vm398_vm3, %v2130_v19, 0.0  ;;  %v1583_v47 = vpop.xlane.xlu0 %1582 }
 0x2a4   : > { %1657 = vadd.xlane.f32.xlu1 %v1656_v1  ;;  %v1659_v21 = vsel %vm398_vm3, %v2132_v30, 0.0  ;;  %2137 = vpow2.f32 %v1630_v9  ;;  %v2815_v38 = vsub.f32 %v2735_v8, %v1583_v47 }
 0x2a5   : > { %v1628_v33 = vmul.f32 1.442695, %v2808_v37  ;;  %1660 = vadd.xlane.f32.xlu0 %v1659_v21 }
 0x2a6   : > { %v1580_v57 = vpop.xlane.xlu1 %1579  ;;  %v1634_v41 = vmul.f32 1.442695, %v2815_v38 }
 0x2a7   : > { %2139 = vpow2.f32 %v1628_v33  ;;  %v2818_v56 = vsub.f32 %v2741_v60, %v1580_v57  ;;  %v1589_v39 = vpop.xlane.xlu0 %1588 }
 0x2a8   : > { %2141 = vpow2.f32 %v1634_v41  ;;  %v2823_v61 = vsub.f32 %v2747_v40, %v1589_v39 }
 0x2a9   : > { %v1632_v22 = vmul.f32 1.442695, %v2818_v56 }
 0x2aa   : > { %v1586_v42 = vpop.xlane.xlu1 %1585  ;;  %v2134_v28 = vpop.eup %2133  ;;  %v1638_v46 = vmul.f32 1.442695, %v2823_v61 }
 0x2ab   : > { %2143 = vpow2.f32 %v1632_v22  ;;  %v2826_v8 = vsub.f32 %v2753_v50, %v1586_v42  ;;  %v1595_v48 = vpop.xlane.xlu0 %1594  ;;  %v1665_v60 = vsel %vm398_vm3, %v2134_v28, 0.0 }
 0x2ac   : > { %2145 = vpow2.f32 %v1638_v46  ;;  %v2832_v11 = vsub.f32 %v2759_v7, %v1595_v48  ;;  %1666 = vadd.xlane.f32.xlu0 %v1665_v60 }
 0x2ad   : > { %v2136_v6 = vpop.eup %2135  ;;  %v1636_v54 = vmul.f32 1.442695, %v2826_v8 }
 0x2ae   : > { %v1592_v40 = vpop.xlane.xlu1 %1591  ;;  %v1662_v17 = vsel %vm398_vm3, %v2136_v6, 0.0  ;;  %v2138_v2 = vpop.eup %2137  ;;  %v1642_v45 = vmul.f32 1.442695, %v2832_v11 }
 0x2af   : > { %2147 = vpow2.f32 %v1636_v54  ;;  %v2836_v50 = vsub.f32 %v2764_v55, %v1592_v40  ;;  %1663 = vadd.xlane.f32.xlu1 %v1662_v17  ;;  %v1671_v62 = vsel %vm398_vm3, %v2138_v2, 0.0 }
 0x2b0   : > { %2149 = vpow2.f32 %v1642_v45  ;;  %1672 = vadd.xlane.f32.xlu0 %v1671_v62 }
 0x2b1   : > { %v2140_v63 = vpop.eup %2139  ;;  %v1640_v26 = vmul.f32 1.442695, %v2836_v50 }
 0x2b2   : > { %v1668_v7 = vsel %vm398_vm3, %v2140_v63, 0.0  ;;  %v2142_v20 = vpop.eup %2141 }
 0x2b3   : > { %2151 = vpow2.f32 %v1640_v26  ;;  %1669 = vadd.xlane.f32.xlu1 %v1668_v7  ;;  %v1677_v3 = vsel %vm398_vm3, %v2142_v20, 0.0 }
 0x2b4   : > { %1678 = vadd.xlane.f32.xlu0 %v1677_v3 }
 0x2b5   : > { %v2144_v36 = vpop.eup %2143 }
 0x2b6   : > { %v1674_v55 = vsel %vm398_vm3, %v2144_v36, 0.0  ;;  %v2146_v58 = vpop.eup %2145 }
 0x2b7   : > { %1675 = vadd.xlane.f32.xlu1 %v1674_v55  ;;  %v1683_v51 = vsel %vm398_vm3, %v2146_v58, 0.0 }
 0x2b8   : > { %1684 = vadd.xlane.f32.xlu0 %v1683_v51 }
 0x2b9   : > { %v2148_v13 = vpop.eup %2147 }
 0x2ba   : > { %v1680_v52 = vsel %vm398_vm3, %v2148_v13, 0.0  ;;  %v2150_v34 = vpop.eup %2149 }
 0x2bb   : > { %1681 = vadd.xlane.f32.xlu1 %v1680_v52  ;;  %v1689_v14 = vsel %vm398_vm3, %v2150_v34, 0.0 }
 0x2bc   : > { %1690 = vadd.xlane.f32.xlu0 %v1689_v14 }
 0x2bd   : > { %v2152_v15 = vpop.eup %2151 }
 0x2be   : > { %v1686_v31 = vsel %vm398_vm3, %v2152_v15, 0.0 }
 0x2bf   : > { %1687 = vadd.xlane.f32.xlu1 %v1686_v31 }
 0x30c   : > { %v1646_v24 = vpop.xlane.xlu1 %1645 }
 0x30d   : > { %2153 = vlog2.f32 %v1646_v24 }
 0x310   : > { %v1649_v12 = vpop.xlane.xlu0 %1648 }
 0x311   : > { %2155 = vlog2.f32 %v1649_v12 }
 0x317   : > { %v2154_v4 = vpop.eup %2153 }
 0x318   : > { %v1693_v23 = vmul.f32 0.6931472, %v2154_v4 }
 0x31a   : > { %v1724_v25 = vsub.f32 %v2769_v27, %v1693_v23 }
 0x31b   : > { %v2156_v53 = vpop.eup %2155 }
 0x31c   : > { %1740 = vst.msk [vmem:[%s2852_s23] sm:$0xff] %vm398_vm3, %v1724_v25  ;;  %v1695_v0 = vmul.f32 0.6931472, %v2156_v53 }
 0x31e   : > { %v1725_v43 = vsub.f32 %v2773_v32, %v1695_v0 }
 0x320   : > { %1741 = vst.msk [vmem:[%s2852_s23 + $0x8] sm:$0xff] %vm398_vm3, %v1725_v43  ;;  %v1652_v49 = vpop.xlane.xlu1 %1651 }
 0x321   : > { %2157 = vlog2.f32 %v1652_v49 }
 0x324   : > { %v1655_v18 = vpop.xlane.xlu0 %1654 }
 0x325   : > { %2159 = vlog2.f32 %v1655_v18 }
 0x32b   : > { %v2158_v19 = vpop.eup %2157 }
 0x32c   : > { %v1697_v9 = vmul.f32 0.6931472, %v2158_v19 }
 0x32e   : > { %v1726_v30 = vsub.f32 %v2779_v59, %v1697_v9 }
 0x32f   : > { %v2160_v1 = vpop.eup %2159 }
 0x330   : > { %1742 = vst.msk [vmem:[%s2852_s23 + $0x10] sm:$0xff] %vm398_vm3, %v1726_v30  ;;  %v1699_v27 = vmul.f32 0.6931472, %v2160_v1 }
 0x331   : > { %v1658_v47 = vpop.xlane.xlu1 %1657 }
 0x332   : > { %v1727_v21 = vsub.f32 %v2783_v35, %v1699_v27  ;;  %2161 = vlog2.f32 %v1658_v47  ;;  %v1661_v32 = vpop.xlane.xlu0 %1660 }
 0x333   : > { %2163 = vlog2.f32 %v1661_v32 }
 0x334   : > { %1743 = vst.msk [vmem:[%s2852_s23 + $0x18] sm:$0xff] %vm398_vm3, %v1727_v21 }
 0x339   : > { %v1667_v33 = vpop.xlane.xlu0 %1666 }
 0x33a   : > { %2165 = vlog2.f32 %v1667_v33 }
 0x33c   : > { %v1664_v57 = vpop.xlane.xlu1 %1663  ;;  %v2162_v41 = vpop.eup %2161 }
 0x33d   : > { %2167 = vlog2.f32 %v1664_v57  ;;  %v2164_v59 = vpop.eup %2163  ;;  %v1701_v39 = vmul.f32 0.6931472, %v2162_v41  ;;  %v1673_v22 = vpop.xlane.xlu0 %1672 }
 0x33e   : > { %v1703_v42 = vmul.f32 0.6931472, %v2164_v59  ;;  %2169 = vlog2.f32 %v1673_v22 }
 0x33f   : > { %v1728_v28 = vsub.f32 %v2788_v16, %v1701_v39 }
 0x340   : > { %v1670_v35 = vpop.xlane.xlu1 %1669  ;;  %v1729_v46 = vsub.f32 %v2791_v44, %v1703_v42 }
 0x341   : > { %2171 = vlog2.f32 %v1670_v35  ;;  %1744 = vst.msk [vmem:[%s2852_s23 + $0x20] sm:$0xff] %vm398_vm3, %v1728_v28  ;;  %v1679_v48 = vpop.xlane.xlu0 %1678 }
 0x342   : > { %1745 = vst.msk [vmem:[%s2852_s23 + $0x28] sm:$0xff] %vm398_vm3, %v1729_v46  ;;  %2173 = vlog2.f32 %v1679_v48 }
 0x344   : > { %v1676_v60 = vpop.xlane.xlu1 %1675  ;;  %v2166_v6 = vpop.eup %2165 }
 0x345   : > { %2175 = vlog2.f32 %v1676_v60  ;;  %v1707_v54 = vmul.f32 0.6931472, %v2166_v6  ;;  %v1685_v40 = vpop.xlane.xlu0 %1684 }
 0x346   : > { %2177 = vlog2.f32 %v1685_v40 }
 0x347   : > { %v2168_v17 = vpop.eup %2167  ;;  %v1731_v2 = vsub.f32 %v2797_v5, %v1707_v54 }
 0x348   : > { %v1705_v16 = vmul.f32 0.6931472, %v2168_v17  ;;  %v1682_v44 = vpop.xlane.xlu1 %1681  ;;  %v2170_v45 = vpop.eup %2169 }
 0x349   : > { %2179 = vlog2.f32 %v1682_v44  ;;  %1747 = vst.msk [vmem:[%s2852_s23 + $0x38] sm:$0xff] %vm398_vm3, %v1731_v2  ;;  %v1711_v63 = vmul.f32 0.6931472, %v2170_v45  ;;  %v1691_v26 = vpop.xlane.xlu0 %1690 }
 0x34a   : > { %v1730_v62 = vsub.f32 %v2800_v29, %v1705_v16  ;;  %2181 = vlog2.f32 %v1691_v26 }
 0x34b   : > { %v2172_v7 = vpop.eup %2171  ;;  %v1733_v3 = vsub.f32 %v2805_v10, %v1711_v63 }
 0x34c   : > { %1746 = vst.msk [vmem:[%s2852_s23 + $0x30] sm:$0xff] %vm398_vm3, %v1730_v62  ;;  %v1709_v20 = vmul.f32 0.6931472, %v2172_v7  ;;  %v1688_v5 = vpop.xlane.xlu1 %1687  ;;  %v2174_v36 = vpop.eup %2173 }
 0x34d   : > { %2183 = vlog2.f32 %v1688_v5  ;;  %1749 = vst.msk [vmem:[%s2852_s23 + $0x48] sm:$0xff] %vm398_vm3, %v1733_v3  ;;  %v1715_v29 = vmul.f32 0.6931472, %v2174_v36 }
 0x34e   : > { %v1732_v55 = vsub.f32 %v2808_v37, %v1709_v20 }
 0x34f   : > { %v2176_v58 = vpop.eup %2175  ;;  %v1735_v13 = vsub.f32 %v2815_v38, %v1715_v29 }
 0x350   : > { %1748 = vst.msk [vmem:[%s2852_s23 + $0x40] sm:$0xff] %vm398_vm3, %v1732_v55  ;;  %v1713_v51 = vmul.f32 0.6931472, %v2176_v58  ;;  %v2178_v52 = vpop.eup %2177 }
 0x351   : > { %1751 = vst.msk [vmem:[%s2852_s23 + $0x58] sm:$0xff] %vm398_vm3, %v1735_v13  ;;  %v1719_v34 = vmul.f32 0.6931472, %v2178_v52 }
 0x352   : > { %v1734_v10 = vsub.f32 %v2818_v56, %v1713_v51 }
 0x353   : > { %v2180_v37 = vpop.eup %2179  ;;  %v1737_v15 = vsub.f32 %v2823_v61, %v1719_v34 }
 0x354   : > { %1750 = vst.msk [vmem:[%s2852_s23 + $0x50] sm:$0xff] %vm398_vm3, %v1734_v10  ;;  %v1717_v14 = vmul.f32 0.6931472, %v2180_v37  ;;  %v2182_v31 = vpop.eup %2181 }
 0x355   : > { %1753 = vst.msk [vmem:[%s2852_s23 + $0x68] sm:$0xff] %vm398_vm3, %v1737_v15  ;;  %v1723_v38 = vmul.f32 0.6931472, %v2182_v31 }
 0x356   : > { %v1736_v24 = vsub.f32 %v2826_v8, %v1717_v14 }
 0x357   : > { %v2184_v12 = vpop.eup %2183  ;;  %v1739_v4 = vsub.f32 %v2832_v11, %v1723_v38 }
 0x358   : > { %1752 = vst.msk [vmem:[%s2852_s23 + $0x60] sm:$0xff] %vm398_vm3, %v1736_v24  ;;  %v1721_v56 = vmul.f32 0.6931472, %v2184_v12 }
 0x359   : > { %1755 = vst.msk [vmem:[%s2852_s23 + $0x78] sm:$0xff] %vm398_vm3, %v1739_v4 }
 0x35a   : > { %v1738_v23 = vsub.f32 %v2836_v50, %v1721_v56 }
 0x35c   : > { %1754 = vst.msk [vmem:[%s2852_s23 + $0x70] sm:$0xff] %vm398_vm3, %v1738_v23 }
 0x35d PF: > { %s17_s26 = sadd.s32 1, %s2207_s26   ;;  %s2928_s24 = smov %s2203_s25 }
 0x35e   : > { %p14_p6 = scmp.ge.s32.totalorder %s17_s26, 4   ;;  %s2929_s25 = smov %s2931_s27 }
 0x360   :  { %16 = sbr.rel (!%p14_p6) target bundleno = 2 (0x2), region = 96 }

</bundles_post_ra>
